<compile_context>
chip_gen: v7x
topology: tpu7x:2x2x1
jax: 0.10.0
libtpu: 0.0.40
codegen_flags: <defaults>
</compile_context>

<pallas_src>
import math
import functools

import jax
import jax.numpy as jnp
from jax.experimental import pallas as pl
from jax.experimental.pallas import tpu as pltpu


# ----------------------------------------------------------------------------------
# Pallas kernel: one full TransformerEncoderLayer (self-attention + FFN, post-LN)
# for a block of batch elements.  Grid iterates over batch blocks.
# ----------------------------------------------------------------------------------
def _encoder_layer_kernel(n_head,
                          x_ref, pe_ref,
                          wqkv_ref, bqkv_ref, wo_ref, bo_ref,
                          g1_ref, be1_ref,
                          w1_ref, b1_ref, w2_ref, b2_ref,
                          g2_ref, be2_ref,
                          o_ref):
    Bt, S, D = x_ref.shape
    H = n_head
    dh = D // H
    scale = 1.0 / math.sqrt(dh)

    x_raw = x_ref[...]                                        # (Bt, S, D) f32

    # --- key-padding bias, fused (was a separate host op + input) -------------------
    # Rows whose raw embedding sums to exactly 0 (the '_' blank row / seq padding)
    # are masked keys, exactly like `mask = ~encoded.sum(dim=2).bool()` in PyTorch.
    row_sum = jnp.sum(x_raw, axis=-1)                         # (Bt, S)
    key_bias = jnp.where(row_sum == 0.0, -1e9, 0.0)[:, None, :]   # (Bt, 1, S) f32

    # --- fused positional-encoding add ----------------------------------------------
    x = x_raw + pe_ref[...][None]                             # (Bt, S, D)
    x2d = x.reshape(Bt * S, D)                                # lane-dense (M, 128)

    # --- QKV projection: one bf16 matmul, f32 accumulation --------------------------
    qkv = jnp.dot(x2d.astype(jnp.bfloat16), wqkv_ref[...],
                  preferred_element_type=jnp.float32) + bqkv_ref[...]
    # fold the 1/sqrt(dh) attention scale into q once (instead of per S x S tile)
    q = (qkv[:, :D] * scale).reshape(Bt, S, D).astype(jnp.bfloat16)
    k = qkv[:, D:2 * D].reshape(Bt, S, D).astype(jnp.bfloat16)
    v = qkv[:, 2 * D:].reshape(Bt, S, D).astype(jnp.bfloat16)

    # --- multi-head self attention, batched over the batch dim ----------------------
    # Heads are a short static unroll.  Per-head contexts are concatenated back into
    # a lane-dense (M, D) slab so the output projection is a SINGLE K=128 matmul
    # (instead of eight K=16 dots with eight accumulator passes).
    ctxs = []
    for h in range(H):
        sl = slice(h * dh, (h + 1) * dh)
        s_h = jnp.einsum('bqd,bkd->bqk', q[:, :, sl], k[:, :, sl],
                         preferred_element_type=jnp.float32) + key_bias   # (Bt, S, S)
        s_h = s_h - jnp.max(s_h, axis=-1, keepdims=True)
        p = jnp.exp(s_h)
        # NOTE: approx reciprocal (EUP slot) deviates from torch.softmax's exact
        # division at the last ulp; use approx=False for bit-level parity tests.
        p = p * pl.reciprocal(jnp.sum(p, axis=-1, keepdims=True), approx=True)
        ctx_h = jnp.einsum('bqk,bkd->bqd', p.astype(jnp.bfloat16), v[:, :, sl],
                           preferred_element_type=jnp.float32)            # (Bt, S, dh)
        ctxs.append(ctx_h.astype(jnp.bfloat16))
    ctx = jnp.concatenate(ctxs, axis=-1).reshape(Bt * S, D)               # (M, D) bf16
    attn = jnp.dot(ctx, wo_ref[...], preferred_element_type=jnp.float32) + bo_ref[...]

    # --- residual + LayerNorm 1 (eps=1e-5, PyTorch default), f32 --------------------
    x1 = x2d + attn
    mu = jnp.mean(x1, axis=-1, keepdims=True)
    xc = x1 - mu
    var = jnp.mean(xc * xc, axis=-1, keepdims=True)
    x1 = xc * jax.lax.rsqrt(var + 1e-5) * g1_ref[...] + be1_ref[...]

    # --- feed-forward: Linear -> ReLU -> Linear --------------------------------------
    # hidden cast to bf16 right after bias+ReLU so the (M, F) f32 temporary is dead
    # immediately (halves the largest live temporary; matters most on v7x's 64 MiB VMEM).
    hid = jnp.maximum(
        jnp.dot(x1.astype(jnp.bfloat16), w1_ref[...],
                preferred_element_type=jnp.float32) + b1_ref[...], 0.0
    ).astype(jnp.bfloat16)
    ff = jnp.dot(hid, w2_ref[...], preferred_element_type=jnp.float32) + b2_ref[...]

    # --- residual + LayerNorm 2 ------------------------------------------------------
    x2 = x1 + ff
    mu2 = jnp.mean(x2, axis=-1, keepdims=True)
    xc2 = x2 - mu2
    var2 = jnp.mean(xc2 * xc2, axis=-1, keepdims=True)
    out = xc2 * jax.lax.rsqrt(var2 + 1e-5) * g2_ref[...] + be2_ref[...]
    o_ref[...] = out.reshape(Bt, S, D)


def _auto_batch_block(B):
    """v7x has 2 TensorCores/chip: give the 'parallel' grid axis 2 steps so the second
    core is used.  v5e/v6e have a single TC: keep one grid step (extra steps only add
    ~0.35 us per-step overhead)."""
    try:
        kind = jax.devices()[0].device_kind.lower()
    except Exception:
        kind = ""
    if "v7" in kind and B >= 2 and B % 2 == 0:
        return B // 2
    return B


def transformer_encoder_layer(x, pe, lp, n_head, batch_block=None):
    """x: (B, S, D) f32 (S a multiple of 8, D a multiple of 128),
    pe: (S, D) f32 positional table.  Returns (B, S, D) f32."""
    B, S, D = x.shape
    F = lp["w1"].shape[1]
    Bt = _auto_batch_block(B) if batch_block is None else min(batch_block, B)
    assert B % Bt == 0, "batch must divide evenly into batch blocks"
    assert D % n_head == 0

    kernel = functools.partial(_encoder_layer_kernel, n_head)

    # bf16 matmul operands (halves weight DMA bytes, bf16 MXU path); biases / LN stay f32.
    wqkv = lp["wqkv"].astype(jnp.bfloat16)
    wo = lp["wo"].astype(jnp.bfloat16)
    w1 = lp["w1"].astype(jnp.bfloat16)
    w2 = lp["w2"].astype(jnp.bfloat16)

    def inv(shape):  # block-invariant (weights, PE table): fetched once, reused per step
        nd = len(shape)
        return pl.BlockSpec(shape, lambda b, _nd=nd: (0,) * _nd)

    # NOTE: at these sizes everything (weights ~0.7 MiB bf16 + tiny activations) fits
    # comfortably in the default scoped-VMEM budget on all generations, so
    # vmem_limit_bytes is left at its default.
    return pl.pallas_call(
        kernel,
        out_shape=jax.ShapeDtypeStruct((B, S, D), jnp.float32),
        grid=(B // Bt,),
        in_specs=[
            pl.BlockSpec((Bt, S, D), lambda b: (b, 0, 0)),   # activations, batch block
            inv((S, D)),                                     # positional table
            inv((D, 3 * D)), inv((1, 3 * D)),                # in-proj
            inv((D, D)), inv((1, D)),                        # out-proj
            inv((1, D)), inv((1, D)),                        # LN1 gamma/beta
            inv((D, F)), inv((1, F)),                        # FFN linear1
            inv((F, D)), inv((1, D)),                        # FFN linear2
            inv((1, D)), inv((1, D)),                        # LN2 gamma/beta
        ],
        out_specs=pl.BlockSpec((Bt, S, D), lambda b: (b, 0, 0)),
        compiler_params=pltpu.CompilerParams(
            dimension_semantics=("parallel",)),
    )(x, pe,
      wqkv, lp["bqkv"], wo, lp["bo"],
      lp["g1"], lp["be1"], w1, lp["b1"],
      w2, lp["b2"], lp["g2"], lp["be2"])


# ----------------------------------------------------------------------------------
# Glue (plain JAX): embeddings, charge prepend, mask, sequence padding, PE table.
# ----------------------------------------------------------------------------------
def positional_encoding_table(S, D, min_wavelength=1.0, max_wavelength=10000.0):
    """depthcharge PositionalEncoder table (min_wavelength=1 default):
    sin(pos / (base * scale^(i/(n-1)))), cos(...), concatenated along the feature dim."""
    n_sin = D // 2
    n_cos = D - n_sin
    base = min_wavelength / (2.0 * math.pi)
    scale = max_wavelength / min_wavelength
    sin_term = base * scale ** (jnp.arange(n_sin, dtype=jnp.float32) / (n_sin - 1))
    cos_term = base * scale ** (jnp.arange(n_cos, dtype=jnp.float32) / (n_cos - 1))
    pos = jnp.arange(S, dtype=jnp.float32)[:, None]
    return jnp.concatenate(
        [jnp.sin(pos / sin_term[None, :]), jnp.cos(pos / cos_term[None, :])], axis=1)


def peptide_encoder_forward(params, tokens, charges, *, n_head, batch_block=None):
    """tokens: (B, L) int32 already pad_sequence'd (padding value 0, as in PyTorch);
    charges: (B,) int32 in [1, max_charge].
    Returns (latent (B, L+1, D) f32, mask (B, L+1) bool)."""
    encoded = jnp.take(params["aa_embed"], tokens, axis=0)               # (B, L, D)
    ch = jnp.take(params["charge_embed"], charges - 1, axis=0)[:, None]  # (B, 1, D)
    encoded = jnp.concatenate([ch, encoded], axis=1)                     # (B, S0, D)

    # Reproduces the original module exactly: only all-zero embedding rows (the blank
    # '_' padding_idx row) are masked; pad_sequence's value-0 token maps to embedding
    # row 0, which is non-zero, same as in the PyTorch model.
    mask = encoded.sum(axis=2) == 0.0                                    # (B, S0) bool

    B, S0, D = encoded.shape
    S = ((S0 + 7) // 8) * 8                  # pad seq to a sublane multiple of 8
    pad = S - S0
    encoded_p = jnp.pad(encoded, ((0, 0), (0, pad), (0, 0))) if pad else encoded

    pe = positional_encoding_table(S, D)                                 # (S, D)
    latent_p = transformer_encoder_layer(encoded_p, pe, params["layer0"], n_head,
                                         batch_block=batch_block)
    return latent_p[:, :S0], mask


# ----------------------------------------------------------------------------------
# Deterministic parameter init (synthetic; shapes follow the module's __init__).
# ----------------------------------------------------------------------------------
def init_params(key, vocab, max_charge, D, F):
    ks = jax.random.split(key, 12)

    def nrm(k, shape, s=0.05):
        return jax.random.normal(k, shape, jnp.float32) * s

    aa = jax.random.normal(ks[0], (vocab, D), jnp.float32)
    aa = aa.at[vocab - 1].set(0.0)   # nn.Embedding(padding_idx=-1) -> last row zeroed ('_')

    layer0 = dict(
        wqkv=nrm(ks[2], (D, 3 * D)), bqkv=nrm(ks[3], (1, 3 * D)),
        wo=nrm(ks[4], (D, D)),       bo=nrm(ks[5], (1, D)),
        g1=jnp.ones((1, D), jnp.float32), be1=jnp.zeros((1, D), jnp.float32),
        w1=nrm(ks[6], (D, F)),       b1=nrm(ks[7], (1, F)),
        w2=nrm(ks[8], (F, D)),       b2=nrm(ks[9], (1, D)),
        g2=jnp.ones((1, D), jnp.float32), be2=jnp.zeros((1, D), jnp.float32),
    )
    return dict(
        aa_embed=aa,
        charge_embed=jax.random.normal(ks[1], (max_charge, D), jnp.float32),
        layer0=layer0,
    )


if __name__ == "__main__":
    B = 2            # batch
    L = 8            # padded peptide length (after pad_sequence)
    D = 128          # dim_model (module default; lane-dense last dim)
    H = 8            # n_head (module default)
    F = 1024         # dim_feedforward (module default)
    MAX_CHARGE = 5
    VOCAB = 21       # 20 canonical residues + '_' blank

    key = jax.random.PRNGKey(0)
    params = init_params(key, VOCAB, MAX_CHARGE, D, F)

    # Token indices (as tokenize() would produce); second sequence is shorter and
    # padded with 0 (pad_sequence default) and contains the blank '_' (index 20,
    # zero embedding) so the key-masking path is exercised.
    tokens = jnp.array([[1, 5, 7, 3, 2, 9, 4, 6],
                        [2, 8, 20, 11, 0, 0, 0, 0]], dtype=jnp.int32)
    charges = jnp.array([2, 3], dtype=jnp.int32)

    fwd = jax.jit(functools.partial(peptide_encoder_forward, n_head=H))
    latent, mask = fwd(params, tokens, charges)
    jax.block_until_ready(latent)

    assert latent.shape == (B, L + 1, D) and latent.dtype == jnp.float32
    assert mask.shape == (B, L + 1) and mask.dtype == jnp.bool_
    assert bool(jnp.all(jnp.isfinite(latent)))
    print("KERNEL_OK")
</pallas_src>

<mosaic_0001>
module attributes {stable_mosaic.version = 11 : i64} {
  func.func @_encoder_layer_kernel(%arg0: i32, %arg1: memref<2x16x128xf32, #tpu.memory_space<vmem>>, %arg2: memref<16x128xf32, #tpu.memory_space<vmem>>, %arg3: memref<128x384xbf16, #tpu.memory_space<vmem>>, %arg4: memref<1x384xf32, #tpu.memory_space<vmem>>, %arg5: memref<128x128xbf16, #tpu.memory_space<vmem>>, %arg6: memref<1x128xf32, #tpu.memory_space<vmem>>, %arg7: memref<1x128xf32, #tpu.memory_space<vmem>>, %arg8: memref<1x128xf32, #tpu.memory_space<vmem>>, %arg9: memref<128x1024xbf16, #tpu.memory_space<vmem>>, %arg10: memref<1x1024xf32, #tpu.memory_space<vmem>>, %arg11: memref<1024x128xbf16, #tpu.memory_space<vmem>>, %arg12: memref<1x128xf32, #tpu.memory_space<vmem>>, %arg13: memref<1x128xf32, #tpu.memory_space<vmem>>, %arg14: memref<1x128xf32, #tpu.memory_space<vmem>>, %arg15: memref<2x16x128xf32, #tpu.memory_space<vmem>>) attributes {dimension_semantics = [#tpu.dimension_semantics<parallel>], iteration_bounds = array<i64: 1>, scalar_prefetch = 0 : i64, scratch_operands = 0 : i64, tpu.core_type = #tpu.core_type<tc>, window_params = [{transform_indices = @transform_0, window_bounds = array<i64: 2, 16, 128>}, {pipeline_mode = #tpu.pipeline_mode<synchronous>, transform_indices = @transform_1, window_bounds = array<i64: 16, 128>}, {pipeline_mode = #tpu.pipeline_mode<synchronous>, transform_indices = @transform_2, window_bounds = array<i64: 128, 384>}, {pipeline_mode = #tpu.pipeline_mode<synchronous>, transform_indices = @transform_3, window_bounds = array<i64: 1, 384>}, {pipeline_mode = #tpu.pipeline_mode<synchronous>, transform_indices = @transform_4, window_bounds = array<i64: 128, 128>}, {pipeline_mode = #tpu.pipeline_mode<synchronous>, transform_indices = @transform_5, window_bounds = array<i64: 1, 128>}, {pipeline_mode = #tpu.pipeline_mode<synchronous>, transform_indices = @transform_6, window_bounds = array<i64: 1, 128>}, {pipeline_mode = #tpu.pipeline_mode<synchronous>, transform_indices = @transform_7, window_bounds = array<i64: 1, 128>}, {pipeline_mode = #tpu.pipeline_mode<synchronous>, transform_indices = @transform_8, window_bounds = array<i64: 128, 1024>}, {pipeline_mode = #tpu.pipeline_mode<synchronous>, transform_indices = @transform_9, window_bounds = array<i64: 1, 1024>}, {pipeline_mode = #tpu.pipeline_mode<synchronous>, transform_indices = @transform_10, window_bounds = array<i64: 1024, 128>}, {pipeline_mode = #tpu.pipeline_mode<synchronous>, transform_indices = @transform_11, window_bounds = array<i64: 1, 128>}, {pipeline_mode = #tpu.pipeline_mode<synchronous>, transform_indices = @transform_12, window_bounds = array<i64: 1, 128>}, {pipeline_mode = #tpu.pipeline_mode<synchronous>, transform_indices = @transform_13, window_bounds = array<i64: 1, 128>}, {transform_indices = @transform_14, window_bounds = array<i64: 2, 16, 128>}]} {
    %c0 = arith.constant 0 : index
    %c0_0 = arith.constant 0 : index
    %c0_1 = arith.constant 0 : index
    %0 = vector.load %arg1[%c0, %c0_0, %c0_1] : memref<2x16x128xf32, #tpu.memory_space<vmem>>, vector<2x16x128xf32>
    %cst = arith.constant dense<0.000000e+00> : vector<2x16xf32>
    %1 = vector.multi_reduction <add>, %0, %cst [2] : vector<2x16x128xf32> to vector<2x16xf32>
    %cst_2 = arith.constant 0.000000e+00 : f32
    %2 = vector.broadcast %cst_2 : f32 to vector<2x16xf32>
    %3 = arith.cmpf oeq, %1, %2 : vector<2x16xf32>
    %cst_3 = arith.constant -1.000000e+09 : f32
    %cst_4 = arith.constant 0.000000e+00 : f32
    %4 = vector.broadcast %cst_3 : f32 to vector<2x16xf32>
    %5 = vector.broadcast %cst_4 : f32 to vector<2x16xf32>
    %6 = arith.select %3, %4, %5 : vector<2x16xi1>, vector<2x16xf32>
    %7 = vector.shape_cast %6 : vector<2x16xf32> to vector<2x1x16xf32>
    %c0_5 = arith.constant 0 : index
    %c0_6 = arith.constant 0 : index
    %8 = vector.load %arg2[%c0_5, %c0_6] : memref<16x128xf32, #tpu.memory_space<vmem>>, vector<16x128xf32>
    %9 = vector.shape_cast %8 : vector<16x128xf32> to vector<1x16x128xf32>
    %10 = vector.broadcast %9 : vector<1x16x128xf32> to vector<2x16x128xf32>
    %11 = arith.addf %0, %10 : vector<2x16x128xf32>
    %12 = vector.shape_cast %11 : vector<2x16x128xf32> to vector<32x128xf32>
    %13 = arith.truncf %12 : vector<32x128xf32> to vector<32x128xbf16>
    %c0_7 = arith.constant 0 : index
    %c0_8 = arith.constant 0 : index
    %14 = vector.load %arg3[%c0_7, %c0_8] : memref<128x384xbf16, #tpu.memory_space<vmem>>, vector<128x384xbf16>
    %cst_9 = arith.constant dense<0.000000e+00> : vector<32x384xf32>
    %15 = tpu.matmul %13, %14, %cst_9 {dimension_numbers = #tpu.dot_dimension_numbers<[1], [0], [0], [1], [0, 0, 1, 1], [], []>} : vector<32x128xbf16>, vector<128x384xbf16>, vector<32x384xf32> -> vector<32x384xf32>
    %c0_10 = arith.constant 0 : index
    %c0_11 = arith.constant 0 : index
    %16 = vector.load %arg4[%c0_10, %c0_11] : memref<1x384xf32, #tpu.memory_space<vmem>>, vector<1x384xf32>
    %17 = vector.broadcast %16 : vector<1x384xf32> to vector<32x384xf32>
    %18 = arith.addf %15, %17 : vector<32x384xf32>
    %19 = vector.extract_strided_slice %18 {offsets = [0, 0], sizes = [32, 128], strides = [1, 1]} : vector<32x384xf32> to vector<32x128xf32>
    %cst_12 = arith.constant 2.500000e-01 : f32
    %20 = vector.broadcast %cst_12 : f32 to vector<32x128xf32>
    %21 = arith.mulf %19, %20 : vector<32x128xf32>
    %22 = vector.shape_cast %21 : vector<32x128xf32> to vector<2x16x128xf32>
    %23 = arith.truncf %22 : vector<2x16x128xf32> to vector<2x16x128xbf16>
    %24 = vector.extract_strided_slice %18 {offsets = [0, 128], sizes = [32, 128], strides = [1, 1]} : vector<32x384xf32> to vector<32x128xf32>
    %25 = vector.shape_cast %24 : vector<32x128xf32> to vector<2x16x128xf32>
    %26 = arith.truncf %25 : vector<2x16x128xf32> to vector<2x16x128xbf16>
    %27 = vector.extract_strided_slice %18 {offsets = [0, 256], sizes = [32, 128], strides = [1, 1]} : vector<32x384xf32> to vector<32x128xf32>
    %28 = vector.shape_cast %27 : vector<32x128xf32> to vector<2x16x128xf32>
    %29 = arith.truncf %28 : vector<2x16x128xf32> to vector<2x16x128xbf16>
    %30 = vector.extract_strided_slice %23 {offsets = [0, 0, 0], sizes = [2, 16, 16], strides = [1, 1, 1]} : vector<2x16x128xbf16> to vector<2x16x16xbf16>
    %31 = vector.extract_strided_slice %26 {offsets = [0, 0, 0], sizes = [2, 16, 16], strides = [1, 1, 1]} : vector<2x16x128xbf16> to vector<2x16x16xbf16>
    "tpu.trace_start"() <{level = 10 : i32, message = "bqd,bkd->bqk"}> : () -> ()
    %cst_13 = arith.constant dense<0.000000e+00> : vector<2x16x16xf32>
    %32 = tpu.matmul %30, %31, %cst_13 {dimension_numbers = #tpu.dot_dimension_numbers<[2], [2], [1], [1], [0, 0, 0, 1, 1, 1], [0], [0]>} : vector<2x16x16xbf16>, vector<2x16x16xbf16>, vector<2x16x16xf32> -> vector<2x16x16xf32>
    "tpu.trace_stop"() : () -> ()
    %33 = vector.broadcast %7 : vector<2x1x16xf32> to vector<2x16x16xf32>
    %34 = arith.addf %32, %33 : vector<2x16x16xf32>
    %cst_14 = arith.constant dense<0xFF800000> : vector<2x16xf32>
    %35 = vector.multi_reduction <maximumf>, %34, %cst_14 [2] : vector<2x16x16xf32> to vector<2x16xf32>
    %36 = vector.shape_cast %35 : vector<2x16xf32> to vector<2x16x1xf32>
    %37 = vector.broadcast %36 : vector<2x16x1xf32> to vector<2x16x16xf32>
    %38 = arith.subf %34, %37 : vector<2x16x16xf32>
    %39 = math.exp %38 : vector<2x16x16xf32>
    %cst_15 = arith.constant dense<0.000000e+00> : vector<2x16xf32>
    %40 = vector.multi_reduction <add>, %39, %cst_15 [2] : vector<2x16x16xf32> to vector<2x16xf32>
    %41 = vector.shape_cast %40 : vector<2x16xf32> to vector<2x16x1xf32>
    %42 = tpu.reciprocal %41 {approx = true} : vector<2x16x1xf32> -> vector<2x16x1xf32>
    %43 = vector.broadcast %42 : vector<2x16x1xf32> to vector<2x16x16xf32>
    %44 = arith.mulf %39, %43 : vector<2x16x16xf32>
    %45 = arith.truncf %44 : vector<2x16x16xf32> to vector<2x16x16xbf16>
    %46 = vector.extract_strided_slice %29 {offsets = [0, 0, 0], sizes = [2, 16, 16], strides = [1, 1, 1]} : vector<2x16x128xbf16> to vector<2x16x16xbf16>
    "tpu.trace_start"() <{level = 10 : i32, message = "bqk,bkd->bqd"}> : () -> ()
    %cst_16 = arith.constant dense<0.000000e+00> : vector<2x16x16xf32>
    %47 = tpu.matmul %45, %46, %cst_16 {dimension_numbers = #tpu.dot_dimension_numbers<[2], [1], [1], [2], [0, 0, 0, 1, 1, 2], [0], [0]>} : vector<2x16x16xbf16>, vector<2x16x16xbf16>, vector<2x16x16xf32> -> vector<2x16x16xf32>
    "tpu.trace_stop"() : () -> ()
    %48 = arith.truncf %47 : vector<2x16x16xf32> to vector<2x16x16xbf16>
    %49 = vector.extract_strided_slice %23 {offsets = [0, 0, 16], sizes = [2, 16, 16], strides = [1, 1, 1]} : vector<2x16x128xbf16> to vector<2x16x16xbf16>
    %50 = vector.extract_strided_slice %26 {offsets = [0, 0, 16], sizes = [2, 16, 16], strides = [1, 1, 1]} : vector<2x16x128xbf16> to vector<2x16x16xbf16>
    "tpu.trace_start"() <{level = 10 : i32, message = "bqd,bkd->bqk"}> : () -> ()
    %cst_17 = arith.constant dense<0.000000e+00> : vector<2x16x16xf32>
    %51 = tpu.matmul %49, %50, %cst_17 {dimension_numbers = #tpu.dot_dimension_numbers<[2], [2], [1], [1], [0, 0, 0, 1, 1, 1], [0], [0]>} : vector<2x16x16xbf16>, vector<2x16x16xbf16>, vector<2x16x16xf32> -> vector<2x16x16xf32>
    "tpu.trace_stop"() : () -> ()
    %52 = vector.broadcast %7 : vector<2x1x16xf32> to vector<2x16x16xf32>
    %53 = arith.addf %51, %52 : vector<2x16x16xf32>
    %cst_18 = arith.constant dense<0xFF800000> : vector<2x16xf32>
    %54 = vector.multi_reduction <maximumf>, %53, %cst_18 [2] : vector<2x16x16xf32> to vector<2x16xf32>
    %55 = vector.shape_cast %54 : vector<2x16xf32> to vector<2x16x1xf32>
    %56 = vector.broadcast %55 : vector<2x16x1xf32> to vector<2x16x16xf32>
    %57 = arith.subf %53, %56 : vector<2x16x16xf32>
    %58 = math.exp %57 : vector<2x16x16xf32>
    %cst_19 = arith.constant dense<0.000000e+00> : vector<2x16xf32>
    %59 = vector.multi_reduction <add>, %58, %cst_19 [2] : vector<2x16x16xf32> to vector<2x16xf32>
    %60 = vector.shape_cast %59 : vector<2x16xf32> to vector<2x16x1xf32>
    %61 = tpu.reciprocal %60 {approx = true} : vector<2x16x1xf32> -> vector<2x16x1xf32>
    %62 = vector.broadcast %61 : vector<2x16x1xf32> to vector<2x16x16xf32>
    %63 = arith.mulf %58, %62 : vector<2x16x16xf32>
    %64 = arith.truncf %63 : vector<2x16x16xf32> to vector<2x16x16xbf16>
    %65 = vector.extract_strided_slice %29 {offsets = [0, 0, 16], sizes = [2, 16, 16], strides = [1, 1, 1]} : vector<2x16x128xbf16> to vector<2x16x16xbf16>
    "tpu.trace_start"() <{level = 10 : i32, message = "bqk,bkd->bqd"}> : () -> ()
    %cst_20 = arith.constant dense<0.000000e+00> : vector<2x16x16xf32>
    %66 = tpu.matmul %64, %65, %cst_20 {dimension_numbers = #tpu.dot_dimension_numbers<[2], [1], [1], [2], [0, 0, 0, 1, 1, 2], [0], [0]>} : vector<2x16x16xbf16>, vector<2x16x16xbf16>, vector<2x16x16xf32> -> vector<2x16x16xf32>
    "tpu.trace_stop"() : () -> ()
    %67 = arith.truncf %66 : vector<2x16x16xf32> to vector<2x16x16xbf16>
    %68 = vector.extract_strided_slice %23 {offsets = [0, 0, 32], sizes = [2, 16, 16], strides = [1, 1, 1]} : vector<2x16x128xbf16> to vector<2x16x16xbf16>
    %69 = vector.extract_strided_slice %26 {offsets = [0, 0, 32], sizes = [2, 16, 16], strides = [1, 1, 1]} : vector<2x16x128xbf16> to vector<2x16x16xbf16>
    "tpu.trace_start"() <{level = 10 : i32, message = "bqd,bkd->bqk"}> : () -> ()
    %cst_21 = arith.constant dense<0.000000e+00> : vector<2x16x16xf32>
    %70 = tpu.matmul %68, %69, %cst_21 {dimension_numbers = #tpu.dot_dimension_numbers<[2], [2], [1], [1], [0, 0, 0, 1, 1, 1], [0], [0]>} : vector<2x16x16xbf16>, vector<2x16x16xbf16>, vector<2x16x16xf32> -> vector<2x16x16xf32>
    "tpu.trace_stop"() : () -> ()
    %71 = vector.broadcast %7 : vector<2x1x16xf32> to vector<2x16x16xf32>
    %72 = arith.addf %70, %71 : vector<2x16x16xf32>
    %cst_22 = arith.constant dense<0xFF800000> : vector<2x16xf32>
    %73 = vector.multi_reduction <maximumf>, %72, %cst_22 [2] : vector<2x16x16xf32> to vector<2x16xf32>
    %74 = vector.shape_cast %73 : vector<2x16xf32> to vector<2x16x1xf32>
    %75 = vector.broadcast %74 : vector<2x16x1xf32> to vector<2x16x16xf32>
    %76 = arith.subf %72, %75 : vector<2x16x16xf32>
    %77 = math.exp %76 : vector<2x16x16xf32>
    %cst_23 = arith.constant dense<0.000000e+00> : vector<2x16xf32>
    %78 = vector.multi_reduction <add>, %77, %cst_23 [2] : vector<2x16x16xf32> to vector<2x16xf32>
    %79 = vector.shape_cast %78 : vector<2x16xf32> to vector<2x16x1xf32>
    %80 = tpu.reciprocal %79 {approx = true} : vector<2x16x1xf32> -> vector<2x16x1xf32>
    %81 = vector.broadcast %80 : vector<2x16x1xf32> to vector<2x16x16xf32>
    %82 = arith.mulf %77, %81 : vector<2x16x16xf32>
    %83 = arith.truncf %82 : vector<2x16x16xf32> to vector<2x16x16xbf16>
    %84 = vector.extract_strided_slice %29 {offsets = [0, 0, 32], sizes = [2, 16, 16], strides = [1, 1, 1]} : vector<2x16x128xbf16> to vector<2x16x16xbf16>
    "tpu.trace_start"() <{level = 10 : i32, message = "bqk,bkd->bqd"}> : () -> ()
    %cst_24 = arith.constant dense<0.000000e+00> : vector<2x16x16xf32>
    %85 = tpu.matmul %83, %84, %cst_24 {dimension_numbers = #tpu.dot_dimension_numbers<[2], [1], [1], [2], [0, 0, 0, 1, 1, 2], [0], [0]>} : vector<2x16x16xbf16>, vector<2x16x16xbf16>, vector<2x16x16xf32> -> vector<2x16x16xf32>
    "tpu.trace_stop"() : () -> ()
    %86 = arith.truncf %85 : vector<2x16x16xf32> to vector<2x16x16xbf16>
    %87 = vector.extract_strided_slice %23 {offsets = [0, 0, 48], sizes = [2, 16, 16], strides = [1, 1, 1]} : vector<2x16x128xbf16> to vector<2x16x16xbf16>
    %88 = vector.extract_strided_slice %26 {offsets = [0, 0, 48], sizes = [2, 16, 16], strides = [1, 1, 1]} : vector<2x16x128xbf16> to vector<2x16x16xbf16>
    "tpu.trace_start"() <{level = 10 : i32, message = "bqd,bkd->bqk"}> : () -> ()
    %cst_25 = arith.constant dense<0.000000e+00> : vector<2x16x16xf32>
    %89 = tpu.matmul %87, %88, %cst_25 {dimension_numbers = #tpu.dot_dimension_numbers<[2], [2], [1], [1], [0, 0, 0, 1, 1, 1], [0], [0]>} : vector<2x16x16xbf16>, vector<2x16x16xbf16>, vector<2x16x16xf32> -> vector<2x16x16xf32>
    "tpu.trace_stop"() : () -> ()
    %90 = vector.broadcast %7 : vector<2x1x16xf32> to vector<2x16x16xf32>
    %91 = arith.addf %89, %90 : vector<2x16x16xf32>
    %cst_26 = arith.constant dense<0xFF800000> : vector<2x16xf32>
    %92 = vector.multi_reduction <maximumf>, %91, %cst_26 [2] : vector<2x16x16xf32> to vector<2x16xf32>
    %93 = vector.shape_cast %92 : vector<2x16xf32> to vector<2x16x1xf32>
    %94 = vector.broadcast %93 : vector<2x16x1xf32> to vector<2x16x16xf32>
    %95 = arith.subf %91, %94 : vector<2x16x16xf32>
    %96 = math.exp %95 : vector<2x16x16xf32>
    %cst_27 = arith.constant dense<0.000000e+00> : vector<2x16xf32>
    %97 = vector.multi_reduction <add>, %96, %cst_27 [2] : vector<2x16x16xf32> to vector<2x16xf32>
    %98 = vector.shape_cast %97 : vector<2x16xf32> to vector<2x16x1xf32>
    %99 = tpu.reciprocal %98 {approx = true} : vector<2x16x1xf32> -> vector<2x16x1xf32>
    %100 = vector.broadcast %99 : vector<2x16x1xf32> to vector<2x16x16xf32>
    %101 = arith.mulf %96, %100 : vector<2x16x16xf32>
    %102 = arith.truncf %101 : vector<2x16x16xf32> to vector<2x16x16xbf16>
    %103 = vector.extract_strided_slice %29 {offsets = [0, 0, 48], sizes = [2, 16, 16], strides = [1, 1, 1]} : vector<2x16x128xbf16> to vector<2x16x16xbf16>
    "tpu.trace_start"() <{level = 10 : i32, message = "bqk,bkd->bqd"}> : () -> ()
    %cst_28 = arith.constant dense<0.000000e+00> : vector<2x16x16xf32>
    %104 = tpu.matmul %102, %103, %cst_28 {dimension_numbers = #tpu.dot_dimension_numbers<[2], [1], [1], [2], [0, 0, 0, 1, 1, 2], [0], [0]>} : vector<2x16x16xbf16>, vector<2x16x16xbf16>, vector<2x16x16xf32> -> vector<2x16x16xf32>
    "tpu.trace_stop"() : () -> ()
    %105 = arith.truncf %104 : vector<2x16x16xf32> to vector<2x16x16xbf16>
    %106 = vector.extract_strided_slice %23 {offsets = [0, 0, 64], sizes = [2, 16, 16], strides = [1, 1, 1]} : vector<2x16x128xbf16> to vector<2x16x16xbf16>
    %107 = vector.extract_strided_slice %26 {offsets = [0, 0, 64], sizes = [2, 16, 16], strides = [1, 1, 1]} : vector<2x16x128xbf16> to vector<2x16x16xbf16>
    "tpu.trace_start"() <{level = 10 : i32, message = "bqd,bkd->bqk"}> : () -> ()
    %cst_29 = arith.constant dense<0.000000e+00> : vector<2x16x16xf32>
    %108 = tpu.matmul %106, %107, %cst_29 {dimension_numbers = #tpu.dot_dimension_numbers<[2], [2], [1], [1], [0, 0, 0, 1, 1, 1], [0], [0]>} : vector<2x16x16xbf16>, vector<2x16x16xbf16>, vector<2x16x16xf32> -> vector<2x16x16xf32>
    "tpu.trace_stop"() : () -> ()
    %109 = vector.broadcast %7 : vector<2x1x16xf32> to vector<2x16x16xf32>
    %110 = arith.addf %108, %109 : vector<2x16x16xf32>
    %cst_30 = arith.constant dense<0xFF800000> : vector<2x16xf32>
    %111 = vector.multi_reduction <maximumf>, %110, %cst_30 [2] : vector<2x16x16xf32> to vector<2x16xf32>
    %112 = vector.shape_cast %111 : vector<2x16xf32> to vector<2x16x1xf32>
    %113 = vector.broadcast %112 : vector<2x16x1xf32> to vector<2x16x16xf32>
    %114 = arith.subf %110, %113 : vector<2x16x16xf32>
    %115 = math.exp %114 : vector<2x16x16xf32>
    %cst_31 = arith.constant dense<0.000000e+00> : vector<2x16xf32>
    %116 = vector.multi_reduction <add>, %115, %cst_31 [2] : vector<2x16x16xf32> to vector<2x16xf32>
    %117 = vector.shape_cast %116 : vector<2x16xf32> to vector<2x16x1xf32>
    %118 = tpu.reciprocal %117 {approx = true} : vector<2x16x1xf32> -> vector<2x16x1xf32>
    %119 = vector.broadcast %118 : vector<2x16x1xf32> to vector<2x16x16xf32>
    %120 = arith.mulf %115, %119 : vector<2x16x16xf32>
    %121 = arith.truncf %120 : vector<2x16x16xf32> to vector<2x16x16xbf16>
    %122 = vector.extract_strided_slice %29 {offsets = [0, 0, 64], sizes = [2, 16, 16], strides = [1, 1, 1]} : vector<2x16x128xbf16> to vector<2x16x16xbf16>
    "tpu.trace_start"() <{level = 10 : i32, message = "bqk,bkd->bqd"}> : () -> ()
    %cst_32 = arith.constant dense<0.000000e+00> : vector<2x16x16xf32>
    %123 = tpu.matmul %121, %122, %cst_32 {dimension_numbers = #tpu.dot_dimension_numbers<[2], [1], [1], [2], [0, 0, 0, 1, 1, 2], [0], [0]>} : vector<2x16x16xbf16>, vector<2x16x16xbf16>, vector<2x16x16xf32> -> vector<2x16x16xf32>
    "tpu.trace_stop"() : () -> ()
    %124 = arith.truncf %123 : vector<2x16x16xf32> to vector<2x16x16xbf16>
    %125 = vector.extract_strided_slice %23 {offsets = [0, 0, 80], sizes = [2, 16, 16], strides = [1, 1, 1]} : vector<2x16x128xbf16> to vector<2x16x16xbf16>
    %126 = vector.extract_strided_slice %26 {offsets = [0, 0, 80], sizes = [2, 16, 16], strides = [1, 1, 1]} : vector<2x16x128xbf16> to vector<2x16x16xbf16>
    "tpu.trace_start"() <{level = 10 : i32, message = "bqd,bkd->bqk"}> : () -> ()
    %cst_33 = arith.constant dense<0.000000e+00> : vector<2x16x16xf32>
    %127 = tpu.matmul %125, %126, %cst_33 {dimension_numbers = #tpu.dot_dimension_numbers<[2], [2], [1], [1], [0, 0, 0, 1, 1, 1], [0], [0]>} : vector<2x16x16xbf16>, vector<2x16x16xbf16>, vector<2x16x16xf32> -> vector<2x16x16xf32>
    "tpu.trace_stop"() : () -> ()
    %128 = vector.broadcast %7 : vector<2x1x16xf32> to vector<2x16x16xf32>
    %129 = arith.addf %127, %128 : vector<2x16x16xf32>
    %cst_34 = arith.constant dense<0xFF800000> : vector<2x16xf32>
    %130 = vector.multi_reduction <maximumf>, %129, %cst_34 [2] : vector<2x16x16xf32> to vector<2x16xf32>
    %131 = vector.shape_cast %130 : vector<2x16xf32> to vector<2x16x1xf32>
    %132 = vector.broadcast %131 : vector<2x16x1xf32> to vector<2x16x16xf32>
    %133 = arith.subf %129, %132 : vector<2x16x16xf32>
    %134 = math.exp %133 : vector<2x16x16xf32>
    %cst_35 = arith.constant dense<0.000000e+00> : vector<2x16xf32>
    %135 = vector.multi_reduction <add>, %134, %cst_35 [2] : vector<2x16x16xf32> to vector<2x16xf32>
    %136 = vector.shape_cast %135 : vector<2x16xf32> to vector<2x16x1xf32>
    %137 = tpu.reciprocal %136 {approx = true} : vector<2x16x1xf32> -> vector<2x16x1xf32>
    %138 = vector.broadcast %137 : vector<2x16x1xf32> to vector<2x16x16xf32>
    %139 = arith.mulf %134, %138 : vector<2x16x16xf32>
    %140 = arith.truncf %139 : vector<2x16x16xf32> to vector<2x16x16xbf16>
    %141 = vector.extract_strided_slice %29 {offsets = [0, 0, 80], sizes = [2, 16, 16], strides = [1, 1, 1]} : vector<2x16x128xbf16> to vector<2x16x16xbf16>
    "tpu.trace_start"() <{level = 10 : i32, message = "bqk,bkd->bqd"}> : () -> ()
    %cst_36 = arith.constant dense<0.000000e+00> : vector<2x16x16xf32>
    %142 = tpu.matmul %140, %141, %cst_36 {dimension_numbers = #tpu.dot_dimension_numbers<[2], [1], [1], [2], [0, 0, 0, 1, 1, 2], [0], [0]>} : vector<2x16x16xbf16>, vector<2x16x16xbf16>, vector<2x16x16xf32> -> vector<2x16x16xf32>
    "tpu.trace_stop"() : () -> ()
    %143 = arith.truncf %142 : vector<2x16x16xf32> to vector<2x16x16xbf16>
    %144 = vector.extract_strided_slice %23 {offsets = [0, 0, 96], sizes = [2, 16, 16], strides = [1, 1, 1]} : vector<2x16x128xbf16> to vector<2x16x16xbf16>
    %145 = vector.extract_strided_slice %26 {offsets = [0, 0, 96], sizes = [2, 16, 16], strides = [1, 1, 1]} : vector<2x16x128xbf16> to vector<2x16x16xbf16>
    "tpu.trace_start"() <{level = 10 : i32, message = "bqd,bkd->bqk"}> : () -> ()
    %cst_37 = arith.constant dense<0.000000e+00> : vector<2x16x16xf32>
    %146 = tpu.matmul %144, %145, %cst_37 {dimension_numbers = #tpu.dot_dimension_numbers<[2], [2], [1], [1], [0, 0, 0, 1, 1, 1], [0], [0]>} : vector<2x16x16xbf16>, vector<2x16x16xbf16>, vector<2x16x16xf32> -> vector<2x16x16xf32>
    "tpu.trace_stop"() : () -> ()
    %147 = vector.broadcast %7 : vector<2x1x16xf32> to vector<2x16x16xf32>
    %148 = arith.addf %146, %147 : vector<2x16x16xf32>
    %cst_38 = arith.constant dense<0xFF800000> : vector<2x16xf32>
    %149 = vector.multi_reduction <maximumf>, %148, %cst_38 [2] : vector<2x16x16xf32> to vector<2x16xf32>
    %150 = vector.shape_cast %149 : vector<2x16xf32> to vector<2x16x1xf32>
    %151 = vector.broadcast %150 : vector<2x16x1xf32> to vector<2x16x16xf32>
    %152 = arith.subf %148, %151 : vector<2x16x16xf32>
    %153 = math.exp %152 : vector<2x16x16xf32>
    %cst_39 = arith.constant dense<0.000000e+00> : vector<2x16xf32>
    %154 = vector.multi_reduction <add>, %153, %cst_39 [2] : vector<2x16x16xf32> to vector<2x16xf32>
    %155 = vector.shape_cast %154 : vector<2x16xf32> to vector<2x16x1xf32>
    %156 = tpu.reciprocal %155 {approx = true} : vector<2x16x1xf32> -> vector<2x16x1xf32>
    %157 = vector.broadcast %156 : vector<2x16x1xf32> to vector<2x16x16xf32>
    %158 = arith.mulf %153, %157 : vector<2x16x16xf32>
    %159 = arith.truncf %158 : vector<2x16x16xf32> to vector<2x16x16xbf16>
    %160 = vector.extract_strided_slice %29 {offsets = [0, 0, 96], sizes = [2, 16, 16], strides = [1, 1, 1]} : vector<2x16x128xbf16> to vector<2x16x16xbf16>
    "tpu.trace_start"() <{level = 10 : i32, message = "bqk,bkd->bqd"}> : () -> ()
    %cst_40 = arith.constant dense<0.000000e+00> : vector<2x16x16xf32>
    %161 = tpu.matmul %159, %160, %cst_40 {dimension_numbers = #tpu.dot_dimension_numbers<[2], [1], [1], [2], [0, 0, 0, 1, 1, 2], [0], [0]>} : vector<2x16x16xbf16>, vector<2x16x16xbf16>, vector<2x16x16xf32> -> vector<2x16x16xf32>
    "tpu.trace_stop"() : () -> ()
    %162 = arith.truncf %161 : vector<2x16x16xf32> to vector<2x16x16xbf16>
    %163 = vector.extract_strided_slice %23 {offsets = [0, 0, 112], sizes = [2, 16, 16], strides = [1, 1, 1]} : vector<2x16x128xbf16> to vector<2x16x16xbf16>
    %164 = vector.extract_strided_slice %26 {offsets = [0, 0, 112], sizes = [2, 16, 16], strides = [1, 1, 1]} : vector<2x16x128xbf16> to vector<2x16x16xbf16>
    "tpu.trace_start"() <{level = 10 : i32, message = "bqd,bkd->bqk"}> : () -> ()
    %cst_41 = arith.constant dense<0.000000e+00> : vector<2x16x16xf32>
    %165 = tpu.matmul %163, %164, %cst_41 {dimension_numbers = #tpu.dot_dimension_numbers<[2], [2], [1], [1], [0, 0, 0, 1, 1, 1], [0], [0]>} : vector<2x16x16xbf16>, vector<2x16x16xbf16>, vector<2x16x16xf32> -> vector<2x16x16xf32>
    "tpu.trace_stop"() : () -> ()
    %166 = vector.broadcast %7 : vector<2x1x16xf32> to vector<2x16x16xf32>
    %167 = arith.addf %165, %166 : vector<2x16x16xf32>
    %cst_42 = arith.constant dense<0xFF800000> : vector<2x16xf32>
    %168 = vector.multi_reduction <maximumf>, %167, %cst_42 [2] : vector<2x16x16xf32> to vector<2x16xf32>
    %169 = vector.shape_cast %168 : vector<2x16xf32> to vector<2x16x1xf32>
    %170 = vector.broadcast %169 : vector<2x16x1xf32> to vector<2x16x16xf32>
    %171 = arith.subf %167, %170 : vector<2x16x16xf32>
    %172 = math.exp %171 : vector<2x16x16xf32>
    %cst_43 = arith.constant dense<0.000000e+00> : vector<2x16xf32>
    %173 = vector.multi_reduction <add>, %172, %cst_43 [2] : vector<2x16x16xf32> to vector<2x16xf32>
    %174 = vector.shape_cast %173 : vector<2x16xf32> to vector<2x16x1xf32>
    %175 = tpu.reciprocal %174 {approx = true} : vector<2x16x1xf32> -> vector<2x16x1xf32>
    %176 = vector.broadcast %175 : vector<2x16x1xf32> to vector<2x16x16xf32>
    %177 = arith.mulf %172, %176 : vector<2x16x16xf32>
    %178 = arith.truncf %177 : vector<2x16x16xf32> to vector<2x16x16xbf16>
    %179 = vector.extract_strided_slice %29 {offsets = [0, 0, 112], sizes = [2, 16, 16], strides = [1, 1, 1]} : vector<2x16x128xbf16> to vector<2x16x16xbf16>
    "tpu.trace_start"() <{level = 10 : i32, message = "bqk,bkd->bqd"}> : () -> ()
    %cst_44 = arith.constant dense<0.000000e+00> : vector<2x16x16xf32>
    %180 = tpu.matmul %178, %179, %cst_44 {dimension_numbers = #tpu.dot_dimension_numbers<[2], [1], [1], [2], [0, 0, 0, 1, 1, 2], [0], [0]>} : vector<2x16x16xbf16>, vector<2x16x16xbf16>, vector<2x16x16xf32> -> vector<2x16x16xf32>
    "tpu.trace_stop"() : () -> ()
    %181 = arith.truncf %180 : vector<2x16x16xf32> to vector<2x16x16xbf16>
    %182 = tpu.concatenate %48, %67, %86, %105, %124, %143, %162, %181 in 2 : vector<2x16x16xbf16>, vector<2x16x16xbf16>, vector<2x16x16xbf16>, vector<2x16x16xbf16>, vector<2x16x16xbf16>, vector<2x16x16xbf16>, vector<2x16x16xbf16>, vector<2x16x16xbf16> -> vector<2x16x128xbf16>
    %183 = vector.shape_cast %182 : vector<2x16x128xbf16> to vector<32x128xbf16>
    %c0_45 = arith.constant 0 : index
    %c0_46 = arith.constant 0 : index
    %184 = vector.load %arg5[%c0_45, %c0_46] : memref<128x128xbf16, #tpu.memory_space<vmem>>, vector<128x128xbf16>
    %cst_47 = arith.constant dense<0.000000e+00> : vector<32x128xf32>
    %185 = tpu.matmul %183, %184, %cst_47 {dimension_numbers = #tpu.dot_dimension_numbers<[1], [0], [0], [1], [0, 0, 1, 1], [], []>} : vector<32x128xbf16>, vector<128x128xbf16>, vector<32x128xf32> -> vector<32x128xf32>
    %c0_48 = arith.constant 0 : index
    %c0_49 = arith.constant 0 : index
    %186 = vector.load %arg6[%c0_48, %c0_49] : memref<1x128xf32, #tpu.memory_space<vmem>>, vector<1x128xf32>
    %187 = vector.broadcast %186 : vector<1x128xf32> to vector<32x128xf32>
    %188 = arith.addf %185, %187 : vector<32x128xf32>
    %189 = arith.addf %12, %188 : vector<32x128xf32>
    %cst_50 = arith.constant dense<0.000000e+00> : vector<32xf32>
    %190 = vector.multi_reduction <add>, %189, %cst_50 [1] : vector<32x128xf32> to vector<32xf32>
    %191 = vector.shape_cast %190 : vector<32xf32> to vector<32x1xf32>
    %cst_51 = arith.constant 1.280000e+02 : f32
    %192 = vector.broadcast %cst_51 : f32 to vector<32x1xf32>
    %193 = arith.divf %191, %192 : vector<32x1xf32>
    %194 = vector.broadcast %193 : vector<32x1xf32> to vector<32x128xf32>
    %195 = arith.subf %189, %194 : vector<32x128xf32>
    %196 = arith.mulf %195, %195 : vector<32x128xf32>
    %cst_52 = arith.constant dense<0.000000e+00> : vector<32xf32>
    %197 = vector.multi_reduction <add>, %196, %cst_52 [1] : vector<32x128xf32> to vector<32xf32>
    %198 = vector.shape_cast %197 : vector<32xf32> to vector<32x1xf32>
    %cst_53 = arith.constant 1.280000e+02 : f32
    %199 = vector.broadcast %cst_53 : f32 to vector<32x1xf32>
    %200 = arith.divf %198, %199 : vector<32x1xf32>
    %cst_54 = arith.constant 9.99999974E-6 : f32
    %201 = vector.broadcast %cst_54 : f32 to vector<32x1xf32>
    %202 = arith.addf %200, %201 : vector<32x1xf32>
    %203 = math.rsqrt %202 : vector<32x1xf32>
    %204 = vector.broadcast %203 : vector<32x1xf32> to vector<32x128xf32>
    %205 = arith.mulf %195, %204 : vector<32x128xf32>
    %c0_55 = arith.constant 0 : index
    %c0_56 = arith.constant 0 : index
    %206 = vector.load %arg7[%c0_55, %c0_56] : memref<1x128xf32, #tpu.memory_space<vmem>>, vector<1x128xf32>
    %207 = vector.broadcast %206 : vector<1x128xf32> to vector<32x128xf32>
    %208 = arith.mulf %205, %207 : vector<32x128xf32>
    %c0_57 = arith.constant 0 : index
    %c0_58 = arith.constant 0 : index
    %209 = vector.load %arg8[%c0_57, %c0_58] : memref<1x128xf32, #tpu.memory_space<vmem>>, vector<1x128xf32>
    %210 = vector.broadcast %209 : vector<1x128xf32> to vector<32x128xf32>
    %211 = arith.addf %208, %210 : vector<32x128xf32>
    %212 = arith.truncf %211 : vector<32x128xf32> to vector<32x128xbf16>
    %c0_59 = arith.constant 0 : index
    %c0_60 = arith.constant 0 : index
    %213 = vector.load %arg9[%c0_59, %c0_60] : memref<128x1024xbf16, #tpu.memory_space<vmem>>, vector<128x1024xbf16>
    %cst_61 = arith.constant dense<0.000000e+00> : vector<32x1024xf32>
    %214 = tpu.matmul %212, %213, %cst_61 {dimension_numbers = #tpu.dot_dimension_numbers<[1], [0], [0], [1], [0, 0, 1, 1], [], []>} : vector<32x128xbf16>, vector<128x1024xbf16>, vector<32x1024xf32> -> vector<32x1024xf32>
    %c0_62 = arith.constant 0 : index
    %c0_63 = arith.constant 0 : index
    %215 = vector.load %arg10[%c0_62, %c0_63] : memref<1x1024xf32, #tpu.memory_space<vmem>>, vector<1x1024xf32>
    %216 = vector.broadcast %215 : vector<1x1024xf32> to vector<32x1024xf32>
    %217 = arith.addf %214, %216 : vector<32x1024xf32>
    %cst_64 = arith.constant 0.000000e+00 : f32
    %218 = vector.broadcast %cst_64 : f32 to vector<32x1024xf32>
    %219 = arith.maximumf %217, %218 : vector<32x1024xf32>
    %220 = arith.truncf %219 : vector<32x1024xf32> to vector<32x1024xbf16>
    %c0_65 = arith.constant 0 : index
    %c0_66 = arith.constant 0 : index
    %221 = vector.load %arg11[%c0_65, %c0_66] : memref<1024x128xbf16, #tpu.memory_space<vmem>>, vector<1024x128xbf16>
    %cst_67 = arith.constant dense<0.000000e+00> : vector<32x128xf32>
    %222 = tpu.matmul %220, %221, %cst_67 {dimension_numbers = #tpu.dot_dimension_numbers<[1], [0], [0], [1], [0, 0, 1, 1], [], []>} : vector<32x1024xbf16>, vector<1024x128xbf16>, vector<32x128xf32> -> vector<32x128xf32>
    %c0_68 = arith.constant 0 : index
    %c0_69 = arith.constant 0 : index
    %223 = vector.load %arg12[%c0_68, %c0_69] : memref<1x128xf32, #tpu.memory_space<vmem>>, vector<1x128xf32>
    %224 = vector.broadcast %223 : vector<1x128xf32> to vector<32x128xf32>
    %225 = arith.addf %222, %224 : vector<32x128xf32>
    %226 = arith.addf %211, %225 : vector<32x128xf32>
    %cst_70 = arith.constant dense<0.000000e+00> : vector<32xf32>
    %227 = vector.multi_reduction <add>, %226, %cst_70 [1] : vector<32x128xf32> to vector<32xf32>
    %228 = vector.shape_cast %227 : vector<32xf32> to vector<32x1xf32>
    %cst_71 = arith.constant 1.280000e+02 : f32
    %229 = vector.broadcast %cst_71 : f32 to vector<32x1xf32>
    %230 = arith.divf %228, %229 : vector<32x1xf32>
    %231 = vector.broadcast %230 : vector<32x1xf32> to vector<32x128xf32>
    %232 = arith.subf %226, %231 : vector<32x128xf32>
    %233 = arith.mulf %232, %232 : vector<32x128xf32>
    %cst_72 = arith.constant dense<0.000000e+00> : vector<32xf32>
    %234 = vector.multi_reduction <add>, %233, %cst_72 [1] : vector<32x128xf32> to vector<32xf32>
    %235 = vector.shape_cast %234 : vector<32xf32> to vector<32x1xf32>
    %cst_73 = arith.constant 1.280000e+02 : f32
    %236 = vector.broadcast %cst_73 : f32 to vector<32x1xf32>
    %237 = arith.divf %235, %236 : vector<32x1xf32>
    %cst_74 = arith.constant 9.99999974E-6 : f32
    %238 = vector.broadcast %cst_74 : f32 to vector<32x1xf32>
    %239 = arith.addf %237, %238 : vector<32x1xf32>
    %240 = math.rsqrt %239 : vector<32x1xf32>
    %241 = vector.broadcast %240 : vector<32x1xf32> to vector<32x128xf32>
    %242 = arith.mulf %232, %241 : vector<32x128xf32>
    %c0_75 = arith.constant 0 : index
    %c0_76 = arith.constant 0 : index
    %243 = vector.load %arg13[%c0_75, %c0_76] : memref<1x128xf32, #tpu.memory_space<vmem>>, vector<1x128xf32>
    %244 = vector.broadcast %243 : vector<1x128xf32> to vector<32x128xf32>
    %245 = arith.mulf %242, %244 : vector<32x128xf32>
    %c0_77 = arith.constant 0 : index
    %c0_78 = arith.constant 0 : index
    %246 = vector.load %arg14[%c0_77, %c0_78] : memref<1x128xf32, #tpu.memory_space<vmem>>, vector<1x128xf32>
    %247 = vector.broadcast %246 : vector<1x128xf32> to vector<32x128xf32>
    %248 = arith.addf %245, %247 : vector<32x128xf32>
    %249 = vector.shape_cast %248 : vector<32x128xf32> to vector<2x16x128xf32>
    %c0_79 = arith.constant 0 : index
    %c0_80 = arith.constant 0 : index
    %c0_81 = arith.constant 0 : index
    %250 = vector.load %arg15[%c0_79, %c0_80, %c0_81] : memref<2x16x128xf32, #tpu.memory_space<vmem>>, vector<2x16x128xf32>
    tpu.vector_store %arg15[%c0_79, %c0_80, %c0_81], %249 {strides = array<i32>} : memref<2x16x128xf32, #tpu.memory_space<vmem>>, vector<2x16x128xf32>,
    return
  }
  func.func @transform_0(%arg0: i32) -> (i32, i32, i32) {
    %c0_i32 = arith.constant 0 : i32
    %c0_i32_0 = arith.constant 0 : i32
    %c0_i32_1 = arith.constant 0 : i32
    return %arg0, %c0_i32, %c0_i32_0 : i32, i32, i32
  }
  func.func @transform_1(%arg0: i32) -> (i32, i32) {
    %c0_i32 = arith.constant 0 : i32
    %c0_i32_0 = arith.constant 0 : i32
    %c0_i32_1 = arith.constant 0 : i32
    return %c0_i32, %c0_i32_0 : i32, i32
  }
  func.func @transform_2(%arg0: i32) -> (i32, i32) {
    %c0_i32 = arith.constant 0 : i32
    %c0_i32_0 = arith.constant 0 : i32
    %c0_i32_1 = arith.constant 0 : i32
    return %c0_i32, %c0_i32_0 : i32, i32
  }
  func.func @transform_3(%arg0: i32) -> (i32, i32) {
    %c0_i32 = arith.constant 0 : i32
    %c0_i32_0 = arith.constant 0 : i32
    %c0_i32_1 = arith.constant 0 : i32
    return %c0_i32, %c0_i32_0 : i32, i32
  }
  func.func @transform_4(%arg0: i32) -> (i32, i32) {
    %c0_i32 = arith.constant 0 : i32
    %c0_i32_0 = arith.constant 0 : i32
    %c0_i32_1 = arith.constant 0 : i32
    return %c0_i32, %c0_i32_0 : i32, i32
  }
  func.func @transform_5(%arg0: i32) -> (i32, i32) {
    %c0_i32 = arith.constant 0 : i32
    %c0_i32_0 = arith.constant 0 : i32
    %c0_i32_1 = arith.constant 0 : i32
    return %c0_i32, %c0_i32_0 : i32, i32
  }
  func.func @transform_6(%arg0: i32) -> (i32, i32) {
    %c0_i32 = arith.constant 0 : i32
    %c0_i32_0 = arith.constant 0 : i32
    %c0_i32_1 = arith.constant 0 : i32
    return %c0_i32, %c0_i32_0 : i32, i32
  }
  func.func @transform_7(%arg0: i32) -> (i32, i32) {
    %c0_i32 = arith.constant 0 : i32
    %c0_i32_0 = arith.constant 0 : i32
    %c0_i32_1 = arith.constant 0 : i32
    return %c0_i32, %c0_i32_0 : i32, i32
  }
  func.func @transform_8(%arg0: i32) -> (i32, i32) {
    %c0_i32 = arith.constant 0 : i32
    %c0_i32_0 = arith.constant 0 : i32
    %c0_i32_1 = arith.constant 0 : i32
    return %c0_i32, %c0_i32_0 : i32, i32
  }
  func.func @transform_9(%arg0: i32) -> (i32, i32) {
    %c0_i32 = arith.constant 0 : i32
    %c0_i32_0 = arith.constant 0 : i32
    %c0_i32_1 = arith.constant 0 : i32
    return %c0_i32, %c0_i32_0 : i32, i32
  }
  func.func @transform_10(%arg0: i32) -> (i32, i32) {
    %c0_i32 = arith.constant 0 : i32
    %c0_i32_0 = arith.constant 0 : i32
    %c0_i32_1 = arith.constant 0 : i32
    return %c0_i32, %c0_i32_0 : i32, i32
  }
  func.func @transform_11(%arg0: i32) -> (i32, i32) {
    %c0_i32 = arith.constant 0 : i32
    %c0_i32_0 = arith.constant 0 : i32
    %c0_i32_1 = arith.constant 0 : i32
    return %c0_i32, %c0_i32_0 : i32, i32
  }
  func.func @transform_12(%arg0: i32) -> (i32, i32) {
    %c0_i32 = arith.constant 0 : i32
    %c0_i32_0 = arith.constant 0 : i32
    %c0_i32_1 = arith.constant 0 : i32
    return %c0_i32, %c0_i32_0 : i32, i32
  }
  func.func @transform_13(%arg0: i32) -> (i32, i32) {
    %c0_i32 = arith.constant 0 : i32
    %c0_i32_0 = arith.constant 0 : i32
    %c0_i32_1 = arith.constant 0 : i32
    return %c0_i32, %c0_i32_0 : i32, i32
  }
  func.func @transform_14(%arg0: i32) -> (i32, i32, i32) {
    %c0_i32 = arith.constant 0 : i32
    %c0_i32_0 = arith.constant 0 : i32
    %c0_i32_1 = arith.constant 0 : i32
    return %arg0, %c0_i32, %c0_i32_0 : i32, i32, i32
  }
}

</mosaic_0001>

<bundles_post_ra>
// kernel: peptide_encoder_forward.1
= control target key start
LH: loop header
LB: loop body
LE: loop exit
PB: predicated region body
PF: predicated region fallthrough
CT: control target
= control target key end

     0   :  { %v6251_v1 = vmov 0   ;;  %v4993_v29 = vmov 0.0   ;;  %vm4994_vm0 = vmmov 0   ;;  %v110_v30 = vlaneseq  ;;  %s4996_s22 = smov 96   ;;  %s4997_s23 = smov 80   ;;  %s6233_s2 = inlined_call_operand.vmem [shape: bf16[128,384], index: 2, kind: input, shape index: {}]   ;;  %s6234_s0 = inlined_call_operand.vmem [shape: f32[2,16,128], index: 0, kind: input, shape index: {}]   ;;  %s6235_s1 = inlined_call_operand.vmem [shape: f32[16,128], index: 1, kind: input, shape index: {}]   ;;  %s6236_s3 = inlined_call_operand.vmem [shape: f32[1,384], index: 3, kind: input, shape index: {}]   ;;  %s6237_s4 = inlined_call_operand.vmem [shape: bf16[128,128], index: 4, kind: input, shape index: {}]   ;;  %s6238_s5 = inlined_call_operand.vmem [shape: f32[1,128], index: 5, kind: input, shape index: {}]   ;;  %s6239_s8 = inlined_call_operand.vmem [shape: bf16[128,1024], index: 8, kind: input, shape index: {}]   ;;  %s6240_s10 = inlined_call_operand.vmem [shape: bf16[1024,128], index: 10, kind: input, shape index: {}]   ;;  %s6241_s6 = inlined_call_operand.vmem [shape: f32[1,128], index: 6, kind: input, shape index: {}]   ;;  %s6242_s7 = inlined_call_operand.vmem [shape: f32[1,128], index: 7, kind: input, shape index: {}]   ;;  %s6243_s9 = inlined_call_operand.vmem [shape: f32[1,1024], index: 9, kind: input, shape index: {}]   ;;  %s6244_s11 = inlined_call_operand.vmem [shape: f32[1,128], index: 11, kind: input, shape index: {}]   ;;  %s6245_s12 = inlined_call_operand.vmem [shape: f32[1,128], index: 12, kind: input, shape index: {}]   ;;  %s6246_s13 = inlined_call_operand.vmem [shape: f32[1,128], index: 13, kind: input, shape index: {}]   ;;  %s6247_s14 = inlined_call_operand.vmem [shape: f32[2,16,128], index: 14, kind: output, shape index: {}]  }
   0x1   :  { %v4744_v0 = vld [vmem:[%s6233_s2 + $0x4] ss:$12 sps:$4 sm:$0xff]   ;;  %285 = vmatprep.mubr.bf16.mxu0 %v6251_v1  ;;  %v4746_v2 = vld [vmem:[%s6233_s2] ss:$12 sps:$4 sm:$0xff]   ;;  %v4747_v3 = vld [vmem:[%s6233_s2 + $0x1c] ss:$12 sps:$4 sm:$0xff]  }
   0x2   :  { %253 = vmatprep.subr.bf16.mxu0 %v4744_v0  ;;  %v4749_v4 = vld [vmem:[%s6233_s2 + $0x18] ss:$12 sps:$4 sm:$0xff]   ;;  %v4750_v5 = vld [vmem:[%s6233_s2 + $0x34] ss:$12 sps:$4 sm:$0xff]   ;;  %v4752_v6 = vld [vmem:[%s6233_s2 + $0x30] ss:$12 sps:$4 sm:$0xff]  }
   0x3   :  { %254 = vmatpush1.bf16.msra.mxu0 %v4746_v2  ;;  %v4753_v7 = vld [vmem:[%s6233_s2 + $0x4c] ss:$12 sps:$4 sm:$0xff]   ;;  %v4755_v8 = vld [vmem:[%s6233_s2 + $0x48] ss:$12 sps:$4 sm:$0xff]   ;;  %v48_v9 = vld [vmem:[%s6234_s0] sm:$0xff]  ;;  %v5164_v31 = vshrl.u32 %v110_v30, 7 }
   0x4   :  { %255 = vmatprep.subr.bf16.mxu0 %v4747_v3  ;;  %v49_v10 = vld [vmem:[%s6234_s0 + $0x8] sm:$0xff]  ;;  %v68_v11 = vld [vmem:[%s6235_s1] sm:$0xff]  ;;  %52 = vadd.xlane.f32.xlu0 %v48_v9  ;;  %v50_v16 = vld [vmem:[%s6234_s0 + $0x10] sm:$0xff]  ;;  %vm393_vm1 = vcmask 130048   ;;  %vm378_vm6 = vcmask 130112   ;;  %s4998_s24 = smov 64  }
   0x5   :  { %v69_v12 = vld [vmem:[%s6235_s1 + $0x8] sm:$0xff]  ;;  %v4756_v13 = vld [vmem:[%s6233_s2 + $0x64] ss:$12 sps:$4 sm:$0xff]   ;;  %v5117_v14 = vadd.f32 %v68_v11, %v48_v9  ;;  %56 = vadd.xlane.f32.xlu1 %v50_v16  ;;  %v51_v20 = vld [vmem:[%s6234_s0 + $0x18] sm:$0xff]  ;;  %v5150_v26 = vadd.f32 %v68_v11, %v50_v16  ;;  %v6250_v32 = vsub.s32 0, %v5164_v31  ;;  %v6248_v34 = vsub.s32 1, %v5164_v31 }
   0x6   :  { %v5119_v15 = vadd.f32 %v69_v12, %v49_v10  ;;  %v4758_v17 = vld [vmem:[%s6233_s2 + $0x60] ss:$12 sps:$4 sm:$0xff]   ;;  %v4759_v18 = vld [vmem:[%s6233_s2 + $0x7c] ss:$12 sps:$4 sm:$0xff]   ;;  %v4761_v21 = vld [vmem:[%s6233_s2 + $0x78] ss:$12 sps:$4 sm:$0xff]   ;;  %v5152_v27 = vadd.f32 %v69_v12, %v51_v20 }
   0x7   :  { %256 = vmatpush1.bf16.msra.mxu0 %v4749_v4  ;;  %v4762_v22 = vld [vmem:[%s6233_s2 + $0x94] ss:$12 sps:$4 sm:$0xff]   ;;  %v4764_v23 = vld [vmem:[%s6233_s2 + $0x90] ss:$12 sps:$4 sm:$0xff]   ;;  %v4765_v24 = vld [vmem:[%s6233_s2 + $0xac] ss:$12 sps:$4 sm:$0xff]  }
   0x8   :  { %257 = vmatprep.subr.bf16.mxu0 %v4750_v5  ;;  %v74_v19 = vpack.c.bf16 %v5119_v15, %v5117_v14  ;;  %54 = vadd.xlane.f32.xlu0 %v49_v10  ;;  %v4767_v25 = vld [vmem:[%s6233_s2 + $0xa8] ss:$12 sps:$4 sm:$0xff]   ;;  %v5157_v28 = vpack.c.bf16 %v5152_v27, %v5150_v26  ;;  %v5170_v33 = vld [vmem:[%s6236_s3] sm:$0x7]  ;;  %v4770_v2 = vld [vmem:[%s6233_s2 + $0x38] ss:$12 sps:$4 sm:$0xff]  }
   0x9   :  { %58 = vadd.xlane.f32.xlu1 %v51_v20  ;;  %v113_v35 = vrot.slane %v5170_v33, %v6250_v32  ;;  %v117_v37 = vrot.slane %v5170_v33, %v6248_v34  ;;  %v4768_v63 = vld [vmem:[%s6233_s2 + $0x8] ss:$12 sps:$4 sm:$0xff]   ;;  %v4769_v0 = vld [vmem:[%s6233_s2 + $0x20] ss:$12 sps:$4 sm:$0xff]   ;;  %v4771_v3 = vld [vmem:[%s6233_s2 + $0x50] ss:$12 sps:$4 sm:$0xff]  }
   0xa   :  { %4518 = vmatprep.mubr.bf16.mxu1 %v74_v19  ;;  %4502 = vmatprep.subr.bf16.mxu1 %v4768_v63  ;;  %v4772_v4 = vld [vmem:[%s6233_s2 + $0x68] ss:$12 sps:$4 sm:$0xff]   ;;  %v4773_v5 = vld [vmem:[%s6233_s2 + $0x80] ss:$12 sps:$4 sm:$0xff]   ;;  %v368_v9 = vand.u32 127, %v110_v30  ;;  %s4999_s3 = smov 48  }
   0xb   :  { %258 = vmatpush1.bf16.msra.mxu0 %v4752_v6  ;;  %4503 = vmatpush3.bf16.msra.mxu1 %v4768_v63  ;;  %v4774_v6 = vld [vmem:[%s6233_s2 + $0x98] ss:$12 sps:$4 sm:$0xff]   ;;  %s5000_s25 = smov 32   ;;  %s5001_s26 = smov 16   ;;  %vm2404_vm7 = vcmask 261120   ;;  %vm2409_vm8 = vcmask 392192  }
   0xc   :  { %259 = vmatprep.subr.bf16.mxu0 %v4753_v7  ;;  %4504 = vmatprep.subr.bf16.mxu1 %v4769_v0  ;;  %v4775_v7 = vld [vmem:[%s6233_s2 + $0xb0] ss:$12 sps:$4 sm:$0xff]   ;;  %v373_v12 = vadd.s32 4294967288, %v368_v9  ;;  %s4995_s2 = smov 112   ;;  %vm2414_vm9 = vcmask 523264   ;;  %vm2419_vm10 = vcmask 654336  }
   0xd   :  { %vm2424_vm11 = vcmask 785408   ;;  %vm2429_vm12 = vcmask 916480  }
   0xe   :  { %v376_v16 = vsub.s32 %v373_v12, %v5164_v31 }
   0xf   :  { %260 = vmatpush1.bf16.msra.mxu0 %v4755_v8  ;;  %4505 = vmatpush3.bf16.msra.mxu1 %v4769_v0 }
  0x10   :  { %261 = vmatprep.subr.bf16.mxu0 %v4756_v13  ;;  %4506 = vmatprep.subr.bf16.mxu1 %v4770_v2  ;;  %v371_v13 = vsub.s32 %v368_v9, %v5164_v31 }
  0x13   :  { %262 = vmatpush1.bf16.msra.mxu0 %v4758_v17  ;;  %4507 = vmatpush3.bf16.msra.mxu1 %v4770_v2 }
  0x14   :  { %263 = vmatprep.subr.bf16.mxu0 %v4759_v18  ;;  %4508 = vmatprep.subr.bf16.mxu1 %v4771_v3 }
  0x17   :  { %264 = vmatpush1.bf16.msra.mxu0 %v4761_v21  ;;  %4509 = vmatpush3.bf16.msra.mxu1 %v4771_v3 }
  0x18   :  { %265 = vmatprep.subr.bf16.mxu0 %v4762_v22  ;;  %4510 = vmatprep.subr.bf16.mxu1 %v4772_v4 }
  0x1b   :  { %266 = vmatpush1.bf16.msra.mxu0 %v4764_v23  ;;  %4511 = vmatpush3.bf16.msra.mxu1 %v4772_v4 }
  0x1c   :  { %267 = vmatprep.subr.bf16.mxu0 %v4765_v24  ;;  %4512 = vmatprep.subr.bf16.mxu1 %v4773_v5 }
  0x1f   :  { %268 = vmatpush1.bf16.msra.mxu0 %v4767_v25  ;;  %4513 = vmatpush3.bf16.msra.mxu1 %v4773_v5 }
  0x20   :  { %4522 = vmatprep.subr.bf16.mxu0 %v4993_v29  ;;  %4514 = vmatprep.subr.bf16.mxu1 %v4774_v6 }
  0x22   :  { %286 = vmatmul.mubr.bf16.vlgmr.msra.gmra.mrb[0].mxu0 %v74_v19 }
  0x23   :  { %295 = vmatprep.mubr.bf16.mxu0 %v6251_v1  ;;  %4515 = vmatpush3.bf16.msra.mxu1 %v4774_v6 }
  0x24   :  { %4516 = vmatprep.subr.bf16.mxu1 %v4775_v7 }
  0x27   :  { %4517 = vmatpush3.bf16.msra.mxu1 %v4775_v7  ;;  %v6249_v7 = vsub.s32 2, %v5164_v31 }
  0x28   :  { %4534 = vmatprep.subr.bf16.mxu1 %v4993_v29 }
  0x2a   :  { %296 = vmatmul.mubr.bf16.gmra.mrb[4].mxu0 %v5157_v28  ;;  %4519 = vmatmul.mubr.bf16.vlgmr.msra.gmra.mrb[0].mxu1 %v5157_v28 }
  0x2b   :  { %4524 = vmatprep.mubr.msk.bf16.mxu0 %vm4994_vm0, %v4993_v29  ;;  %4536 = vmatprep.mubr.msk.bf16.mxu1 %vm4994_vm0, %v4993_v29 }
  0x91   :  { %v53_v8 = vpop.xlane.xlu0 %52 }
  0x92   :  { %v57_v11 = vpop.xlane.xlu1 %56  ;;  %vm60_vm2 = vcmp.eq.f32.partialorder %v53_v8, 0.0 }
  0x93   :  { %v64_v17 = vsel %vm60_vm2, -1e+09, %v4993_v29  ;;  %vm62_vm4 = vcmp.eq.f32.partialorder %v57_v11, 0.0 }
  0x94   :  { %v372_v20 = vrot.slane %v64_v17, %v371_v13  ;;  %v66_v22 = vsel %vm62_vm4, -1e+09, %v4993_v29 }
  0x95   :  { %v55_v10 = vpop.xlane.xlu0 %54 }
  0x96   :  { %vm61_vm3 = vcmp.eq.f32.partialorder %v55_v10, 0.0  ;;  %v59_v19 = vpop.xlane.xlu1 %58  ;;  %v121_v10 = vrot.slane %v5170_v33, %v6249_v7 }
  0x97   :  { %v65_v18 = vsel %vm61_vm3, -1e+09, %v4993_v29  ;;  %vm63_vm5 = vcmp.eq.f32.partialorder %v59_v19, 0.0 }
  0x98   :  { %v377_v21 = vrot.slane %v65_v18, %v376_v16  ;;  %v67_v23 = vsel %vm63_vm5, -1e+09, %v4993_v29 }
  0x9a   :  { %v5236_v24 = vsel %vm378_vm6, %v377_v21, %v372_v20 }
  0xf5   :  { %v287_v36 = vpop.f32.mrb[0].mxu0 }
  0xf6   :  { %v288_v38 = vadd.f32 %v287_v36, %v113_v35  ;;  %v289_v39 = vpop.f32.mrb[1].mxu0 }
  0xf7   :  { %v291_v40 = vpop.f32.mrb[2].mxu0  ;;  %v290_v43 = vadd.f32 %v289_v39, %v117_v37 }
  0xf8   :  { %v292_v41 = vadd.f32 %v291_v40, %v113_v35  ;;  %v293_v42 = vpop.f32.mrb[3].mxu0  ;;  %v355_v45 = vmul.f32 0.25, %v288_v38 }
  0xf9   :  { %v294_v44 = vadd.f32 %v293_v42, %v117_v37 }
  0xfa   :  { %v356_v46 = vmul.f32 0.25, %v292_v41 }
  0xfb   :  { %v5179_v47 = vpack.c.bf16 %v294_v44, %v290_v43 }
  0xfc   :  { %v5181_v48 = vpack.c.bf16 %v356_v46, %v355_v45 }
  0xfd   :  { %v297_v49 = vpop.f32.mrb[4].mxu0  ;;  %v398_v50 = vsel %vm393_vm1, %v5179_v47, 0  ;;  %v4520_v8 = vpop.f32.mrb[0].mxu1 }
  0xfe   :  { %v298_v51 = vadd.f32 %v297_v49, %v113_v35  ;;  %v299_v52 = vpop.f32.mrb[5].mxu0  ;;  %4523 = vmatpush3.bf16.xpose.msra.mxu0 %v398_v50  ;;  %v340_v9 = vpop.f32.mrb[1].mxu1  ;;  %v349_v18 = vadd.f32 %v4520_v8, %v121_v10 }
  0xff   :  { %v300_v53 = vadd.f32 %v299_v52, %v117_v37  ;;  %v301_v54 = vpop.f32.mrb[6].mxu0  ;;  %4528 = vmatprep.subr.bf16.mxu0 %v4993_v29  ;;  %v4521_v11 = vpop.f32.mrb[2].mxu1 }
 0x100   :  { %v357_v55 = vmul.f32 0.25, %v298_v51  ;;  %v302_v56 = vadd.f32 %v301_v54, %v113_v35  ;;  %v303_v57 = vpop.f32.mrb[7].mxu0  ;;  %v446_v35 = vrot.slane %v66_v22, %v371_v13  ;;  %v343_v12 = vpop.f32.mrb[3].mxu1  ;;  %v341_v13 = vadd.f32 %v340_v9, %v121_v10 }
 0x101   :  { %v304_v58 = vadd.f32 %v303_v57, %v117_v37  ;;  %v450_v37 = vrot.slane %v67_v23, %v376_v16  ;;  %v344_v16 = vadd.f32 %v343_v12, %v121_v10  ;;  %v352_v19 = vadd.f32 %v4521_v11, %v121_v10 }
 0x102   :  { %v358_v59 = vmul.f32 0.25, %v302_v56 }
 0x103   :  { %v5186_v60 = vpack.c.bf16 %v304_v58, %v300_v53  ;;  %v5242_v42 = vsel %vm378_vm6, %v450_v37, %v446_v35  ;;  %v5257_v17 = vpack.c.bf16 %v344_v16, %v341_v13  ;;  %v5261_v20 = vpack.c.bf16 %v352_v19, %v349_v18 }
 0x104   :  { %v5188_v61 = vpack.c.bf16 %v358_v59, %v357_v55 }
 0x105   :  { %4525 = vmatmul.mubr.msk.bf16.vlgmr.msra.gmra.mrb[8].mxu0 %vm393_vm1, %v5181_v48  ;;  %v463_v62 = vsel %vm393_vm1, %v5186_v60, 0  ;;  %4535 = vmatpush3.bf16.msra.mxu1 %v5257_v17 }
 0x106   :  { %4529 = vmatpush3.bf16.xpose.msra.mxu0 %v463_v62  ;;  %4530 = vmatprep.mubr.msk.bf16.mxu0 %vm4994_vm0, %v4993_v29 }
 0x107   :  { %4540 = vmatprep.subr.bf16.mxu0 %v4993_v29  ;;  %4546 = vmatprep.subr.bf16.mxu1 %v4993_v29 }
 0x10d   :  { %4531 = vmatmul.mubr.msk.bf16.vlgmr.msra.gmra.mrb[12].mxu0 %vm393_vm1, %v5188_v61 }
 0x10e   :  { %4542 = vmatprep.mubr.msk.bf16.mxu0 %vm4994_vm0, %v4993_v29  ;;  %4541 = vmatpush3.bf16.msra.mxu0 %v5261_v20 }
 0x10f   :  { %4552 = vmatprep.subr.bf16.mxu0 %v4993_v29 }
 0x1d8   :  { %v434_v25 = vpop.f32.mrb[8].mxu0 }
 0x1d9   :  { %v435_v28 = vadd.f32 %v434_v25, %v5236_v24  ;;  %v4526_v30 = vpop.f32.mrb[9].mxu0 }
 0x1da   :  { %v437_v36 = vpop.f32.mrb[10].mxu0 }
 0x1db   :  { %v438_v38 = vadd.f32 %v437_v36, %v5236_v24  ;;  %v4527_v39 = vpop.f32.mrb[11].mxu0  ;;  %v506_v40 = vsel %vm393_vm1, %v435_v28, -inf }
 0x1dc   :  { %507 = vmax.xlane.f32.xlu0 %v506_v40 }
 0x1dd   :  { %v509_v41 = vsel %vm393_vm1, %v438_v38, -inf }
 0x1de   :  { %510 = vmax.xlane.f32.xlu1 %v509_v41 }
 0x1e0   :  { %v499_v43 = vpop.f32.mrb[12].mxu0 }
 0x1e1   :  { %v500_v44 = vadd.f32 %v499_v43, %v5242_v42  ;;  %v4532_v45 = vpop.f32.mrb[13].mxu0 }
 0x1e2   :  { %v502_v46 = vpop.f32.mrb[14].mxu0 }
 0x1e3   :  { %v503_v49 = vadd.f32 %v502_v46, %v5242_v42  ;;  %v512_v50 = vsel %vm393_vm1, %v500_v44, -inf  ;;  %v4533_v51 = vpop.f32.mrb[15].mxu0 }
 0x1e4   :  { %513 = vmax.xlane.f32.xlu0 %v512_v50 }
 0x1e5   :  { %v515_v52 = vsel %vm393_vm1, %v503_v49, -inf }
 0x1e6   :  { %516 = vmax.xlane.f32.xlu1 %v515_v52 }
 0x269   :  { %v508_v53 = vpop.xlane.xlu0 %507 }
 0x26a   :  { %v518_v54 = vsub.f32 %v435_v28, %v508_v53 }
 0x26b   :  { %v511_v55 = vpop.xlane.xlu1 %510 }
 0x26c   :  { %v522_v56 = vmul.f32 1.442695, %v518_v54  ;;  %v519_v57 = vsub.f32 %v438_v38, %v511_v55 }
 0x26e   :  { %4848 = vpow2.f32 %v522_v56  ;;  %v524_v58 = vmul.f32 1.442695, %v519_v57 }
 0x270   :  { %4850 = vpow2.f32 %v524_v58 }
 0x271   :  { %v514_v59 = vpop.xlane.xlu0 %513 }
 0x272   :  { %v520_v62 = vsub.f32 %v500_v44, %v514_v59 }
 0x273   :  { %v517_v21 = vpop.xlane.xlu1 %516 }
 0x274   :  { %v526_v63 = vmul.f32 1.442695, %v520_v62  ;;  %v521_v33 = vsub.f32 %v503_v49, %v517_v21 }
 0x276   :  { %4852 = vpow2.f32 %v526_v63  ;;  %v528_v22 = vmul.f32 1.442695, %v521_v33 }
 0x278   :  { %v4849_v0 = vpop.eup %4848  ;;  %4854 = vpow2.f32 %v528_v22 }
 0x279   :  { %v530_v2 = vsel %vm393_vm1, %v4849_v0, 0.0 }
 0x27a   :  { %v4851_v3 = vpop.eup %4850  ;;  %531 = vadd.xlane.f32.xlu0 %v530_v2 }
 0x27b   :  { %v533_v4 = vsel %vm393_vm1, %v4851_v3, 0.0 }
 0x27c   :  { %534 = vadd.xlane.f32.xlu1 %v533_v4 }
 0x280   :  { %v4853_v5 = vpop.eup %4852 }
 0x281   :  { %v536_v6 = vsel %vm393_vm1, %v4853_v5, 0.0 }
 0x282   :  { %537 = vadd.xlane.f32.xlu0 %v536_v6  ;;  %v4855_v23 = vpop.eup %4854 }
 0x283   :  { %v539_v25 = vsel %vm393_vm1, %v4855_v23, 0.0 }
 0x28d   :  { %699 = vrot.lane.b32.xlu1 %v5186_v60, %s4995_s2 }
 0x298   :  { %646 = vrot.lane.b32.xlu0 %v5179_v47, %s4995_s2 }
 0x2b1   :  { %540 = vadd.xlane.f32.xlu1 %v539_v25 }
 0x2c2   :  { %643 = vrot.lane.b32.xlu1 %v5181_v48, %s4995_s2 }
 0x2c6   :  { %696 = vrot.lane.b32.xlu1 %v5188_v61, %s4995_s2 }
 0x307   :  { %v532_v28 = vpop.xlane.xlu0 %531 }
 0x308   :  { %4856 = vrcp.f32 %v532_v28 }
 0x309   :  { %v535_v30 = vpop.xlane.xlu1 %534 }
 0x30a   :  { %4858 = vrcp.f32 %v535_v30 }
 0x30d   :  { %v700_v44 = vpop.permute.xlu1 %699 }
 0x30e   :  { %v705_v54 = vsel %vm393_vm1, %v700_v44, 0 }
 0x30f   :  { %v538_v35 = vpop.xlane.xlu0 %537 }
 0x310   :  { %4860 = vrcp.f32 %v538_v35 }
 0x312   :  { %v4857_v36 = vpop.eup %4856 }
 0x313   :  { %v546_v38 = vmul.f32 %v4857_v36, %v4849_v0  ;;  %v647_v40 = vpop.permute.xlu0 %646 }
 0x314   :  { %v4859_v37 = vpop.eup %4858  ;;  %v652_v43 = vsel %vm393_vm1, %v647_v40, 0 }
 0x315   :  { %v547_v39 = vmul.f32 %v4859_v37, %v4851_v3 }
 0x317   :  { %v550_v41 = vpack.c.bf16 %v547_v39, %v546_v38 }
 0x319   :  { %4537 = vmatmul.mubr.msk.bf16.vlgmr.msra.gmra.mrb[4].mxu1 %vm393_vm1, %v550_v41 }
 0x31a   :  { %4547 = vmatpush3.bf16.xpose.msra.mxu1 %v652_v43  ;;  %4548 = vmatprep.mubr.msk.bf16.mxu1 %vm4994_vm0, %v4993_v29  ;;  %v4861_v49 = vpop.eup %4860 }
 0x31b   :  { %4558 = vmatprep.subr.bf16.mxu1 %v4993_v29  ;;  %v548_v51 = vmul.f32 %v4861_v49, %v4853_v5 }
 0x33e   :  { %v541_v45 = vpop.xlane.xlu1 %540 }
 0x33f   :  { %4862 = vrcp.f32 %v541_v45 }
 0x342   :  { %v644_v46 = vpop.permute.xlu1 %643 }
 0x343   :  { %4549 = vmatmul.mubr.msk.bf16.vlgmr.msra.gmra.mrb[8].mxu1 %vm393_vm1, %v644_v46 }
 0x344   :  { %4560 = vmatprep.mubr.msk.bf16.mxu1 %vm4994_vm0, %v4993_v29 }
 0x346   :  { %v697_v55 = vpop.permute.xlu1 %696 }
 0x349   :  { %v4863_v50 = vpop.eup %4862 }
 0x34a   :  { %v549_v52 = vmul.f32 %v4863_v50, %v4855_v23 }
 0x34c   :  { %v551_v53 = vpack.c.bf16 %v549_v52, %v548_v51 }
 0x34e   :  { %4543 = vmatmul.mubr.msk.bf16.vlgmr.msra.gmra.mrb[16].mxu0 %vm393_vm1, %v551_v53 }
 0x34f   :  { %4553 = vmatpush3.bf16.xpose.msra.mxu0 %v705_v54  ;;  %4554 = vmatprep.mubr.msk.bf16.mxu0 %vm4994_vm0, %v4993_v29 }
 0x350   :  { %4564 = vmatprep.subr.bf16.mxu0 %v4993_v29 }
 0x356   :  { %4555 = vmatmul.mubr.msk.bf16.vlgmr.msra.gmra.mrb[20].mxu0 %vm393_vm1, %v697_v55 }
 0x357   :  { %4566 = vmatprep.mubr.msk.bf16.mxu0 %vm4994_vm0, %v4993_v29 }
 0x3ec   :  { %v5288_v56 = vpop.f32.mrb[4].mxu1 }
 0x3ed   :  { %v4538_v57 = vpop.f32.mrb[5].mxu1 }
 0x3ee   :  { %v5290_v58 = vpop.f32.mrb[6].mxu1 }
 0x3ef   :  { %v4539_v62 = vpop.f32.mrb[7].mxu1 }
 0x416   :  { %v688_v63 = vpop.f32.mrb[8].mxu1 }
 0x417   :  { %v689_v0 = vadd.f32 %v688_v63, %v5236_v24  ;;  %v4550_v2 = vpop.f32.mrb[9].mxu1 }
 0x418   :  { %v691_v3 = vpop.f32.mrb[10].mxu1 }
 0x419   :  { %v692_v4 = vadd.f32 %v691_v3, %v5236_v24  ;;  %v4551_v5 = vpop.f32.mrb[11].mxu1  ;;  %v748_v6 = vsel %vm393_vm1, %v689_v0, -inf }
 0x41a   :  { %749 = vmax.xlane.f32.xlu0 %v748_v6 }
 0x41b   :  { %v751_v8 = vsel %vm393_vm1, %v692_v4, -inf }
 0x41c   :  { %752 = vmax.xlane.f32.xlu1 %v751_v8 }
 0x421   :  { %v5298_v9 = vpop.f32.mrb[16].mxu0 }
 0x422   :  { %v4544_v10 = vpop.f32.mrb[17].mxu0 }
 0x423   :  { %v5300_v11 = vpop.f32.mrb[18].mxu0 }
 0x424   :  { %v4545_v13 = vpop.f32.mrb[19].mxu0 }
 0x429   :  { %v741_v16 = vpop.f32.mrb[20].mxu0 }
 0x42a   :  { %v742_v18 = vadd.f32 %v741_v16, %v5242_v42  ;;  %v4556_v19 = vpop.f32.mrb[21].mxu0 }
 0x42b   :  { %v744_v21 = vpop.f32.mrb[22].mxu0 }
 0x42c   :  { %v745_v33 = vadd.f32 %v744_v21, %v5242_v42  ;;  %v4557_v22 = vpop.f32.mrb[23].mxu0  ;;  %v754_v23 = vsel %vm393_vm1, %v742_v18, -inf }
 0x42d   :  { %755 = vmax.xlane.f32.xlu0 %v754_v23 }
 0x42e   :  { %v757_v25 = vsel %vm393_vm1, %v745_v33, -inf }
 0x431   :  { %758 = vmax.xlane.f32.xlu0 %v757_v25 }
 0x4a7   :  { %v750_v28 = vpop.xlane.xlu0 %749 }
 0x4a8   :  { %v760_v30 = vsub.f32 %v689_v0, %v750_v28 }
 0x4a9   :  { %v753_v35 = vpop.xlane.xlu1 %752 }
 0x4aa   :  { %v764_v36 = vmul.f32 1.442695, %v760_v30  ;;  %v761_v37 = vsub.f32 %v692_v4, %v753_v35 }
 0x4ac   :  { %4864 = vpow2.f32 %v764_v36  ;;  %v766_v38 = vmul.f32 1.442695, %v761_v37 }
 0x4ae   :  { %4866 = vpow2.f32 %v766_v38 }
 0x4b6   :  { %v4865_v39 = vpop.eup %4864 }
 0x4b7   :  { %v772_v40 = vsel %vm393_vm1, %v4865_v39, 0.0 }
 0x4b8   :  { %v4867_v41 = vpop.eup %4866  ;;  %773 = vadd.xlane.f32.xlu0 %v772_v40 }
 0x4b9   :  { %v775_v43 = vsel %vm393_vm1, %v4867_v41, 0.0 }
 0x4ba   :  { %776 = vadd.xlane.f32.xlu1 %v775_v43  ;;  %v756_v44 = vpop.xlane.xlu0 %755 }
 0x4bb   :  { %v762_v45 = vsub.f32 %v742_v18, %v756_v44 }
 0x4bd   :  { %v768_v46 = vmul.f32 1.442695, %v762_v45 }
 0x4be   :  { %v759_v51 = vpop.xlane.xlu0 %758 }
 0x4bf   :  { %4868 = vpow2.f32 %v768_v46  ;;  %v763_v52 = vsub.f32 %v745_v33, %v759_v51 }
 0x4c1   :  { %v770_v53 = vmul.f32 1.442695, %v763_v52 }
 0x4c3   :  { %4870 = vpow2.f32 %v770_v53 }
 0x4c9   :  { %v4869_v49 = vpop.eup %4868 }
 0x4ca   :  { %v778_v50 = vsel %vm393_vm1, %v4869_v49, 0.0 }
 0x4cb   :  { %843 = vrot.lane.b32.xlu1 %v5261_v20, %s4995_s2  ;;  %779 = vadd.xlane.f32.xlu0 %v778_v50 }
 0x4cd   :  { %v4871_v54 = vpop.eup %4870 }
 0x4ce   :  { %v781_v55 = vsel %vm393_vm1, %v4871_v54, 0.0 }
 0x4cf   :  { %894 = vrot.lane.b32.xlu1 %v5179_v47, %s4996_s22 }
 0x4e1   :  { %795 = vrot.lane.b32.xlu0 %v5257_v17, %s4995_s2 }
 0x4e5   :  { %892 = vrot.lane.b32.xlu0 %v5181_v48, %s4996_s22 }
 0x4f3   :  { %782 = vadd.xlane.f32.xlu1 %v781_v55 }
 0x504   :  { %945 = vrot.lane.b32.xlu1 %v5186_v60, %s4996_s22 }
 0x508   :  { %943 = vrot.lane.b32.xlu1 %v5188_v61, %s4996_s22 }
 0x545   :  { %v774_v63 = vpop.xlane.xlu0 %773 }
 0x547   :  { %v777_v57 = vpop.xlane.xlu1 %776 }
 0x548   :  { %4872 = vrcp.f32 %v777_v57 }
 0x549   :  { %4874 = vrcp.f32 %v774_v63 }
 0x54b   :  { %v844_v62 = vpop.permute.xlu1 %843 }
 0x54c   :  { %4565 = vmatpush3.bf16.msra.mxu0 %v844_v62 }
 0x54d   :  { %4576 = vmatprep.subr.bf16.mxu0 %v4993_v29 }
 0x54f   :  { %v895_v10 = vpop.permute.xlu1 %894 }
 0x550   :  { %v900_v13 = vsel %vm393_vm1, %v895_v10, 0 }
 0x552   :  { %v4873_v0 = vpop.eup %4872 }
 0x553   :  { %v4875_v3 = vpop.eup %4874  ;;  %v789_v4 = vmul.f32 %v4873_v0, %v4867_v41 }
 0x554   :  { %v788_v5 = vmul.f32 %v4875_v3, %v4865_v39 }
 0x556   :  { %v792_v8 = vpack.c.bf16 %v789_v4, %v788_v5 }
 0x558   :  { %v780_v2 = vpop.xlane.xlu0 %779 }
 0x559   :  { %4876 = vrcp.f32 %v780_v2 }
 0x55c   :  { %v796_v6 = vpop.permute.xlu0 %795 }
 0x55d   :  { %4559 = vmatpush3.bf16.msra.mxu1 %v796_v6 }
 0x55e   :  { %4570 = vmatprep.subr.bf16.mxu1 %v4993_v29 }
 0x560   :  { %4561 = vmatmul.mubr.msk.bf16.vlgmr.msra.gmra.mrb[12].mxu1 %vm393_vm1, %v792_v8  ;;  %v893_v16 = vpop.permute.xlu0 %892 }
 0x561   :  { %4572 = vmatprep.mubr.msk.bf16.mxu1 %vm4994_vm0, %v4993_v29 }
 0x563   :  { %v4877_v19 = vpop.eup %4876 }
 0x564   :  { %v790_v33 = vmul.f32 %v4877_v19, %v4869_v49 }
 0x566   :  { %4571 = vmatpush3.bf16.xpose.msra.mxu1 %v900_v13 }
 0x567   :  { %4582 = vmatprep.subr.bf16.mxu1 %v4993_v29 }
 0x56d   :  { %4573 = vmatmul.mubr.msk.bf16.vlgmr.msra.gmra.mrb[16].mxu1 %vm393_vm1, %v893_v16 }
 0x56e   :  { %4584 = vmatprep.mubr.msk.bf16.mxu1 %vm4994_vm0, %v4993_v29 }
 0x580   :  { %v783_v18 = vpop.xlane.xlu1 %782 }
 0x581   :  { %4878 = vrcp.f32 %v783_v18 }
 0x584   :  { %v946_v23 = vpop.permute.xlu1 %945 }
 0x585   :  { %v951_v28 = vsel %vm393_vm1, %v946_v23, 0 }
 0x588   :  { %v944_v30 = vpop.permute.xlu1 %943 }
 0x58b   :  { %v4879_v21 = vpop.eup %4878 }
 0x58c   :  { %v791_v22 = vmul.f32 %v4879_v21, %v4871_v54 }
 0x58e   :  { %v793_v25 = vpack.c.bf16 %v791_v22, %v790_v33 }
 0x590   :  { %4567 = vmatmul.mubr.msk.bf16.vlgmr.msra.gmra.mrb[24].mxu0 %vm393_vm1, %v793_v25 }
 0x591   :  { %4577 = vmatpush3.bf16.xpose.msra.mxu0 %v951_v28  ;;  %4578 = vmatprep.mubr.msk.bf16.mxu0 %vm4994_vm0, %v4993_v29 }
 0x592   :  { %4588 = vmatprep.subr.bf16.mxu0 %v4993_v29 }
 0x598   :  { %4579 = vmatmul.mubr.msk.bf16.vlgmr.msra.gmra.mrb[28].mxu0 %vm393_vm1, %v944_v30 }
 0x599   :  { %4590 = vmatprep.mubr.msk.bf16.mxu0 %vm4994_vm0, %v4993_v29 }
 0x633   :  { %v5342_v35 = vpop.f32.mrb[12].mxu1 }
 0x634   :  { %v4562_v36 = vpop.f32.mrb[13].mxu1 }
 0x635   :  { %v5344_v37 = vpop.f32.mrb[14].mxu1 }
 0x636   :  { %v890_v38 = vpack.c.bf16 %v5344_v37, %v5342_v35  ;;  %v4563_v39 = vpop.f32.mrb[15].mxu1 }
 0x640   :  { %v936_v40 = vpop.f32.mrb[16].mxu1 }
 0x641   :  { %v937_v41 = vadd.f32 %v936_v40, %v5236_v24  ;;  %v4574_v43 = vpop.f32.mrb[17].mxu1 }
 0x642   :  { %v939_v44 = vpop.f32.mrb[18].mxu1 }
 0x643   :  { %v940_v45 = vadd.f32 %v939_v44, %v5236_v24  ;;  %v4575_v46 = vpop.f32.mrb[19].mxu1  ;;  %v994_v49 = vsel %vm393_vm1, %v937_v41, -inf }
 0x644   :  { %995 = vmax.xlane.f32.xlu0 %v994_v49 }
 0x645   :  { %v997_v50 = vsel %vm393_vm1, %v940_v45, -inf }
 0x646   :  { %998 = vmax.xlane.f32.xlu1 %v997_v50 }
 0x663   :  { %v5352_v51 = vpop.f32.mrb[24].mxu0 }
 0x664   :  { %v4568_v52 = vpop.f32.mrb[25].mxu0 }
 0x665   :  { %v5354_v53 = vpop.f32.mrb[26].mxu0 }
 0x666   :  { %v891_v54 = vpack.c.bf16 %v5354_v53, %v5352_v51  ;;  %v4569_v55 = vpop.f32.mrb[27].mxu0 }
 0x66b   :  { %v987_v57 = vpop.f32.mrb[28].mxu0 }
 0x66c   :  { %v988_v62 = vadd.f32 %v987_v57, %v5242_v42  ;;  %v4580_v63 = vpop.f32.mrb[29].mxu0 }
 0x66d   :  { %v990_v0 = vpop.f32.mrb[30].mxu0 }
 0x66e   :  { %v991_v2 = vadd.f32 %v990_v0, %v5242_v42  ;;  %v4581_v3 = vpop.f32.mrb[31].mxu0  ;;  %v1000_v4 = vsel %vm393_vm1, %v988_v62, -inf }
 0x66f   :  { %1001 = vmax.xlane.f32.xlu0 %v1000_v4 }
 0x670   :  { %v1003_v5 = vsel %vm393_vm1, %v991_v2, -inf }
 0x673   :  { %1004 = vmax.xlane.f32.xlu0 %v1003_v5 }
 0x6d1   :  { %v996_v6 = vpop.xlane.xlu0 %995 }
 0x6d2   :  { %v1006_v8 = vsub.f32 %v937_v41, %v996_v6 }
 0x6d3   :  { %v999_v10 = vpop.xlane.xlu1 %998 }
 0x6d4   :  { %v1010_v13 = vmul.f32 1.442695, %v1006_v8  ;;  %v1007_v16 = vsub.f32 %v940_v45, %v999_v10 }
 0x6d6   :  { %4880 = vpow2.f32 %v1010_v13  ;;  %v1012_v18 = vmul.f32 1.442695, %v1007_v16 }
 0x6d8   :  { %4882 = vpow2.f32 %v1012_v18 }
 0x6e0   :  { %v4881_v19 = vpop.eup %4880 }
 0x6e1   :  { %v1018_v21 = vsel %vm393_vm1, %v4881_v19, 0.0 }
 0x6e2   :  { %v4883_v33 = vpop.eup %4882  ;;  %1019 = vadd.xlane.f32.xlu0 %v1018_v21 }
 0x6e3   :  { %v1021_v22 = vsel %vm393_vm1, %v4883_v33, 0.0 }
 0x6e4   :  { %1022 = vadd.xlane.f32.xlu1 %v1021_v22 }
 0x6f5   :  { %1087 = vrot.lane.b32.xlu1 %v5261_v20, %s4996_s22 }
 0x6f9   :  { %1138 = vrot.lane.b32.xlu1 %v5179_v47, %s4997_s23 }
 0x6fc   :  { %v1002_v23 = vpop.xlane.xlu0 %1001 }
 0x6fd   :  { %v1008_v25 = vsub.f32 %v988_v62, %v1002_v23 }
 0x6ff   :  { %v1014_v28 = vmul.f32 1.442695, %v1008_v25 }
 0x700   :  { %v1005_v30 = vpop.xlane.xlu0 %1004 }
 0x701   :  { %4884 = vpow2.f32 %v1014_v28  ;;  %v1009_v36 = vsub.f32 %v991_v2, %v1005_v30 }
 0x703   :  { %v1016_v40 = vmul.f32 1.442695, %v1009_v36 }
 0x705   :  { %4886 = vpow2.f32 %v1016_v40 }
 0x70b   :  { %v4885_v39 = vpop.eup %4884 }
 0x70c   :  { %v1024_v41 = vsel %vm393_vm1, %v4885_v39, 0.0 }
 0x70d   :  { %1025 = vadd.xlane.f32.xlu0 %v1024_v41 }
 0x70f   :  { %v4887_v43 = vpop.eup %4886 }
 0x710   :  { %v1027_v44 = vsel %vm393_vm1, %v4887_v43, 0.0 }
 0x71d   :  { %1028 = vadd.xlane.f32.xlu1 %v1027_v44 }
 0x723   :  { %1040 = vrot.lane.b32.xlu0 %v5257_v17, %s4996_s22 }
 0x727   :  { %1136 = vrot.lane.b32.xlu0 %v5181_v48, %s4997_s23 }
 0x72e   :  { %1189 = vrot.lane.b32.xlu1 %v5186_v60, %s4997_s23 }
 0x732   :  { %1187 = vrot.lane.b32.xlu1 %v5188_v61, %s4997_s23 }
 0x76f   :  { %v1020_v49 = vpop.xlane.xlu0 %1019 }
 0x771   :  { %v1023_v45 = vpop.xlane.xlu1 %1022 }
 0x772   :  { %4888 = vrcp.f32 %v1023_v45 }
 0x773   :  { %4890 = vrcp.f32 %v1020_v49 }
 0x775   :  { %v1088_v46 = vpop.permute.xlu1 %1087 }
 0x776   :  { %4589 = vmatpush3.bf16.msra.mxu0 %v1088_v46 }
 0x777   :  { %4600 = vmatprep.subr.bf16.mxu0 %v4993_v29 }
 0x779   :  { %v1139_v2 = vpop.permute.xlu1 %1138 }
 0x77a   :  { %v1144_v3 = vsel %vm393_vm1, %v1139_v2, 0 }
 0x77c   :  { %v4889_v50 = vpop.eup %4888 }
 0x77d   :  { %v4891_v55 = vpop.eup %4890  ;;  %v1035_v57 = vmul.f32 %v4889_v50, %v4883_v33 }
 0x77e   :  { %v1034_v62 = vmul.f32 %v4891_v55, %v4881_v19 }
 0x780   :  { %v1038_v0 = vpack.c.bf16 %v1035_v57, %v1034_v62 }
 0x79a   :  { %v1026_v52 = vpop.xlane.xlu0 %1025 }
 0x79b   :  { %4892 = vrcp.f32 %v1026_v52 }
 0x79e   :  { %v1041_v63 = vpop.permute.xlu0 %1040 }
 0x79f   :  { %4583 = vmatpush3.bf16.msra.mxu1 %v1041_v63 }
 0x7a0   :  { %4594 = vmatprep.subr.bf16.mxu1 %v4993_v29 }
 0x7a2   :  { %4585 = vmatmul.mubr.msk.bf16.vlgmr.msra.gmra.mrb[20].mxu1 %vm393_vm1, %v1038_v0  ;;  %v1137_v5 = vpop.permute.xlu0 %1136 }
 0x7a3   :  { %4596 = vmatprep.mubr.msk.bf16.mxu1 %vm4994_vm0, %v4993_v29 }
 0x7a5   :  { %v4893_v6 = vpop.eup %4892 }
 0x7a6   :  { %v1036_v10 = vmul.f32 %v4893_v6, %v4885_v39 }
 0x7a8   :  { %4595 = vmatpush3.bf16.xpose.msra.mxu1 %v1144_v3 }
 0x7a9   :  { %4606 = vmatprep.subr.bf16.mxu1 %v4993_v29 }
 0x7aa   :  { %v1029_v4 = vpop.xlane.xlu1 %1028 }
 0x7ab   :  { %4894 = vrcp.f32 %v1029_v4 }
 0x7ae   :  { %v1190_v16 = vpop.permute.xlu1 %1189 }
 0x7af   :  { %4597 = vmatmul.mubr.msk.bf16.vlgmr.msra.gmra.mrb[24].mxu1 %vm393_vm1, %v1137_v5  ;;  %v1195_v19 = vsel %vm393_vm1, %v1190_v16, 0 }
 0x7b0   :  { %4608 = vmatprep.mubr.msk.bf16.mxu1 %vm4994_vm0, %v4993_v29 }
 0x7b2   :  { %v1188_v21 = vpop.permute.xlu1 %1187 }
 0x7b5   :  { %v4895_v8 = vpop.eup %4894 }
 0x7b6   :  { %v1037_v13 = vmul.f32 %v4895_v8, %v4887_v43 }
 0x7b8   :  { %v1039_v18 = vpack.c.bf16 %v1037_v13, %v1036_v10 }
 0x7ba   :  { %4591 = vmatmul.mubr.msk.bf16.vlgmr.msra.gmra.mrb[32].mxu0 %vm393_vm1, %v1039_v18 }
 0x7bb   :  { %4601 = vmatpush3.bf16.xpose.msra.mxu0 %v1195_v19  ;;  %4602 = vmatprep.mubr.msk.bf16.mxu0 %vm4994_vm0, %v4993_v29 }
 0x7bc   :  { %4612 = vmatprep.subr.bf16.mxu0 %v4993_v29 }
 0x7c2   :  { %4603 = vmatmul.mubr.msk.bf16.vlgmr.msra.gmra.mrb[36].mxu0 %vm393_vm1, %v1188_v21 }
 0x7c3   :  { %4614 = vmatprep.mubr.msk.bf16.mxu0 %vm4994_vm0, %v4993_v29 }
 0x875   :  { %v5396_v33 = vpop.f32.mrb[20].mxu1 }
 0x876   :  { %v4586_v22 = vpop.f32.mrb[21].mxu1 }
 0x877   :  { %v5398_v23 = vpop.f32.mrb[22].mxu1 }
 0x878   :  { %v1134_v25 = vpack.c.bf16 %v5398_v23, %v5396_v33  ;;  %v4587_v28 = vpop.f32.mrb[23].mxu1 }
 0x882   :  { %v1180_v30 = vpop.f32.mrb[24].mxu1 }
 0x883   :  { %v1181_v36 = vadd.f32 %v1180_v30, %v5236_v24  ;;  %v4598_v39 = vpop.f32.mrb[25].mxu1 }
 0x884   :  { %v1183_v40 = vpop.f32.mrb[26].mxu1 }
 0x885   :  { %v1184_v41 = vadd.f32 %v1183_v40, %v5236_v24  ;;  %v4599_v43 = vpop.f32.mrb[27].mxu1  ;;  %v1238_v44 = vsel %vm393_vm1, %v1181_v36, -inf }
 0x886   :  { %1239 = vmax.xlane.f32.xlu0 %v1238_v44 }
 0x887   :  { %v1241_v45 = vsel %vm393_vm1, %v1184_v41, -inf }
 0x888   :  { %1242 = vmax.xlane.f32.xlu1 %v1241_v45 }
 0x88d   :  { %v5406_v46 = vpop.f32.mrb[32].mxu0 }
 0x88e   :  { %v4592_v49 = vpop.f32.mrb[33].mxu0 }
 0x88f   :  { %v5408_v50 = vpop.f32.mrb[34].mxu0 }
 0x890   :  { %v1135_v52 = vpack.c.bf16 %v5408_v50, %v5406_v46  ;;  %v4593_v55 = vpop.f32.mrb[35].mxu0 }
 0x895   :  { %v1231_v57 = vpop.f32.mrb[36].mxu0 }
 0x896   :  { %v1232_v62 = vadd.f32 %v1231_v57, %v5242_v42  ;;  %v4604_v63 = vpop.f32.mrb[37].mxu0 }
 0x897   :  { %v1234_v0 = vpop.f32.mrb[38].mxu0 }
 0x898   :  { %v1235_v2 = vadd.f32 %v1234_v0, %v5242_v42  ;;  %v4605_v3 = vpop.f32.mrb[39].mxu0  ;;  %v1244_v4 = vsel %vm393_vm1, %v1232_v62, -inf }
 0x899   :  { %1245 = vmax.xlane.f32.xlu0 %v1244_v4 }
 0x89a   :  { %v1247_v5 = vsel %vm393_vm1, %v1235_v2, -inf }
 0x89d   :  { %1248 = vmax.xlane.f32.xlu0 %v1247_v5 }
 0x913   :  { %v1240_v6 = vpop.xlane.xlu0 %1239 }
 0x914   :  { %v1250_v8 = vsub.f32 %v1181_v36, %v1240_v6 }
 0x915   :  { %v1243_v10 = vpop.xlane.xlu1 %1242 }
 0x916   :  { %v1254_v13 = vmul.f32 1.442695, %v1250_v8  ;;  %v1251_v16 = vsub.f32 %v1184_v41, %v1243_v10 }
 0x918   :  { %4896 = vpow2.f32 %v1254_v13  ;;  %v1256_v18 = vmul.f32 1.442695, %v1251_v16 }
 0x91a   :  { %4898 = vpow2.f32 %v1256_v18 }
 0x922   :  { %v4897_v19 = vpop.eup %4896 }
 0x923   :  { %v1262_v21 = vsel %vm393_vm1, %v4897_v19, 0.0 }
 0x924   :  { %v4899_v22 = vpop.eup %4898  ;;  %1263 = vadd.xlane.f32.xlu0 %v1262_v21 }
 0x925   :  { %v1265_v28 = vsel %vm393_vm1, %v4899_v22, 0.0 }
 0x926   :  { %1266 = vadd.xlane.f32.xlu1 %v1265_v28  ;;  %v1246_v30 = vpop.xlane.xlu0 %1245 }
 0x927   :  { %v1252_v39 = vsub.f32 %v1232_v62, %v1246_v30 }
 0x929   :  { %v1258_v40 = vmul.f32 1.442695, %v1252_v39 }
 0x92a   :  { %v1249_v41 = vpop.xlane.xlu0 %1248 }
 0x92b   :  { %4900 = vpow2.f32 %v1258_v40  ;;  %v1253_v44 = vsub.f32 %v1235_v2, %v1249_v41 }
 0x92d   :  { %v1260_v45 = vmul.f32 1.442695, %v1253_v44 }
 0x92f   :  { %4902 = vpow2.f32 %v1260_v45 }
 0x935   :  { %v4901_v43 = vpop.eup %4900 }
 0x936   :  { %v1268_v36 = vsel %vm393_vm1, %v4901_v43, 0.0 }
 0x937   :  { %1331 = vrot.lane.b32.xlu1 %v5261_v20, %s4997_s23  ;;  %1269 = vadd.xlane.f32.xlu0 %v1268_v36 }
 0x939   :  { %v4903_v49 = vpop.eup %4902 }
 0x93a   :  { %v1271_v55 = vsel %vm393_vm1, %v4903_v49, 0.0 }
 0x93b   :  { %1382 = vrot.lane.b32.xlu1 %v5179_v47, %s4998_s24 }
 0x94d   :  { %1284 = vrot.lane.b32.xlu0 %v5257_v17, %s4997_s23 }
 0x951   :  { %1380 = vrot.lane.b32.xlu0 %v5181_v48, %s4998_s24 }
 0x95f   :  { %1272 = vadd.xlane.f32.xlu1 %v1271_v55 }
 0x970   :  { %1433 = vrot.lane.b32.xlu1 %v5186_v60, %s4998_s24 }
 0x974   :  { %1431 = vrot.lane.b32.xlu1 %v5188_v61, %s4998_s24 }
 0x9b1   :  { %v1264_v63 = vpop.xlane.xlu0 %1263 }
 0x9b3   :  { %v1267_v57 = vpop.xlane.xlu1 %1266 }
 0x9b4   :  { %4904 = vrcp.f32 %v1267_v57 }
 0x9b5   :  { %4906 = vrcp.f32 %v1264_v63 }
 0x9b7   :  { %v1332_v62 = vpop.permute.xlu1 %1331 }
 0x9b8   :  { %4613 = vmatpush3.bf16.msra.mxu0 %v1332_v62 }
 0x9b9   :  { %4624 = vmatprep.subr.bf16.mxu0 %v4993_v29 }
 0x9bb   :  { %v1383_v10 = vpop.permute.xlu1 %1382 }
 0x9bc   :  { %v1388_v13 = vsel %vm393_vm1, %v1383_v10, 0 }
 0x9be   :  { %v4905_v0 = vpop.eup %4904 }
 0x9bf   :  { %v4907_v3 = vpop.eup %4906  ;;  %v1279_v4 = vmul.f32 %v4905_v0, %v4899_v22 }
 0x9c0   :  { %v1278_v5 = vmul.f32 %v4907_v3, %v4897_v19 }
 0x9c2   :  { %v1282_v8 = vpack.c.bf16 %v1279_v4, %v1278_v5 }
 0x9c4   :  { %v1270_v2 = vpop.xlane.xlu0 %1269 }
 0x9c5   :  { %4908 = vrcp.f32 %v1270_v2 }
 0x9c8   :  { %v1285_v6 = vpop.permute.xlu0 %1284 }
 0x9c9   :  { %4607 = vmatpush3.bf16.msra.mxu1 %v1285_v6 }
 0x9ca   :  { %4618 = vmatprep.subr.bf16.mxu1 %v4993_v29 }
 0x9cc   :  { %4609 = vmatmul.mubr.msk.bf16.vlgmr.msra.gmra.mrb[28].mxu1 %vm393_vm1, %v1282_v8  ;;  %v1381_v16 = vpop.permute.xlu0 %1380 }
 0x9cd   :  { %4620 = vmatprep.mubr.msk.bf16.mxu1 %vm4994_vm0, %v4993_v29 }
 0x9cf   :  { %v4909_v19 = vpop.eup %4908 }
 0x9d0   :  { %v1280_v22 = vmul.f32 %v4909_v19, %v4901_v43 }
 0x9d2   :  { %4619 = vmatpush3.bf16.xpose.msra.mxu1 %v1388_v13 }
 0x9d3   :  { %4630 = vmatprep.subr.bf16.mxu1 %v4993_v29 }
 0x9d9   :  { %4621 = vmatmul.mubr.msk.bf16.vlgmr.msra.gmra.mrb[32].mxu1 %vm393_vm1, %v1381_v16 }
 0x9da   :  { %4632 = vmatprep.mubr.msk.bf16.mxu1 %vm4994_vm0, %v4993_v29 }
 0x9ec   :  { %v1273_v18 = vpop.xlane.xlu1 %1272 }
 0x9ed   :  { %4910 = vrcp.f32 %v1273_v18 }
 0x9f0   :  { %v1434_v30 = vpop.permute.xlu1 %1433 }
 0x9f1   :  { %v1439_v40 = vsel %vm393_vm1, %v1434_v30, 0 }
 0x9f4   :  { %v1432_v36 = vpop.permute.xlu1 %1431 }
 0x9f7   :  { %v4911_v21 = vpop.eup %4910 }
 0x9f8   :  { %v1281_v28 = vmul.f32 %v4911_v21, %v4903_v49 }
 0x9fa   :  { %v1283_v39 = vpack.c.bf16 %v1281_v28, %v1280_v22 }
 0x9fc   :  { %4615 = vmatmul.mubr.msk.bf16.vlgmr.msra.gmra.mrb[40].mxu0 %vm393_vm1, %v1283_v39 }
 0x9fd   :  { %4625 = vmatpush3.bf16.xpose.msra.mxu0 %v1439_v40  ;;  %4626 = vmatprep.mubr.msk.bf16.mxu0 %vm4994_vm0, %v4993_v29 }
 0x9fe   :  { %4636 = vmatprep.subr.bf16.mxu0 %v4993_v29 }
 0xa04   :  { %4627 = vmatmul.mubr.msk.bf16.vlgmr.msra.gmra.mrb[44].mxu0 %vm393_vm1, %v1432_v36 }
 0xa05   :  { %4638 = vmatprep.mubr.msk.bf16.mxu0 %vm4994_vm0, %v4993_v29 }
 0xa9f   :  { %v5450_v43 = vpop.f32.mrb[28].mxu1 }
 0xaa0   :  { %v4610_v41 = vpop.f32.mrb[29].mxu1 }
 0xaa1   :  { %v5452_v44 = vpop.f32.mrb[30].mxu1 }
 0xaa2   :  { %v1378_v45 = vpack.c.bf16 %v5452_v44, %v5450_v43  ;;  %v4611_v49 = vpop.f32.mrb[31].mxu1 }
 0xaac   :  { %v1424_v55 = vpop.f32.mrb[32].mxu1 }
 0xaad   :  { %v1425_v57 = vadd.f32 %v1424_v55, %v5236_v24  ;;  %v4622_v62 = vpop.f32.mrb[33].mxu1 }
 0xaae   :  { %v1427_v63 = vpop.f32.mrb[34].mxu1 }
 0xaaf   :  { %v1428_v0 = vadd.f32 %v1427_v63, %v5236_v24  ;;  %v4623_v2 = vpop.f32.mrb[35].mxu1  ;;  %v1482_v3 = vsel %vm393_vm1, %v1425_v57, -inf }
 0xab0   :  { %1483 = vmax.xlane.f32.xlu0 %v1482_v3 }
 0xab1   :  { %v1485_v4 = vsel %vm393_vm1, %v1428_v0, -inf }
 0xab2   :  { %1486 = vmax.xlane.f32.xlu1 %v1485_v4 }
 0xacf   :  { %v5460_v5 = vpop.f32.mrb[40].mxu0 }
 0xad0   :  { %v4616_v6 = vpop.f32.mrb[41].mxu0 }
 0xad1   :  { %v5462_v8 = vpop.f32.mrb[42].mxu0 }
 0xad2   :  { %v1379_v10 = vpack.c.bf16 %v5462_v8, %v5460_v5  ;;  %v4617_v13 = vpop.f32.mrb[43].mxu0  ;;  %v6254_v5 = vmov 0   ;;  %v4776_v8 = vld [vmem:[%s6237_s4] sm:$0xff]  }
 0xad7   :  { %v1475_v16 = vpop.f32.mrb[44].mxu0 }
 0xad8   :  { %v1476_v18 = vadd.f32 %v1475_v16, %v5242_v42  ;;  %v4628_v19 = vpop.f32.mrb[45].mxu0 }
 0xad9   :  { %v1478_v21 = vpop.f32.mrb[46].mxu0 }
 0xada   :  { %v1479_v22 = vadd.f32 %v1478_v21, %v5242_v42  ;;  %v4629_v28 = vpop.f32.mrb[47].mxu0  ;;  %v1488_v30 = vsel %vm393_vm1, %v1476_v18, -inf }
 0xadb   :  { %1489 = vmax.xlane.f32.xlu0 %v1488_v30 }
 0xadc   :  { %v1491_v39 = vsel %vm393_vm1, %v1479_v22, -inf }
 0xadf   :  { %1492 = vmax.xlane.f32.xlu0 %v1491_v39 }
 0xb3d   :  { %v1484_v40 = vpop.xlane.xlu0 %1483 }
 0xb3e   :  { %v1494_v36 = vsub.f32 %v1425_v57, %v1484_v40 }
 0xb3f   :  { %v1487_v41 = vpop.xlane.xlu1 %1486 }
 0xb40   :  { %v1498_v49 = vmul.f32 1.442695, %v1494_v36  ;;  %v1495_v55 = vsub.f32 %v1428_v0, %v1487_v41 }
 0xb42   :  { %4912 = vpow2.f32 %v1498_v49  ;;  %v1500_v62 = vmul.f32 1.442695, %v1495_v55 }
 0xb44   :  { %4914 = vpow2.f32 %v1500_v62 }
 0xb4c   :  { %v4913_v63 = vpop.eup %4912 }
 0xb4d   :  { %v1506_v2 = vsel %vm393_vm1, %v4913_v63, 0.0 }
 0xb4e   :  { %v4915_v3 = vpop.eup %4914  ;;  %1507 = vadd.xlane.f32.xlu0 %v1506_v2 }
 0xb4f   :  { %v1509_v4 = vsel %vm393_vm1, %v4915_v3, 0.0 }
 0xb50   :  { %1510 = vadd.xlane.f32.xlu1 %v1509_v4 }
 0xb61   :  { %1575 = vrot.lane.b32.xlu1 %v5261_v20, %s4998_s24 }
 0xb65   :  { %1626 = vrot.lane.b32.xlu1 %v5179_v47, %s4999_s3 }
 0xb68   :  { %v1490_v57 = vpop.xlane.xlu0 %1489 }
 0xb69   :  { %v1496_v0 = vsub.f32 %v1476_v18, %v1490_v57 }
 0xb6b   :  { %v1502_v6 = vmul.f32 1.442695, %v1496_v0 }
 0xb6c   :  { %v1493_v13 = vpop.xlane.xlu0 %1492 }
 0xb6d   :  { %4916 = vpow2.f32 %v1502_v6  ;;  %v1497_v16 = vsub.f32 %v1479_v22, %v1493_v13 }
 0xb6f   :  { %v1504_v21 = vmul.f32 1.442695, %v1497_v16 }
 0xb71   :  { %4918 = vpow2.f32 %v1504_v21 }
 0xb77   :  { %v4917_v19 = vpop.eup %4916 }
 0xb78   :  { %v1512_v28 = vsel %vm393_vm1, %v4917_v19, 0.0 }
 0xb79   :  { %1513 = vadd.xlane.f32.xlu0 %v1512_v28 }
 0xb7b   :  { %v4919_v30 = vpop.eup %4918 }
 0xb7c   :  { %v1515_v39 = vsel %vm393_vm1, %v4919_v30, 0.0 }
 0xb89   :  { %1516 = vadd.xlane.f32.xlu1 %v1515_v39 }
 0xb8f   :  { %1528 = vrot.lane.b32.xlu0 %v5257_v17, %s4998_s24 }
 0xb93   :  { %1624 = vrot.lane.b32.xlu0 %v5181_v48, %s4999_s3 }
 0xb9a   :  { %1677 = vrot.lane.b32.xlu1 %v5186_v60, %s4999_s3 }
 0xb9e   :  { %1675 = vrot.lane.b32.xlu1 %v5188_v61, %s4999_s3 }
 0xbdb   :  { %v1508_v40 = vpop.xlane.xlu0 %1507 }
 0xbdd   :  { %v1511_v18 = vpop.xlane.xlu1 %1510 }
 0xbde   :  { %4920 = vrcp.f32 %v1511_v18 }
 0xbdf   :  { %4922 = vrcp.f32 %v1508_v40 }
 0xbe1   :  { %v1576_v22 = vpop.permute.xlu1 %1575 }
 0xbe2   :  { %4637 = vmatpush3.bf16.msra.mxu0 %v1576_v22 }
 0xbe3   :  { %4648 = vmatprep.subr.bf16.mxu0 %v4993_v29 }
 0xbe5   :  { %v1627_v57 = vpop.permute.xlu1 %1626 }
 0xbe6   :  { %v1632_v0 = vsel %vm393_vm1, %v1627_v57, 0 }
 0xbe8   :  { %v4921_v36 = vpop.eup %4920 }
 0xbe9   :  { %v4923_v49 = vpop.eup %4922  ;;  %v1523_v55 = vmul.f32 %v4921_v36, %v4915_v3 }
 0xbea   :  { %v1522_v62 = vmul.f32 %v4923_v49, %v4913_v63 }
 0xbec   :  { %v1526_v4 = vpack.c.bf16 %v1523_v55, %v1522_v62 }
 0xc06   :  { %v1514_v41 = vpop.xlane.xlu0 %1513 }
 0xc07   :  { %4924 = vrcp.f32 %v1514_v41 }
 0xc0a   :  { %v1529_v2 = vpop.permute.xlu0 %1528 }
 0xc0b   :  { %4631 = vmatpush3.bf16.msra.mxu1 %v1529_v2 }
 0xc0c   :  { %4642 = vmatprep.subr.bf16.mxu1 %v4993_v29 }
 0xc0e   :  { %4633 = vmatmul.mubr.msk.bf16.vlgmr.msra.gmra.mrb[36].mxu1 %vm393_vm1, %v1526_v4  ;;  %v1625_v63 = vpop.permute.xlu0 %1624 }
 0xc0f   :  { %4644 = vmatprep.mubr.msk.bf16.mxu1 %vm4994_vm0, %v4993_v29 }
 0xc11   :  { %v4925_v3 = vpop.eup %4924 }
 0xc12   :  { %v1524_v16 = vmul.f32 %v4925_v3, %v4917_v19 }
 0xc14   :  { %4643 = vmatpush3.bf16.xpose.msra.mxu1 %v1632_v0 }
 0xc15   :  { %4654 = vmatprep.subr.bf16.mxu1 %v4993_v29 }
 0xc16   :  { %v1517_v6 = vpop.xlane.xlu1 %1516 }
 0xc17   :  { %4926 = vrcp.f32 %v1517_v6 }
 0xc1a   :  { %v1678_v28 = vpop.permute.xlu1 %1677 }
 0xc1b   :  { %4645 = vmatmul.mubr.msk.bf16.vlgmr.msra.gmra.mrb[40].mxu1 %vm393_vm1, %v1625_v63  ;;  %v1683_v18 = vsel %vm393_vm1, %v1678_v28, 0 }
 0xc1c   :  { %4656 = vmatprep.mubr.msk.bf16.mxu1 %vm4994_vm0, %v4993_v29 }
 0xc1e   :  { %v1676_v22 = vpop.permute.xlu1 %1675 }
 0xc21   :  { %v4927_v13 = vpop.eup %4926 }
 0xc22   :  { %v1525_v21 = vmul.f32 %v4927_v13, %v4919_v30 }
 0xc24   :  { %v1527_v39 = vpack.c.bf16 %v1525_v21, %v1524_v16 }
 0xc26   :  { %4639 = vmatmul.mubr.msk.bf16.vlgmr.msra.gmra.mrb[48].mxu0 %vm393_vm1, %v1527_v39 }
 0xc27   :  { %4649 = vmatpush3.bf16.xpose.msra.mxu0 %v1683_v18  ;;  %4650 = vmatprep.mubr.msk.bf16.mxu0 %vm4994_vm0, %v4993_v29 }
 0xc28   :  { %4660 = vmatprep.subr.bf16.mxu0 %v4993_v29 }
 0xc2e   :  { %4651 = vmatmul.mubr.msk.bf16.vlgmr.msra.gmra.mrb[52].mxu0 %vm393_vm1, %v1676_v22 }
 0xc2f   :  { %4662 = vmatprep.mubr.msk.bf16.mxu0 %vm4994_vm0, %v4993_v29 }
 0xce1   :  { %v5504_v19 = vpop.f32.mrb[36].mxu1 }
 0xce2   :  { %v4634_v30 = vpop.f32.mrb[37].mxu1 }
 0xce3   :  { %v5506_v40 = vpop.f32.mrb[38].mxu1 }
 0xce4   :  { %v1622_v36 = vpack.c.bf16 %v5506_v40, %v5504_v19  ;;  %v4635_v41 = vpop.f32.mrb[39].mxu1  ;;  %v4778_v19 = vld [vmem:[%s6237_s4 + $0x10] sm:$0xff]   ;;  %v4779_v40 = vld [vmem:[%s6237_s4 + $0x18] sm:$0xff]  }
 0xcee   :  { %v1668_v49 = vpop.f32.mrb[40].mxu1 }
 0xcef   :  { %v1669_v55 = vadd.f32 %v1668_v49, %v5236_v24  ;;  %v4646_v62 = vpop.f32.mrb[41].mxu1 }
 0xcf0   :  { %v1671_v2 = vpop.f32.mrb[42].mxu1 }
 0xcf1   :  { %v1672_v4 = vadd.f32 %v1671_v2, %v5236_v24  ;;  %v4647_v57 = vpop.f32.mrb[43].mxu1  ;;  %v1726_v0 = vsel %vm393_vm1, %v1669_v55, -inf }
 0xcf2   :  { %1727 = vmax.xlane.f32.xlu0 %v1726_v0 }
 0xcf3   :  { %v1729_v6 = vsel %vm393_vm1, %v1672_v4, -inf }
 0xcf4   :  { %1730 = vmax.xlane.f32.xlu1 %v1729_v6 }
 0xcf9   :  { %v5514_v63 = vpop.f32.mrb[48].mxu0 }
 0xcfa   :  { %v4640_v3 = vpop.f32.mrb[49].mxu0 }
 0xcfb   :  { %v5516_v13 = vpop.f32.mrb[50].mxu0 }
 0xcfc   :  { %v1623_v16 = vpack.c.bf16 %v5516_v13, %v5514_v63  ;;  %v4641_v21 = vpop.f32.mrb[51].mxu0  ;;  %v4781_v63 = vld [vmem:[%s6237_s4 + $0x28] sm:$0xff]   ;;  %v4782_v13 = vld [vmem:[%s6237_s4 + $0x30] sm:$0xff]  }
 0xd01   :  { %v1719_v28 = vpop.f32.mrb[52].mxu0 }
 0xd02   :  { %v1720_v39 = vadd.f32 %v1719_v28, %v5242_v42  ;;  %v4652_v18 = vpop.f32.mrb[53].mxu0 }
 0xd03   :  { %v1722_v22 = vpop.f32.mrb[54].mxu0 }
 0xd04   :  { %v1723_v30 = vadd.f32 %v1722_v22, %v5242_v42  ;;  %v4653_v41 = vpop.f32.mrb[55].mxu0  ;;  %v1732_v49 = vsel %vm393_vm1, %v1720_v39, -inf }
 0xd05   :  { %1733 = vmax.xlane.f32.xlu0 %v1732_v49 }
 0xd06   :  { %v1735_v62 = vsel %vm393_vm1, %v1723_v30, -inf }
 0xd09   :  { %1736 = vmax.xlane.f32.xlu0 %v1735_v62 }
 0xd7f   :  { %v1728_v2 = vpop.xlane.xlu0 %1727 }
 0xd80   :  { %v1738_v57 = vsub.f32 %v1669_v55, %v1728_v2 }
 0xd81   :  { %v1731_v0 = vpop.xlane.xlu1 %1730 }
 0xd82   :  { %v1742_v6 = vmul.f32 1.442695, %v1738_v57  ;;  %v1739_v3 = vsub.f32 %v1672_v4, %v1731_v0 }
 0xd84   :  { %4928 = vpow2.f32 %v1742_v6  ;;  %v1744_v21 = vmul.f32 1.442695, %v1739_v3 }
 0xd86   :  { %4930 = vpow2.f32 %v1744_v21 }
 0xd8e   :  { %v4929_v28 = vpop.eup %4928 }
 0xd8f   :  { %v1750_v18 = vsel %vm393_vm1, %v4929_v28, 0.0 }
 0xd90   :  { %v4931_v34 = vpop.eup %4930  ;;  %1751 = vadd.xlane.f32.xlu0 %v1750_v18 }
 0xd91   :  { %v1753_v22 = vsel %vm393_vm1, %v4931_v34, 0.0 }
 0xd92   :  { %1754 = vadd.xlane.f32.xlu1 %v1753_v22  ;;  %v1734_v41 = vpop.xlane.xlu0 %1733 }
 0xd93   :  { %v1740_v49 = vsub.f32 %v1720_v39, %v1734_v41 }
 0xd95   :  { %v1746_v7 = vmul.f32 1.442695, %v1740_v49 }
 0xd96   :  { %v1737_v4 = vpop.xlane.xlu0 %1736 }
 0xd97   :  { %4932 = vpow2.f32 %v1746_v7  ;;  %v1741_v2 = vsub.f32 %v1723_v30, %v1737_v4 }
 0xd99   :  { %v1748_v57 = vmul.f32 1.442695, %v1741_v2 }
 0xd9b   :  { %4934 = vpow2.f32 %v1748_v57 }
 0xda1   :  { %v4933_v62 = vpop.eup %4932 }
 0xda2   :  { %v1756_v55 = vsel %vm393_vm1, %v4933_v62, 0.0 }
 0xda3   :  { %1819 = vrot.lane.b32.xlu1 %v5261_v20, %s4999_s3  ;;  %1757 = vadd.xlane.f32.xlu0 %v1756_v55 }
 0xda5   :  { %v4935_v7 = vpop.eup %4934 }
 0xda6   :  { %v1759_v39 = vsel %vm393_vm1, %v4935_v7, 0.0 }
 0xda7   :  { %1870 = vrot.lane.b32.xlu1 %v5179_v47, %s5000_s25 }
 0xdb9   :  { %1772 = vrot.lane.b32.xlu0 %v5257_v17, %s4999_s3 }
 0xdbd   :  { %1868 = vrot.lane.b32.xlu0 %v5181_v48, %s5000_s25 }
 0xdcb   :  { %1760 = vadd.xlane.f32.xlu1 %v1759_v39 }
 0xddc   :  { %1921 = vrot.lane.b32.xlu1 %v5186_v60, %s5000_s25 }
 0xde0   :  { %1919 = vrot.lane.b32.xlu1 %v5188_v61, %s5000_s25 }
 0xe1d   :  { %v1752_v6 = vpop.xlane.xlu0 %1751 }
 0xe1f   :  { %v1755_v0 = vpop.xlane.xlu1 %1754 }
 0xe20   :  { %4936 = vrcp.f32 %v1755_v0 }
 0xe21   :  { %4938 = vrcp.f32 %v1752_v6 }
 0xe23   :  { %v1820_v30 = vpop.permute.xlu1 %1819 }
 0xe24   :  { %4661 = vmatpush3.bf16.msra.mxu0 %v1820_v30 }
 0xe25   :  { %4672 = vmatprep.subr.bf16.mxu0 %v4993_v29 }
 0xe27   :  { %v1871_v4 = vpop.permute.xlu1 %1870 }
 0xe28   :  { %v1876_v2 = vsel %vm393_vm1, %v1871_v4, 0 }
 0xe2a   :  { %v4937_v3 = vpop.eup %4936 }
 0xe2b   :  { %v4939_v18 = vpop.eup %4938  ;;  %v1767_v22 = vmul.f32 %v4937_v3, %v4931_v34 }
 0xe2c   :  { %v1766_v41 = vmul.f32 %v4939_v18, %v4929_v28 }
 0xe2e   :  { %v1770_v55 = vpack.c.bf16 %v1767_v22, %v1766_v41 }
 0xe30   :  { %v1758_v21 = vpop.xlane.xlu0 %1757 }
 0xe31   :  { %4940 = vrcp.f32 %v1758_v21 }
 0xe34   :  { %v1773_v49 = vpop.permute.xlu0 %1772 }
 0xe35   :  { %4655 = vmatpush3.bf16.msra.mxu1 %v1773_v49 }
 0xe36   :  { %4666 = vmatprep.subr.bf16.mxu1 %v4993_v29 }
 0xe38   :  { %4657 = vmatmul.mubr.msk.bf16.vlgmr.msra.gmra.mrb[44].mxu1 %vm393_vm1, %v1770_v55  ;;  %v1869_v57 = vpop.permute.xlu0 %1868 }
 0xe39   :  { %4668 = vmatprep.mubr.msk.bf16.mxu1 %vm4994_vm0, %v4993_v29 }
 0xe3b   :  { %v4941_v28 = vpop.eup %4940 }
 0xe3c   :  { %v1768_v0 = vmul.f32 %v4941_v28, %v4933_v62 }
 0xe3e   :  { %4667 = vmatpush3.bf16.xpose.msra.mxu1 %v1876_v2 }
 0xe3f   :  { %4678 = vmatprep.subr.bf16.mxu1 %v4993_v29 }
 0xe45   :  { %4669 = vmatmul.mubr.msk.bf16.vlgmr.msra.gmra.mrb[48].mxu1 %vm393_vm1, %v1869_v57 }
 0xe46   :  { %4680 = vmatprep.mubr.msk.bf16.mxu1 %vm4994_vm0, %v4993_v29 }
 0xe58   :  { %v1761_v34 = vpop.xlane.xlu1 %1760 }
 0xe59   :  { %4942 = vrcp.f32 %v1761_v34 }
 0xe5c   :  { %v1922_v6 = vpop.permute.xlu1 %1921 }
 0xe5d   :  { %v1927_v18 = vsel %vm393_vm1, %v1922_v6, 0 }
 0xe60   :  { %v1920_v22 = vpop.permute.xlu1 %1919 }
 0xe63   :  { %v4943_v39 = vpop.eup %4942 }
 0xe64   :  { %v1769_v30 = vmul.f32 %v4943_v39, %v4935_v7 }
 0xe66   :  { %v1771_v3 = vpack.c.bf16 %v1769_v30, %v1768_v0 }
 0xe68   :  { %4663 = vmatmul.mubr.msk.bf16.vlgmr.msra.gmra.mrb[56].mxu0 %vm393_vm1, %v1771_v3 }
 0xe69   :  { %4673 = vmatpush3.bf16.xpose.msra.mxu0 %v1927_v18  ;;  %4674 = vmatprep.mubr.msk.bf16.mxu0 %vm4994_vm0, %v4993_v29 }
 0xe6a   :  { %4684 = vmatprep.subr.bf16.mxu0 %v4993_v29 }
 0xe70   :  { %4675 = vmatmul.mubr.msk.bf16.vlgmr.msra.gmra.mrb[60].mxu0 %vm393_vm1, %v1920_v22 }
 0xe71   :  { %4686 = vmatprep.mubr.msk.bf16.mxu0 %vm4994_vm0, %v4993_v29 }
 0xf0b   :  { %v5558_v62 = vpop.f32.mrb[44].mxu1 }
 0xf0c   :  { %v4658_v7 = vpop.f32.mrb[45].mxu1 }
 0xf0d   :  { %v5560_v21 = vpop.f32.mrb[46].mxu1 }
 0xf0e   :  { %v1866_v41 = vpack.c.bf16 %v5560_v21, %v5558_v62  ;;  %v4659_v49 = vpop.f32.mrb[47].mxu1 }
 0xf18   :  { %v1912_v55 = vpop.f32.mrb[48].mxu1 }
 0xf19   :  { %v1913_v4 = vadd.f32 %v1912_v55, %v5236_v24  ;;  %v4670_v2 = vpop.f32.mrb[49].mxu1 }
 0xf1a   :  { %v1915_v57 = vpop.f32.mrb[50].mxu1 }
 0xf1b   :  { %v1916_v34 = vadd.f32 %v1915_v57, %v5236_v24  ;;  %v4671_v28 = vpop.f32.mrb[51].mxu1  ;;  %v1970_v39 = vsel %vm393_vm1, %v1913_v4, -inf }
 0xf1c   :  { %1971 = vmax.xlane.f32.xlu0 %v1970_v39 }
 0xf1d   :  { %v1973_v0 = vsel %vm393_vm1, %v1916_v34, -inf }
 0xf1e   :  { %1974 = vmax.xlane.f32.xlu1 %v1973_v0 }
 0xf3b   :  { %v5568_v30 = vpop.f32.mrb[56].mxu0 }
 0xf3c   :  { %v4664_v6 = vpop.f32.mrb[57].mxu0 }
 0xf3d   :  { %v5570_v3 = vpop.f32.mrb[58].mxu0 }
 0xf3e   :  { %v4665_v22 = vpop.f32.mrb[59].mxu0 }
 0xf43   :  { %v1963_v7 = vpop.f32.mrb[60].mxu0 }
 0xf44   :  { %v1964_v49 = vadd.f32 %v1963_v7, %v5242_v42  ;;  %v4676_v55 = vpop.f32.mrb[61].mxu0 }
 0xf45   :  { %v1966_v2 = vpop.f32.mrb[62].mxu0 }
 0xf46   :  { %v1967_v57 = vadd.f32 %v1966_v2, %v5242_v42  ;;  %v4677_v28 = vpop.f32.mrb[63].mxu0  ;;  %v1976_v39 = vsel %vm393_vm1, %v1964_v49, -inf }
 0xf47   :  { %1977 = vmax.xlane.f32.xlu0 %v1976_v39 }
 0xf48   :  { %v1979_v0 = vsel %vm393_vm1, %v1967_v57, -inf }
 0xf4b   :  { %1980 = vmax.xlane.f32.xlu0 %v1979_v0 }
 0xfa9   :  { %v1972_v6 = vpop.xlane.xlu0 %1971 }
 0xfaa   :  { %v1982_v32 = vsub.f32 %v1913_v4, %v1972_v6 }
 0xfab   :  { %v1975_v12 = vpop.xlane.xlu1 %1974 }
 0xfac   :  { %v1986_v59 = vmul.f32 1.442695, %v1982_v32  ;;  %v1983_v1 = vsub.f32 %v1916_v34, %v1975_v12 }
 0xfae   :  { %4944 = vpow2.f32 %v1986_v59  ;;  %v1988_v22 = vmul.f32 1.442695, %v1983_v1 }
 0xfb0   :  { %4946 = vpow2.f32 %v1988_v22 }
 0xfb8   :  { %v4945_v7 = vpop.eup %4944 }
 0xfb9   :  { %v1994_v55 = vsel %vm393_vm1, %v4945_v7, 0.0 }
 0xfba   :  { %v4947_v18 = vpop.eup %4946  ;;  %1995 = vadd.xlane.f32.xlu0 %v1994_v55 }
 0xfbb   :  { %v1997_v2 = vsel %vm393_vm1, %v4947_v18, 0.0 }
 0xfbc   :  { %1998 = vadd.xlane.f32.xlu1 %v1997_v2 }
 0xfcd   :  { %2063 = vrot.lane.b32.xlu1 %v5261_v20, %s5000_s25 }
 0xfd1   :  { %2114 = vrot.lane.b32.xlu1 %v5179_v47, %s5001_s26 }
 0xfd4   :  { %v1978_v32 = vpop.xlane.xlu0 %1977 }
 0xfd5   :  { %v1984_v12 = vsub.f32 %v1964_v49, %v1978_v32 }
 0xfd7   :  { %v1990_v59 = vmul.f32 1.442695, %v1984_v12 }
 0xfd8   :  { %v1981_v1 = vpop.xlane.xlu0 %1980 }
 0xfd9   :  { %4948 = vpow2.f32 %v1990_v59  ;;  %v1985_v4 = vsub.f32 %v1967_v57, %v1981_v1 }
 0xfdb   :  { %v1992_v28 = vmul.f32 1.442695, %v1985_v4 }
 0xfdd   :  { %4950 = vpow2.f32 %v1992_v28 }
 0xfe3   :  { %v4949_v34 = vpop.eup %4948 }
 0xfe4   :  { %v2000_v39 = vsel %vm393_vm1, %v4949_v34, 0.0 }
 0xfe5   :  { %2001 = vadd.xlane.f32.xlu0 %v2000_v39 }
 0xfe7   :  { %v4951_v0 = vpop.eup %4950 }
 0xfe8   :  { %v2003_v6 = vsel %vm393_vm1, %v4951_v0, 0.0 }
 0xff5   :  { %2004 = vadd.xlane.f32.xlu1 %v2003_v6 }
 0xffb   :  { %2016 = vrot.lane.b32.xlu0 %v5257_v17, %s5000_s25 }
 0xfff   :  { %2112 = vrot.lane.b32.xlu0 %v5181_v48, %s5001_s26 }
0x1006   :  { %2165 = vrot.lane.b32.xlu1 %v5186_v60, %s5001_s26 }
0x100a   :  { %2163 = vrot.lane.b32.xlu1 %v5188_v61, %s5001_s26 }
0x1047   :  { %v1996_v57 = vpop.xlane.xlu0 %1995 }
0x1049   :  { %v1999_v47 = vpop.xlane.xlu1 %1998 }
0x104a   :  { %4952 = vrcp.f32 %v1999_v47 }
0x104b   :  { %4954 = vrcp.f32 %v1996_v57 }
0x104d   :  { %v2064_v49 = vpop.permute.xlu1 %2063 }
0x104e   :  { %4685 = vmatpush3.bf16.msra.mxu0 %v2064_v49 }
0x104f   :  { %4696 = vmatprep.subr.bf16.mxu0 %v4993_v29 }
0x1051   :  { %v2115_v60 = vpop.permute.xlu1 %2114 }
0x1052   :  { %v2120_v61 = vsel %vm393_vm1, %v2115_v60, 0 }
0x1054   :  { %v4953_v22 = vpop.eup %4952 }
0x1055   :  { %v4955_v2 = vpop.eup %4954  ;;  %v2011_v32 = vmul.f32 %v4953_v22, %v4947_v18 }
0x1056   :  { %v2010_v12 = vmul.f32 %v4955_v2, %v4945_v7 }
0x1058   :  { %v2014_v59 = vpack.c.bf16 %v2011_v32, %v2010_v12 }
0x1072   :  { %v2002_v55 = vpop.xlane.xlu0 %2001 }
0x1073   :  { %4956 = vrcp.f32 %v2002_v55 }
0x1076   :  { %v2017_v48 = vpop.permute.xlu0 %2016 }
0x1077   :  { %4679 = vmatpush3.bf16.msra.mxu1 %v2017_v48 }
0x1078   :  { %4690 = vmatprep.subr.bf16.mxu1 %v4993_v29 }
0x107a   :  { %4681 = vmatmul.mubr.msk.bf16.vlgmr.msra.gmra.mrb[52].mxu1 %vm393_vm1, %v2014_v59  ;;  %v2113_v18 = vpop.permute.xlu0 %2112 }
0x107b   :  { %4692 = vmatprep.mubr.msk.bf16.mxu1 %vm4994_vm0, %v4993_v29 }
0x107d   :  { %v4957_v7 = vpop.eup %4956 }
0x107e   :  { %v2012_v28 = vmul.f32 %v4957_v7, %v4949_v34 }
0x1080   :  { %4691 = vmatpush3.bf16.xpose.msra.mxu1 %v2120_v61 }
0x1081   :  { %4702 = vmatprep.subr.bf16.mxu1 %v4993_v29 }
0x1082   :  { %v2005_v1 = vpop.xlane.xlu1 %2004 }
0x1083   :  { %4958 = vrcp.f32 %v2005_v1 }
0x1086   :  { %v2166_v6 = vpop.permute.xlu1 %2165 }
0x1087   :  { %4693 = vmatmul.mubr.msk.bf16.vlgmr.msra.gmra.mrb[56].mxu1 %vm393_vm1, %v2113_v18  ;;  %v2171_v49 = vsel %vm393_vm1, %v2166_v6, 0 }
0x1088   :  { %4704 = vmatprep.mubr.msk.bf16.mxu1 %vm4994_vm0, %v4993_v29 }
0x108a   :  { %v2164_v57 = vpop.permute.xlu1 %2163 }
0x108d   :  { %v4959_v4 = vpop.eup %4958 }
0x108e   :  { %v2013_v39 = vmul.f32 %v4959_v4, %v4951_v0 }
0x1090   :  { %v2015_v47 = vpack.c.bf16 %v2013_v39, %v2012_v28 }
0x1092   :  { %4687 = vmatmul.mubr.msk.bf16.vlgmr.msra.gmra.mrb[64].mxu0 %vm393_vm1, %v2015_v47 }
0x1093   :  { %4697 = vmatpush3.bf16.xpose.msra.mxu0 %v2171_v49  ;;  %4698 = vmatprep.mubr.msk.bf16.mxu0 %vm4994_vm0, %v4993_v29 }
0x1094   :  { %4708 = vmatprep.subr.bf16.mxu0 %v4993_v29 }
0x109a   :  { %4699 = vmatmul.mubr.msk.bf16.vlgmr.msra.gmra.mrb[68].mxu0 %vm393_vm1, %v2164_v57 }
0x109b   :  { %4710 = vmatprep.mubr.msk.bf16.mxu0 %vm4994_vm0, %v4993_v29 }
0x114d   :  { %v5612_v34 = vpop.f32.mrb[52].mxu1 }
0x114e   :  { %v4682_v0 = vpop.f32.mrb[53].mxu1 }
0x114f   :  { %v5614_v22 = vpop.f32.mrb[54].mxu1 }
0x1150   :  { %v2110_v55 = vpack.c.bf16 %v5614_v22, %v5612_v34  ;;  %v4683_v2 = vpop.f32.mrb[55].mxu1 }
0x115a   :  { %v2156_v32 = vpop.f32.mrb[56].mxu1 }
0x115b   :  { %v2157_v12 = vadd.f32 %v2156_v32, %v5236_v24  ;;  %v4694_v48 = vpop.f32.mrb[57].mxu1 }
0x115c   :  { %v2159_v59 = vpop.f32.mrb[58].mxu1 }
0x115d   :  { %v2160_v60 = vadd.f32 %v2159_v59, %v5236_v24  ;;  %v4695_v61 = vpop.f32.mrb[59].mxu1  ;;  %v2214_v1 = vsel %vm393_vm1, %v2157_v12, -inf }
0x115e   :  { %2215 = vmax.xlane.f32.xlu0 %v2214_v1 }
0x115f   :  { %v2217_v29 = vsel %vm393_vm1, %v2160_v60, -inf }
0x1160   :  { %2218 = vmax.xlane.f32.xlu1 %v2217_v29 }
0x1165   :  { %v2103_v18 = vpop.f32.mrb[64].mxu0 }
0x1166   :  { %v4688_v7 = vpop.f32.mrb[65].mxu0 }
0x1167   :  { %v2106_v4 = vpop.f32.mrb[66].mxu0 }
0x1168   :  { %v2111_v28 = vpack.c.bf16 %v2106_v4, %v2103_v18  ;;  %v4689_v39 = vpop.f32.mrb[67].mxu0 }
0x116d   :  { %v2207_v6 = vpop.f32.mrb[68].mxu0 }
0x116e   :  { %v2208_v47 = vadd.f32 %v2207_v6, %v5242_v42  ;;  %v4700_v49 = vpop.f32.mrb[69].mxu0 }
0x116f   :  { %v2210_v57 = vpop.f32.mrb[70].mxu0 }
0x1170   :  { %v2211_v0 = vadd.f32 %v2210_v57, %v5242_v42  ;;  %v4701_v24 = vpop.f32.mrb[71].mxu0  ;;  %v2220_v2 = vsel %vm393_vm1, %v2208_v47, -inf }
0x1171   :  { %2221 = vmax.xlane.f32.xlu0 %v2220_v2 }
0x1172   :  { %v2223_v32 = vsel %vm393_vm1, %v2211_v0, -inf }
0x1175   :  { %2224 = vmax.xlane.f32.xlu0 %v2223_v32 }
0x11eb   :  { %v2216_v48 = vpop.xlane.xlu0 %2215 }
0x11ec   :  { %v2226_v59 = vsub.f32 %v2157_v12, %v2216_v48 }
0x11ed   :  { %v2219_v61 = vpop.xlane.xlu1 %2218 }
0x11ee   :  { %v2230_v1 = vmul.f32 1.442695, %v2226_v59  ;;  %v2227_v29 = vsub.f32 %v2160_v60, %v2219_v61 }
0x11f0   :  { %4960 = vpow2.f32 %v2230_v1  ;;  %v2232_v18 = vmul.f32 1.442695, %v2227_v29 }
0x11f2   :  { %4962 = vpow2.f32 %v2232_v18 }
0x11fa   :  { %v4961_v7 = vpop.eup %4960 }
0x11fb   :  { %v2238_v4 = vsel %vm393_vm1, %v4961_v7, 0.0 }
0x11fc   :  { %v4963_v39 = vpop.eup %4962  ;;  %2239 = vadd.xlane.f32.xlu0 %v2238_v4  ;;  %v6255_v4 = vpack.c.bf16 %v5290_v58, %v5288_v56 }
0x11fd   :  { %v2241_v42 = vsel %vm393_vm1, %v4963_v39, 0.0 }
0x11fe   :  { %2242 = vadd.xlane.f32.xlu1 %v2241_v42  ;;  %v2222_v6 = vpop.xlane.xlu0 %2221 }
0x11ff   :  { %v2228_v49 = vsub.f32 %v2208_v47, %v2222_v6 }
0x1201   :  { %v2234_v57 = vmul.f32 1.442695, %v2228_v49 }
0x1202   :  { %v2225_v24 = vpop.xlane.xlu0 %2224 }
0x1203   :  { %4964 = vpow2.f32 %v2234_v57  ;;  %v2229_v12 = vsub.f32 %v2211_v0, %v2225_v24 }
0x1205   :  { %v2236_v2 = vmul.f32 1.442695, %v2229_v12 }
0x1207   :  { %4966 = vpow2.f32 %v2236_v2 }
0x120d   :  { %v4965_v60 = vpop.eup %4964 }
0x120e   :  { %v2244_v32 = vsel %vm393_vm1, %v4965_v60, 0.0 }
0x120f   :  { %2245 = vadd.xlane.f32.xlu0 %v2244_v32 }
0x1211   :  { %v4967_v48 = vpop.eup %4966 }
0x1212   :  { %v2247_v59 = vsel %vm393_vm1, %v4967_v48, 0.0 }
0x1213   :  { %2248 = vadd.xlane.f32.xlu1 %v2247_v59  ;;  %v6256_v59 = vpack.c.bf16 %v5300_v11, %v5298_v9  ;;  %v4164_v9 = vld [vmem:[%s6238_s5] ss:$0 sm:$0xff] }
0x1224   :  { %2307 = vrot.lane.b32.xlu1 %v5261_v20, %s5001_s26 }
0x1225   :  { %2260 = vrot.lane.b32.xlu0 %v5257_v17, %s5001_s26  ;;  %v6253_v17 = vpack.c.bf16 %v5570_v3, %v5568_v30 }
0x1228   :  { %2358 = vrot.lane.b32.xlu1 %v890_v38, %s5001_s26 }
0x1229   :  { %2364 = vrot.lane.b32.xlu0 %v1134_v25, %s5000_s25 }
0x122c   :  { %2360 = vrot.lane.b32.xlu1 %v891_v54, %s5001_s26 }
0x122d   :  { %2370 = vrot.lane.b32.xlu0 %v1378_v45, %s4999_s3 }
0x1230   :  { %2366 = vrot.lane.b32.xlu1 %v1135_v52, %s5000_s25 }
0x1231   :  { %2376 = vrot.lane.b32.xlu0 %v1622_v36, %s4998_s24  ;;  %v4780_v36 = vld [vmem:[%s6237_s4 + $0x20] sm:$0xff]  }
0x1234   :  { %2372 = vrot.lane.b32.xlu1 %v1379_v10, %s4999_s3  ;;  %v4777_v10 = vld [vmem:[%s6237_s4 + $0x8] sm:$0xff]  }
0x1235   :  { %2382 = vrot.lane.b32.xlu0 %v1866_v41, %s4997_s23 }
0x1238   :  { %2378 = vrot.lane.b32.xlu1 %v1623_v16, %s4998_s24  ;;  %v4783_v16 = vld [vmem:[%s6237_s4 + $0x38] sm:$0xff]  }
0x1239   :  { %2388 = vrot.lane.b32.xlu0 %v2110_v55, %s4996_s22 }
0x123c   :  { %2384 = vrot.lane.b32.xlu1 %v6253_v17, %s4997_s23 }
0x1240   :  { %2390 = vrot.lane.b32.xlu1 %v2111_v28, %s4996_s22 }
0x1289   :  { %v2240_v35 = vpop.xlane.xlu0 %2239 }
0x128b   :  { %v2243_v20 = vpop.xlane.xlu1 %2242 }
0x128c   :  { %4968 = vrcp.f32 %v2243_v20 }
0x128d   :  { %4970 = vrcp.f32 %v2240_v35 }
0x1296   :  { %v4969_v37 = vpop.eup %4968 }
0x1297   :  { %v4971_v51 = vpop.eup %4970  ;;  %v2255_v53 = vmul.f32 %v4969_v37, %v4963_v39 }
0x1298   :  { %v2254_v54 = vmul.f32 %v4971_v51, %v4961_v7 }
0x129a   :  { %v2258_v25 = vpack.c.bf16 %v2255_v53, %v2254_v54 }
0x129c   :  { %v2246_v38 = vpop.xlane.xlu0 %2245 }
0x129d   :  { %4972 = vrcp.f32 %v2246_v38 }
0x12a0   :  { %v2249_v33 = vpop.xlane.xlu1 %2248  ;;  %v2261_v23 = vpop.permute.xlu0 %2260 }
0x12a1   :  { %4974 = vrcp.f32 %v2249_v33  ;;  %4703 = vmatpush3.bf16.msra.mxu1 %v2261_v23 }
0x12a2   :  { %4714 = vmatprep.subr.bf16.mxu1 %v4776_v8 }
0x12a4   :  { %v2308_v46 = vpop.permute.xlu1 %2307  ;;  %4705 = vmatmul.mubr.msk.bf16.vlgmr.msra.gmra.mrb[60].mxu1 %vm393_vm1, %v2258_v25  ;;  %v2365_v0 = vpop.permute.xlu0 %2364 }
0x12a5   :  { %4709 = vmatpush3.bf16.msra.mxu0 %v2308_v46  ;;  %4715 = vmatpush3.bf16.msra.mxu1 %v4776_v8 }
0x12a6   :  { %4716 = vmatprep.subr.bf16.mxu1 %v4777_v10 }
0x12a7   :  { %v4973_v50 = vpop.eup %4972 }
0x12a8   :  { %v2256_v43 = vmul.f32 %v4973_v50, %v4965_v60  ;;  %v2359_v61 = vpop.permute.xlu1 %2358  ;;  %v2371_v1 = vpop.permute.xlu0 %2370 }
0x12a9   :  { %4717 = vmatpush3.bf16.msra.mxu1 %v4777_v10  ;;  %v2400_v39 = vsel %vm393_vm1, %v6255_v4, %v2359_v61 }
0x12aa   :  { %4718 = vmatprep.subr.bf16.mxu1 %v4778_v19  ;;  %v2406_v49 = vsel %vm2404_vm7, %v2400_v39, %v2365_v0 }
0x12ab   :  { %v4975_v52 = vpop.eup %4974  ;;  %v2411_v57 = vsel %vm2409_vm8, %v2406_v49, %v2371_v1 }
0x12ac   :  { %v2257_v44 = vmul.f32 %v4975_v52, %v4967_v48  ;;  %v2361_v29 = vpop.permute.xlu1 %2360  ;;  %v2377_v18 = vpop.permute.xlu0 %2376 }
0x12ad   :  { %4719 = vmatpush3.bf16.msra.mxu1 %v4778_v19  ;;  %v2416_v2 = vsel %vm2414_vm9, %v2411_v57, %v2377_v18  ;;  %v2403_v17 = vsel %vm393_vm1, %v6256_v59, %v2361_v29 }
0x12ae   :  { %v2259_v45 = vpack.c.bf16 %v2257_v44, %v2256_v43  ;;  %4720 = vmatprep.subr.bf16.mxu1 %v4779_v40 }
0x12b0   :  { %4711 = vmatmul.mubr.msk.bf16.vlgmr.msra.gmra.mrb[72].mxu0 %vm393_vm1, %v2259_v45  ;;  %v2367_v7 = vpop.permute.xlu1 %2366  ;;  %v2383_v42 = vpop.permute.xlu0 %2382 }
0x12b1   :  { %3087 = vmatprep.mubr.bf16.mxu0 %v6254_v5  ;;  %4721 = vmatpush3.bf16.msra.mxu1 %v4779_v40  ;;  %v2421_v56 = vsel %vm2419_vm10, %v2416_v2, %v2383_v42  ;;  %v2408_v20 = vsel %vm2404_vm7, %v2403_v17, %v2367_v7  ;;  %v2629_v40 = vld [vmem:[%s6239_s8] sm:$0xff] }
0x12b2   :  { %4722 = vmatprep.subr.bf16.mxu1 %v4780_v36  ;;  %v2649_v2 = vld [vmem:[%s6239_s8 + $0xa0] sm:$0xff] }
0x12b3   :  { %v2653_v17 = vld [vmem:[%s6239_s8 + $0xc0] sm:$0xff] }
0x12b4   :  { %v2373_v6 = vpop.permute.xlu1 %2372  ;;  %v2389_v24 = vpop.permute.xlu0 %2388 }
0x12b5   :  { %4723 = vmatpush3.bf16.msra.mxu1 %v4780_v36  ;;  %v2426_v58 = vsel %vm2424_vm11, %v2421_v56, %v2389_v24  ;;  %v2413_v37 = vsel %vm2409_vm8, %v2408_v20, %v2373_v6  ;;  %v2646_v56 = vld [vmem:[%s6239_s8 + $0x88] sm:$0xff]  ;;  %v2657_v20 = vld [vmem:[%s6239_s8 + $0xe0] sm:$0xff] }
0x12b6   :  { %4724 = vmatprep.subr.bf16.mxu1 %v4781_v63 }
0x12b8   :  { %v2379_v12 = vpop.permute.xlu1 %2378 }
0x12b9   :  { %4725 = vmatpush3.bf16.msra.mxu1 %v4781_v63  ;;  %v2418_v38 = vsel %vm2414_vm9, %v2413_v37, %v2379_v12  ;;  %v2634_v63 = vld [vmem:[%s6239_s8 + $0x28] sm:$0xff]  ;;  %v2645_v12 = vld [vmem:[%s6239_s8 + $0x80] sm:$0xff]  ;;  %v4200_v37 = vcombine.high %v2653_v17, %v2657_v20 }
0x12ba   :  { %4726 = vmatprep.subr.bf16.mxu1 %v4782_v13 }
0x12bc   :  { %v2385_v48 = vpop.permute.xlu1 %2384 }
0x12bd   :  { %4727 = vmatpush3.bf16.msra.mxu1 %v4782_v13  ;;  %v2423_v51 = vsel %vm2419_vm10, %v2418_v38, %v2385_v48  ;;  %v2641_v13 = vld [vmem:[%s6239_s8 + $0x60] sm:$0xff]  ;;  %v2658_v38 = vld [vmem:[%s6239_s8 + $0xe8] sm:$0xff] }
0x12be   :  { %4728 = vmatprep.subr.bf16.mxu1 %v4783_v16 }
0x12c0   :  { %v2391_v35 = vpop.permute.xlu1 %2390 }
0x12c1   :  { %4729 = vmatpush3.bf16.msra.mxu1 %v4783_v16  ;;  %v2428_v53 = vsel %vm2424_vm11, %v2423_v51, %v2391_v35  ;;  %v2654_v35 = vld [vmem:[%s6239_s8 + $0xc8] sm:$0xff]  ;;  %v4199_v51 = vcombine.low %v2653_v17, %v2657_v20 }
0x1377   :  { %v2300_v62 = vpop.f32.mrb[60].mxu1 }
0x1378   :  { %v4706_v21 = vpop.f32.mrb[61].mxu1 }
0x1379   :  { %v2303_v41 = vpop.f32.mrb[62].mxu1 }
0x137a   :  { %v2354_v30 = vpack.c.bf16 %v2303_v41, %v2300_v62  ;;  %v4707_v3 = vpop.f32.mrb[63].mxu1  ;;  %v2638_v41 = vld [vmem:[%s6239_s8 + $0x48] sm:$0xff] }
0x137c   :  { %2394 = vrot.lane.b32.xlu0 %v2354_v30, %s4995_s2  ;;  %v2642_v30 = vld [vmem:[%s6239_s8 + $0x68] sm:$0xff] }
0x137d   :  { %v4186_v3 = vcombine.high %v2638_v41, %v2642_v30 }
0x1383   :  { %v2347_v34 = vpop.f32.mrb[72].mxu0 }
0x1384   :  { %v4712_v22 = vpop.f32.mrb[73].mxu0 }
0x1385   :  { %v2350_v55 = vpop.f32.mrb[74].mxu0  ;;  %v4185_v22 = vcombine.low %v2638_v41, %v2642_v30  ;;  %v2689_v41 = vld [vmem:[%s6239_s8 + $0x1e0] sm:$0xff]  ;;  %v2686_v30 = vld [vmem:[%s6239_s8 + $0x1c8] sm:$0xff] }
0x1386   :  { %v2355_v28 = vpack.c.bf16 %v2350_v55, %v2347_v34  ;;  %v4713_v47 = vpop.f32.mrb[75].mxu0 }
0x1388   :  { %2396 = vrot.lane.b32.xlu1 %v2355_v28, %s4995_s2 }
0x13ee   :  { %v2395_v60 = vpop.permute.xlu0 %2394 }
0x13ef   :  { %v2431_v32 = vsel %vm2429_vm12, %v2426_v58, %v2395_v60  ;;  %v4192_v58 = vcombine.high %v2645_v12, %v2649_v2  ;;  %v2650_v60 = vld [vmem:[%s6239_s8 + $0xa8] sm:$0xff] }
0x13f0   :  { %4730 = vmatprep.mubr.bf16.mxu1 %v2431_v32  ;;  %v4191_v32 = vcombine.low %v2645_v12, %v2649_v2  ;;  %v4193_v48 = vcombine.low %v2646_v56, %v2650_v60  ;;  %v4194_v59 = vcombine.high %v2646_v56, %v2650_v60 }
0x13fa   :  { %v2397_v54 = vpop.permute.xlu1 %2396 }
0x13fb   :  { %v2434_v33 = vsel %vm2429_vm12, %v2428_v53, %v2397_v54  ;;  %v4201_v53 = vcombine.low %v2654_v35, %v2658_v38  ;;  %v4202_v54 = vcombine.high %v2654_v35, %v2658_v38 }
0x13fc   :  { %4731 = vmatmul.mubr.bf16.vlgmr.msra.gmra.mrb[64].mxu1 %v2434_v33  ;;  %v2661_v33 = vld [vmem:[%s6239_s8 + $0x100] sm:$0xff] }
0x13fd   :  { %3140 = vmatprep.mubr.bf16.mxu1 %v6254_v5 }
0x14cf   :  { %v4732_v11 = vpop.f32.mrb[64].mxu1 }
0x14d0   :  { %v2541_v23 = vpop.f32.mrb[65].mxu1  ;;  %v2550_v52 = vadd.f32 %v4732_v11, %v4164_v9  ;;  %v2662_v11 = vld [vmem:[%s6239_s8 + $0x108] sm:$0xff] }
0x14d1   :  { %v2542_v25 = vadd.f32 %v4164_v9, %v2541_v23  ;;  %v4733_v46 = vpop.f32.mrb[66].mxu1 }
0x14d2   :  { %v2544_v50 = vpop.f32.mrb[67].mxu1  ;;  %v2558_v8 = vadd.f32 %v2550_v52, %v5150_v26  ;;  %v2553_v10 = vadd.f32 %v4733_v46, %v4164_v9 }
0x14d3   :  { %v2556_v43 = vadd.f32 %v2542_v25, %v5117_v14  ;;  %v2545_v44 = vadd.f32 %v4164_v9, %v2544_v50  ;;  %v2633_v14 = vld [vmem:[%s6239_s8 + $0x20] sm:$0xff]  ;;  %v2666_v25 = vld [vmem:[%s6239_s8 + $0x128] sm:$0xff] }
0x14d4   :  { %v2559_v19 = vadd.f32 %v2553_v10, %v5152_v27  ;;  %v4175_v36 = vcombine.low %v2629_v40, %v2633_v14  ;;  %v4176_v26 = vcombine.high %v2629_v40, %v2633_v14  ;;  %v2637_v27 = vld [vmem:[%s6239_s8 + $0x40] sm:$0xff]  ;;  %v4209_v50 = vcombine.low %v2662_v11, %v2666_v25  ;;  %v2674_v10 = vld [vmem:[%s6239_s8 + $0x168] sm:$0xff] }
0x14d5   :  { %v2557_v45 = vadd.f32 %v2545_v44, %v5119_v15  ;;  %2560 = vadd.xlane.f32.xlu0 %v2556_v43  ;;  %v2630_v15 = vld [vmem:[%s6239_s8 + $0x8] sm:$0xff]  ;;  %v4184_v21 = vcombine.high %v2637_v27, %v2641_v13  ;;  %v4183_v34 = vcombine.low %v2637_v27, %v2641_v13  ;;  %v2665_v9 = vld [vmem:[%s6239_s8 + $0x120] sm:$0xff]  ;;  %v4210_v52 = vcombine.high %v2662_v11, %v2666_v25  ;;  %v2643_v25 = vld [vmem:[%s6239_s8 + $0x70] sm:$0xff] }
0x14d6   :  { %v4177_v16 = vcombine.low %v2630_v15, %v2634_v63  ;;  %v4178_v62 = vcombine.high %v2630_v15, %v2634_v63  ;;  %3055 = vmatprep.subr.bf16.mxu0 %v4176_v26  ;;  %v4208_v23 = vcombine.high %v2661_v33, %v2665_v9  ;;  %v4207_v46 = vcombine.low %v2661_v33, %v2665_v9  ;;  %v2673_v44 = vld [vmem:[%s6239_s8 + $0x160] sm:$0xff]  ;;  %v2678_v26 = vld [vmem:[%s6239_s8 + $0x188] sm:$0xff] }
0x14d7   :  { %2562 = vadd.xlane.f32.xlu1 %v2557_v45  ;;  %3056 = vmatpush1.bf16.msra.mxu0 %v4175_v36  ;;  %v2677_v15 = vld [vmem:[%s6239_s8 + $0x180] sm:$0xff]  ;;  %v2682_v27 = vld [vmem:[%s6239_s8 + $0x1a8] sm:$0xff] }
0x14d8   :  { %3108 = vmatprep.subr.bf16.mxu1 %v4178_v62  ;;  %3057 = vmatprep.subr.bf16.mxu0 %v4184_v21  ;;  %v2681_v36 = vld [vmem:[%s6239_s8 + $0x1a0] sm:$0xff]  ;;  %v4226_v62 = vcombine.high %v2678_v26, %v2682_v27 }
0x14d9   :  { %2564 = vadd.xlane.f32.xlu0 %v2558_v8  ;;  %3109 = vmatpush1.bf16.msra.mxu1 %v4177_v16  ;;  %v4224_v63 = vcombine.high %v2677_v15, %v2681_v36  ;;  %v4223_v13 = vcombine.low %v2677_v15, %v2681_v36  ;;  %v4225_v16 = vcombine.low %v2678_v26, %v2682_v27  ;;  %v2685_v21 = vld [vmem:[%s6239_s8 + $0x1c0] sm:$0xff] }
0x14da   :  { %3110 = vmatprep.subr.bf16.mxu1 %v4186_v3  ;;  %v4232_v3 = vcombine.high %v2685_v21, %v2689_v41  ;;  %v4174_v9 = vld [vmem:[%s6242_s7] ss:$0 sm:$0xff] }
0x14db   :  { %3058 = vmatpush1.bf16.msra.mxu0 %v4183_v34  ;;  %v2690_v34 = vld [vmem:[%s6239_s8 + $0x1e8] sm:$0xff] }
0x14dc   :  { %3059 = vmatprep.subr.bf16.mxu0 %v4192_v58 }
0x14dd   :  { %2566 = vadd.xlane.f32.xlu0 %v2559_v19  ;;  %3111 = vmatpush1.bf16.msra.mxu1 %v4185_v22  ;;  %v4231_v22 = vcombine.low %v2685_v21, %v2689_v41  ;;  %v2656_v21 = vld [vmem:[%s6239_s8 + $0xd8] sm:$0xff] }
0x14de   :  { %3112 = vmatprep.subr.bf16.mxu1 %v4194_v59  ;;  %v2660_v41 = vld [vmem:[%s6239_s8 + $0xf8] sm:$0xff] }
0x14df   :  { %3060 = vmatpush1.bf16.msra.mxu0 %v4191_v32 }
0x14e0   :  { %3061 = vmatprep.subr.bf16.mxu0 %v4200_v37  ;;  %v4173_v37 = vld [vmem:[%s6241_s6] ss:$0 sm:$0xff] }
0x14e1   :  { %3113 = vmatpush1.bf16.msra.mxu1 %v4193_v48 }
0x14e2   :  { %3114 = vmatprep.subr.bf16.mxu1 %v4202_v54 }
0x14e3   :  { %3062 = vmatpush1.bf16.msra.mxu0 %v4199_v51 }
0x14e4   :  { %3063 = vmatprep.subr.bf16.mxu0 %v4208_v23  ;;  %v2639_v23 = vld [vmem:[%s6239_s8 + $0x50] sm:$0xff] }
0x14e5   :  { %3115 = vmatpush1.bf16.msra.mxu1 %v4201_v53  ;;  %v4187_v36 = vcombine.low %v2639_v23, %v2643_v25 }
0x14e6   :  { %3116 = vmatprep.subr.bf16.mxu1 %v4210_v52 }
0x14e7   :  { %3064 = vmatpush1.bf16.msra.mxu0 %v4207_v46 }
0x14e9   :  { %3117 = vmatpush1.bf16.msra.mxu1 %v4209_v50 }
0x1562   :  { %v2561_v55 = vpop.xlane.xlu0 %2560 }
0x1563   :  { %v2569_v28 = vmul.f32 0.0078125, %v2561_v55  ;;  %v4233_v55 = vcombine.low %v2686_v30, %v2690_v34 }
0x1564   :  { %v2563_v47 = vpop.xlane.xlu1 %2562 }
0x1565   :  { %v5756_v0 = vsub.f32 %v2556_v43, %v2569_v28  ;;  %v2570_v61 = vmul.f32 0.0078125, %v2563_v47  ;;  %v2669_v43 = vld [vmem:[%s6239_s8 + $0x140] sm:$0xff]  ;;  %v4234_v28 = vcombine.high %v2686_v30, %v2690_v34  ;;  %v2631_v47 = vld [vmem:[%s6239_s8 + $0x10] sm:$0xff] }
0x1566   :  { %v2565_v1 = vpop.xlane.xlu0 %2564 }
0x1567   :  { %v5758_v29 = vsub.f32 %v2557_v45, %v2570_v61  ;;  %v2571_v18 = vmul.f32 0.0078125, %v2565_v1  ;;  %v2577_v7 = vmul.f32 %v5756_v0, %v5756_v0  ;;  %v2670_v45 = vld [vmem:[%s6239_s8 + $0x148] sm:$0xff]  ;;  %v2635_v61 = vld [vmem:[%s6239_s8 + $0x30] sm:$0xff]  ;;  %v2632_v1 = vld [vmem:[%s6239_s8 + $0x18] sm:$0xff] }
0x1568   :  { %v4217_v40 = vcombine.low %v2670_v45, %v2674_v10  ;;  %v4218_v14 = vcombine.high %v2670_v45, %v2674_v10 }
0x1569   :  { %v5762_v4 = vsub.f32 %v2558_v8, %v2571_v18  ;;  %2581 = vadd.xlane.f32.xlu0 %v2577_v7  ;;  %v2578_v39 = vmul.f32 %v5758_v29, %v5758_v29  ;;  %v4216_v8 = vcombine.high %v2669_v43, %v2673_v44  ;;  %v4179_v18 = vcombine.low %v2631_v47, %v2635_v61 }
0x156a   :  { %v2567_v42 = vpop.xlane.xlu0 %2566  ;;  %3118 = vmatprep.subr.bf16.mxu1 %v4218_v14  ;;  %v4180_v7 = vcombine.high %v2631_v47, %v2635_v61  ;;  %v2663_v47 = vld [vmem:[%s6239_s8 + $0x110] sm:$0xff] }
0x156b   :  { %v2572_v6 = vmul.f32 0.0078125, %v2567_v42  ;;  %2583 = vadd.xlane.f32.xlu1 %v2578_v39  ;;  %v2579_v49 = vmul.f32 %v5762_v4, %v5762_v4  ;;  %3065 = vmatprep.subr.bf16.mxu0 %v4216_v8  ;;  %v2636_v39 = vld [vmem:[%s6239_s8 + $0x38] sm:$0xff]  ;;  %v4188_v8 = vcombine.high %v2639_v23, %v2643_v25  ;;  %v2667_v61 = vld [vmem:[%s6239_s8 + $0x130] sm:$0xff] }
0x156c   :  { %3119 = vmatpush1.bf16.msra.mxu1 %v4217_v40  ;;  %v4181_v42 = vcombine.low %v2632_v1, %v2636_v39  ;;  %v2648_v40 = vld [vmem:[%s6239_s8 + $0x98] sm:$0xff] }
0x156d   :  { %v5768_v57 = vsub.f32 %v2559_v19, %v2572_v6  ;;  %2585 = vadd.xlane.f32.xlu0 %v2579_v49  ;;  %v4215_v19 = vcombine.low %v2669_v43, %v2673_v44  ;;  %3120 = vmatprep.subr.bf16.mxu1 %v4226_v62  ;;  %v4182_v6 = vcombine.high %v2632_v1, %v2636_v39  ;;  %v2659_v62 = vld [vmem:[%s6239_s8 + $0xf0] sm:$0xff]  ;;  %v2664_v1 = vld [vmem:[%s6239_s8 + $0x118] sm:$0xff] }
0x156e   :  { %v4205_v39 = vcombine.low %v2656_v21, %v2660_v41 }
0x156f   :  { %v2580_v24 = vmul.f32 %v5768_v57, %v5768_v57  ;;  %3066 = vmatpush1.bf16.msra.mxu0 %v4215_v19  ;;  %v2647_v19 = vld [vmem:[%s6239_s8 + $0x90] sm:$0xff] }
0x1570   :  { %3067 = vmatprep.subr.bf16.mxu0 %v4224_v63  ;;  %3121 = vmatpush1.bf16.msra.mxu1 %v4225_v16  ;;  %v2655_v16 = vld [vmem:[%s6239_s8 + $0xd0] sm:$0xff] }
0x1571   :  { %2587 = vadd.xlane.f32.xlu1 %v2580_v24  ;;  %3122 = vmatprep.subr.bf16.mxu1 %v4234_v28  ;;  %v4206_v28 = vcombine.high %v2656_v21, %v2660_v41  ;;  %v4802_v21 = vld [vmem:[%s6240_s10 + $0x20] sm:$0xff]  }
0x1572   :  { %v4803_v41 = vld [vmem:[%s6240_s10 + $0xa0] sm:$0xff]  }
0x1573   :  { %3068 = vmatpush1.bf16.msra.mxu0 %v4223_v13 }
0x1574   :  { %3069 = vmatprep.subr.bf16.mxu0 %v4232_v3  ;;  %3123 = vmatpush1.bf16.msra.mxu1 %v4233_v55  ;;  %v4204_v55 = vcombine.high %v2655_v16, %v2659_v62 }
0x1575   :  { %3214 = vmatprep.subr.bf16.mxu1 %v4182_v6 }
0x1577   :  { %3070 = vmatpush1.bf16.msra.mxu0 %v4231_v22 }
0x1578   :  { %3161 = vmatprep.subr.bf16.mxu0 %v4180_v7  ;;  %v4203_v7 = vcombine.low %v2655_v16, %v2659_v62  ;;  %v4800_v16 = vld [vmem:[%s6240_s10 + $0x60] sm:$0xff]  }
0x1579   :  { %v4801_v62 = vld [vmem:[%s6240_s10 + $0xe0] sm:$0xff]  }
0x15f6   :  { %v2582_v49 = vpop.xlane.xlu0 %2581 }
0x15f7   :  { %v2589_v24 = vmul.f32 0.0078125, %v2582_v49  ;;  %v2671_v49 = vld [vmem:[%s6239_s8 + $0x150] sm:$0xff] }
0x15f8   :  { %v2584_v12 = vpop.xlane.xlu1 %2583 }
0x15f9   :  { %v2593_v2 = vadd.f32 1e-05, %v2589_v24  ;;  %v2590_v56 = vmul.f32 0.0078125, %v2584_v12  ;;  %v2675_v24 = vld [vmem:[%s6239_s8 + $0x170] sm:$0xff]  ;;  %v2672_v12 = vld [vmem:[%s6239_s8 + $0x158] sm:$0xff] }
0x15fa   :  { %v2586_v58 = vpop.xlane.xlu0 %2585 }
0x15fb   :  { %4976 = vrsqrt.f32 %v2593_v2  ;;  %v2594_v60 = vadd.f32 1e-05, %v2590_v56  ;;  %v2591_v32 = vmul.f32 0.0078125, %v2586_v58  ;;  %v2676_v2 = vld [vmem:[%s6239_s8 + $0x178] sm:$0xff]  ;;  %v4211_v56 = vcombine.low %v2663_v47, %v2667_v61 }
0x15fd   :  { %4978 = vrsqrt.f32 %v2594_v60  ;;  %v2595_v48 = vadd.f32 1e-05, %v2591_v32  ;;  %v4220_v60 = vcombine.high %v2671_v49, %v2675_v24  ;;  %v4222_v32 = vcombine.high %v2672_v12, %v2676_v2 }
0x15fe   :  { %v2588_v59 = vpop.xlane.xlu1 %2587 }
0x15ff   :  { %4980 = vrsqrt.f32 %v2595_v48  ;;  %v2592_v17 = vmul.f32 0.0078125, %v2588_v59  ;;  %v2679_v48 = vld [vmem:[%s6239_s8 + $0x190] sm:$0xff] }
0x1600   :  { %v2683_v59 = vld [vmem:[%s6239_s8 + $0x1b0] sm:$0xff] }
0x1601   :  { %v2596_v20 = vadd.f32 1e-05, %v2592_v17  ;;  %v2680_v17 = vld [vmem:[%s6239_s8 + $0x198] sm:$0xff] }
0x1603   :  { %4982 = vrsqrt.f32 %v2596_v20  ;;  %v2684_v20 = vld [vmem:[%s6239_s8 + $0x1b8] sm:$0xff] }
0x1604   :  { %v4229_v23 = vcombine.low %v2680_v17, %v2684_v20 }
0x1605   :  { %v4977_v35 = vpop.eup %4976 }
0x1606   :  { %v2601_v38 = vmul.f32 %v4977_v35, %v5756_v0  ;;  %v2640_v0 = vld [vmem:[%s6239_s8 + $0x58] sm:$0xff]  ;;  %v4219_v35 = vcombine.low %v2671_v49, %v2675_v24  ;;  %v4817_v49 = vld [vmem:[%s6240_s10 + $0x1c0] sm:$0xff]  }
0x1607   :  { %v4979_v51 = vpop.eup %4978  ;;  %v6085_v24 = vld [vmem:[%s6243_s9] sm:$0xff] }
0x1608   :  { %v2602_v53 = vmul.f32 %v4979_v51, %v5758_v29  ;;  %v2612_v54 = vmul.f32 %v4173_v37, %v2601_v38  ;;  %v2644_v29 = vld [vmem:[%s6239_s8 + $0x78] sm:$0xff]  ;;  %v4228_v38 = vcombine.high %v2679_v48, %v2683_v59  ;;  %v4230_v51 = vcombine.high %v2680_v17, %v2684_v20 }
0x1609   :  { %v4981_v33 = vpop.eup %4980  ;;  %v4190_v10 = vcombine.high %v2640_v0, %v2644_v29  ;;  %v4189_v26 = vcombine.low %v2640_v0, %v2644_v29 }
0x160a   :  { %v2613_v11 = vmul.f32 %v4173_v37, %v2602_v53  ;;  %v2603_v46 = vmul.f32 %v4981_v33, %v5762_v4  ;;  %v5877_v50 = vadd.f32 %v4174_v9, %v2612_v54  ;;  %v2651_v4 = vld [vmem:[%s6239_s8 + $0xb0] sm:$0xff]  ;;  %v2688_v33 = vld [vmem:[%s6239_s8 + $0x1d8] sm:$0xff] }
0x160b   :  { %v4196_v63 = vcombine.high %v2647_v19, %v2651_v4  ;;  %v4195_v3 = vcombine.low %v2647_v19, %v2651_v4  ;;  %v2687_v53 = vld [vmem:[%s6239_s8 + $0x1d0] sm:$0xff]  ;;  %v4788_v19 = vld [vmem:[%s6240_s10 + $0x48] sm:$0xff]  }
0x160c   :  { %v5879_v52 = vadd.f32 %v4174_v9, %v2613_v11  ;;  %v2614_v14 = vmul.f32 %v4173_v37, %v2603_v46  ;;  %v2691_v54 = vld [vmem:[%s6239_s8 + $0x1f0] sm:$0xff]  ;;  %v4227_v11 = vcombine.low %v2679_v48, %v2683_v59  ;;  %v4789_v4 = vld [vmem:[%s6240_s10 + $0xc8] sm:$0xff]  }
0x160d   :  { %v4983_v43 = vpop.eup %4982  ;;  %v4236_v25 = vcombine.high %v2687_v53, %v2691_v54  ;;  %v4235_v29 = vcombine.low %v2687_v53, %v2691_v54 }
0x160e   :  { %v2604_v44 = vmul.f32 %v4983_v43, %v5768_v57  ;;  %v5884_v45 = vpack.c.bf16 %v5879_v52, %v5877_v50  ;;  %v2652_v57 = vld [vmem:[%s6239_s8 + $0xb8] sm:$0xff]  ;;  %v5916_v30 = vadd.f32 %v4174_v9, %v2614_v14  ;;  %v4784_v43 = vld [vmem:[%s6240_s10 + $0x40] sm:$0xff]   ;;  %v4794_v14 = vld [vmem:[%s6240_s10 + $0x10] sm:$0xff]  }
0x160f   :  { %v4198_v27 = vcombine.high %v2648_v40, %v2652_v57  ;;  %v4197_v34 = vcombine.low %v2648_v40, %v2652_v57  ;;  %v4790_v40 = vld [vmem:[%s6240_s10 + $0x8] sm:$0xff]  }
0x1610   :  { %3088 = vmatmul.mubr.bf16.vlgmr.msra.gmra.mrb[76].mxu0 %v5884_v45  ;;  %3141 = vmatmul.mubr.bf16.vlgmr.msra.gmra.mrb[68].mxu1 %v5884_v45  ;;  %v2615_v15 = vmul.f32 %v4173_v37, %v2604_v44  ;;  %v4221_v37 = vcombine.low %v2672_v12, %v2676_v2  ;;  %v4785_v44 = vld [vmem:[%s6240_s10 + $0xc0] sm:$0xff]   ;;  %v4791_v57 = vld [vmem:[%s6240_s10 + $0x88] sm:$0xff]   ;;  %v2709_v12 = vsub.s32 3, %v5164_v31  ;;  %v6257_v2 = vsub.s32 0, %v5164_v31 }
0x1611   :  { %3162 = vmatpush1.bf16.msra.mxu0 %v4179_v18  ;;  %3215 = vmatpush1.bf16.msra.mxu1 %v4181_v42  ;;  %v2668_v18 = vld [vmem:[%s6239_s8 + $0x138] sm:$0xff]  ;;  %v4212_v42 = vcombine.high %v2663_v47, %v2667_v61  ;;  %v4809_v47 = vld [vmem:[%s6240_s10 + $0xf0] sm:$0xff]  }
0x1612   :  { %3163 = vmatprep.subr.bf16.mxu0 %v4188_v8  ;;  %3216 = vmatprep.subr.bf16.mxu1 %v4190_v10  ;;  %v5900_v13 = vadd.f32 %v4174_v9, %v2615_v15  ;;  %v4214_v6 = vcombine.high %v2664_v1, %v2668_v18  ;;  %v4213_v58 = vcombine.low %v2664_v1, %v2668_v18  ;;  %v2692_v9 = vld [vmem:[%s6239_s8 + $0x1f8] sm:$0xff]  ;;  %v4786_v8 = vld [vmem:[%s6240_s10] sm:$0xff]   ;;  %v4795_v15 = vld [vmem:[%s6240_s10 + $0x90] sm:$0xff]  }
0x1613   :  { %3097 = vmatprep.mubr.bf16.mxu0 %v6254_v5  ;;  %3150 = vmatprep.mubr.bf16.mxu1 %v6254_v5  ;;  %v4238_v0 = vcombine.high %v2688_v33, %v2692_v9  ;;  %v4237_v46 = vcombine.low %v2688_v33, %v2692_v9  ;;  %v4787_v10 = vld [vmem:[%s6240_s10 + $0x80] sm:$0xff]   ;;  %v4810_v61 = vld [vmem:[%s6240_s10 + $0x30] sm:$0xff]   ;;  %v4812_v18 = vld [vmem:[%s6240_s10 + $0x78] sm:$0xff]   ;;  %v2710_v59 = vrot.slane %v6085_v24, %v2709_v12 }
0x1614   :  { %v5920_v22 = vpack.c.bf16 %v5900_v13, %v5916_v30  ;;  %v4811_v1 = vld [vmem:[%s6240_s10 + $0xb0] sm:$0xff]  }
0x1615   :  { %3164 = vmatpush1.bf16.msra.mxu0 %v4187_v36  ;;  %3217 = vmatpush1.bf16.msra.mxu1 %v4189_v26  ;;  %v4796_v36 = vld [vmem:[%s6240_s10 + $0x58] sm:$0xff]  }
0x1616   :  { %3165 = vmatprep.subr.bf16.mxu0 %v4196_v63  ;;  %3218 = vmatprep.subr.bf16.mxu1 %v4198_v27  ;;  %v4797_v26 = vld [vmem:[%s6240_s10 + $0xd8] sm:$0xff]  }
0x1617   :  { %v4798_v63 = vld [vmem:[%s6240_s10 + $0x18] sm:$0xff]  }
0x1618   :  { %3098 = vmatmul.mubr.bf16.gmra.mrb[80].mxu0 %v5920_v22  ;;  %3151 = vmatmul.mubr.bf16.gmra.mrb[72].mxu1 %v5920_v22  ;;  %v4799_v27 = vld [vmem:[%s6240_s10 + $0x98] sm:$0xff]  }
0x1619   :  { %3166 = vmatpush1.bf16.msra.mxu0 %v4195_v3  ;;  %3219 = vmatpush1.bf16.msra.mxu1 %v4197_v34  ;;  %v4804_v3 = vld [vmem:[%s6240_s10 + $0x68] sm:$0xff]  }
0x161a   :  { %3167 = vmatprep.subr.bf16.mxu0 %v4204_v55  ;;  %3220 = vmatprep.subr.bf16.mxu1 %v4206_v28  ;;  %v4805_v34 = vld [vmem:[%s6240_s10 + $0xe8] sm:$0xff]   ;;  %v4808_v28 = vld [vmem:[%s6240_s10 + $0x70] sm:$0xff]  }
0x161b   :  { %3193 = vmatprep.mubr.bf16.mxu0 %v6254_v5  ;;  %3246 = vmatprep.mubr.bf16.mxu1 %v6254_v5  ;;  %v4807_v55 = vld [vmem:[%s6240_s10 + $0xa8] sm:$0xff]  }
0x161d   :  { %3168 = vmatpush1.bf16.msra.mxu0 %v4203_v7  ;;  %3221 = vmatpush1.bf16.msra.mxu1 %v4205_v39  ;;  %v4813_v7 = vld [vmem:[%s6240_s10 + $0xf8] sm:$0xff]  }
0x161e   :  { %3169 = vmatprep.subr.bf16.mxu0 %v4212_v42  ;;  %3222 = vmatprep.subr.bf16.mxu1 %v4214_v6  ;;  %v4814_v39 = vld [vmem:[%s6240_s10 + $0x38] sm:$0xff]   ;;  %v4816_v6 = vld [vmem:[%s6240_s10 + $0x140] sm:$0xff]  }
0x161f   :  { %v4815_v42 = vld [vmem:[%s6240_s10 + $0xb8] sm:$0xff]  }
0x1621   :  { %3170 = vmatpush1.bf16.msra.mxu0 %v4211_v56  ;;  %3223 = vmatpush1.bf16.msra.mxu1 %v4213_v58  ;;  %v2698_v56 = vrot.slane %v6085_v24, %v6257_v2  ;;  %v6258_v58 = vsub.s32 2, %v5164_v31 }
0x1622   :  { %3171 = vmatprep.subr.bf16.mxu0 %v4220_v60  ;;  %3224 = vmatprep.subr.bf16.mxu1 %v4222_v32  ;;  %v6259_v32 = vsub.s32 1, %v5164_v31 }
0x1623   :  { %v2706_v60 = vrot.slane %v6085_v24, %v6258_v58 }
0x1624   :  { %v2702_v48 = vrot.slane %v6085_v24, %v6259_v32  ;;  %v4825_v32 = vld [vmem:[%s6240_s10 + $0x1d0] sm:$0xff]  }
0x1625   :  { %3172 = vmatpush1.bf16.msra.mxu0 %v4219_v35  ;;  %3225 = vmatpush1.bf16.msra.mxu1 %v4221_v37 }
0x1626   :  { %3173 = vmatprep.subr.bf16.mxu0 %v4228_v38  ;;  %3226 = vmatprep.subr.bf16.mxu1 %v4230_v51 }
0x1629   :  { %3174 = vmatpush1.bf16.msra.mxu0 %v4227_v11  ;;  %3227 = vmatpush1.bf16.msra.mxu1 %v4229_v23 }
0x162a   :  { %3175 = vmatprep.subr.bf16.mxu0 %v4236_v25  ;;  %3228 = vmatprep.subr.bf16.mxu1 %v4238_v0 }
0x162d   :  { %3176 = vmatpush1.bf16.msra.mxu0 %v4235_v29  ;;  %3229 = vmatpush1.bf16.msra.mxu1 %v4237_v46 }
0x162e   :  { %4390 = vmatprep.subr.bf16.mxu0 %v4784_v43  ;;  %4418 = vmatprep.subr.bf16.mxu1 %v4785_v44 }
0x1630   :  { %3194 = vmatmul.mubr.bf16.vlgmr.msra.gmra.mrb[84].mxu0 %v5884_v45  ;;  %3247 = vmatmul.mubr.bf16.vlgmr.msra.gmra.mrb[76].mxu1 %v5884_v45  ;;  %v4792_v45 = vld [vmem:[%s6240_s10 + $0x50] sm:$0xff]  }
0x1631   :  { %3203 = vmatprep.mubr.bf16.mxu0 %v6254_v5  ;;  %3256 = vmatprep.mubr.bf16.mxu1 %v6254_v5  ;;  %v4793_v5 = vld [vmem:[%s6240_s10 + $0xd0] sm:$0xff]  }
0x1632   :  { %4391 = vmatpush3.bf16.msra.mxu0 %v4786_v8  ;;  %4419 = vmatpush3.bf16.msra.mxu1 %v4787_v10 }
0x1633   :  { %4392 = vmatprep.subr.bf16.mxu0 %v4788_v19  ;;  %4420 = vmatprep.subr.bf16.mxu1 %v4789_v4 }
0x1636   :  { %4393 = vmatpush3.bf16.msra.mxu0 %v4790_v40  ;;  %4421 = vmatpush3.bf16.msra.mxu1 %v4791_v57 }
0x1637   :  { %4394 = vmatprep.subr.bf16.mxu0 %v4792_v45  ;;  %4422 = vmatprep.subr.bf16.mxu1 %v4793_v5 }
0x1638   :  { %3204 = vmatmul.mubr.bf16.gmra.mrb[88].mxu0 %v5920_v22  ;;  %3257 = vmatmul.mubr.bf16.gmra.mrb[80].mxu1 %v5920_v22  ;;  %v4806_v22 = vld [vmem:[%s6240_s10 + $0x28] sm:$0xff]  }
0x163a   :  { %4395 = vmatpush3.bf16.msra.mxu0 %v4794_v14  ;;  %4423 = vmatpush3.bf16.msra.mxu1 %v4795_v15 }
0x163b   :  { %4396 = vmatprep.subr.bf16.mxu0 %v4796_v36  ;;  %4424 = vmatprep.subr.bf16.mxu1 %v4797_v26 }
0x163e   :  { %4397 = vmatpush3.bf16.msra.mxu0 %v4798_v63  ;;  %4425 = vmatpush3.bf16.msra.mxu1 %v4799_v27  ;;  %v4818_v63 = vld [vmem:[%s6240_s10 + $0x100] sm:$0xff]  }
0x163f   :  { %4398 = vmatprep.subr.bf16.mxu0 %v4800_v16  ;;  %4426 = vmatprep.subr.bf16.mxu1 %v4801_v62  ;;  %v4819_v27 = vld [vmem:[%s6240_s10 + $0x180] sm:$0xff]  }
0x1642   :  { %4399 = vmatpush3.bf16.msra.mxu0 %v4802_v21  ;;  %4427 = vmatpush3.bf16.msra.mxu1 %v4803_v41 }
0x1643   :  { %4400 = vmatprep.subr.bf16.mxu0 %v4804_v3  ;;  %4428 = vmatprep.subr.bf16.mxu1 %v4805_v34  ;;  %v4820_v3 = vld [vmem:[%s6240_s10 + $0x148] sm:$0xff]  }
0x1644   :  { %v4821_v34 = vld [vmem:[%s6240_s10 + $0x1c8] sm:$0xff]  }
0x1646   :  { %4401 = vmatpush3.bf16.msra.mxu0 %v4806_v22  ;;  %4429 = vmatpush3.bf16.msra.mxu1 %v4807_v55 }
0x1647   :  { %4402 = vmatprep.subr.bf16.mxu0 %v4808_v28  ;;  %4430 = vmatprep.subr.bf16.mxu1 %v4809_v47 }
0x164a   :  { %4403 = vmatpush3.bf16.msra.mxu0 %v4810_v61  ;;  %4431 = vmatpush3.bf16.msra.mxu1 %v4811_v1 }
0x164b   :  { %4404 = vmatprep.subr.bf16.mxu0 %v4812_v18  ;;  %4432 = vmatprep.subr.bf16.mxu1 %v4813_v7 }
0x164e   :  { %4405 = vmatpush3.bf16.msra.mxu0 %v4814_v39  ;;  %4433 = vmatpush3.bf16.msra.mxu1 %v4815_v42 }
0x164f   :  { %4446 = vmatprep.subr.bf16.mxu0 %v4816_v6  ;;  %4474 = vmatprep.subr.bf16.mxu1 %v4817_v49  ;;  %v4822_v6 = vld [vmem:[%s6240_s10 + $0x108] sm:$0xff]  }
0x1650   :  { %v4823_v49 = vld [vmem:[%s6240_s10 + $0x188] sm:$0xff]  }
0x16e3   :  { %v3089_v17 = vpop.f32.mrb[76].mxu0  ;;  %v3142_v20 = vpop.f32.mrb[68].mxu1 }
0x16e4   :  { %v3090_v35 = vadd.f32 %v3089_v17, %v2698_v56  ;;  %v3143_v37 = vadd.f32 %v3142_v20, %v2706_v60  ;;  %v3091_v38 = vpop.f32.mrb[77].mxu0  ;;  %v3144_v51 = vpop.f32.mrb[69].mxu1 }
0x16e5   :  { %v3092_v53 = vadd.f32 %v3091_v38, %v2702_v48  ;;  %v3145_v54 = vadd.f32 %v3144_v51, %v2710_v59  ;;  %v3093_v33 = vpop.f32.mrb[78].mxu0  ;;  %v3146_v9 = vpop.f32.mrb[70].mxu1 }
0x16e6   :  { %v3094_v11 = vadd.f32 %v3093_v33, %v2698_v56  ;;  %v3147_v23 = vadd.f32 %v3146_v9, %v2706_v60  ;;  %v3095_v25 = vpop.f32.mrb[79].mxu0  ;;  %v3148_v0 = vpop.f32.mrb[71].mxu1  ;;  %v3267_v43 = vmax.f32 %v3090_v35, 0.0  ;;  %v3269_v44 = vmax.f32 %v3143_v37, 0.0  ;;  %v4828_v33 = vld [vmem:[%s6240_s10 + $0x158] sm:$0xff]  }
0x16e7   :  { %v3096_v29 = vadd.f32 %v3095_v25, %v2702_v48  ;;  %v3149_v46 = vadd.f32 %v3148_v0, %v2710_v59  ;;  %v3268_v19 = vmax.f32 %v3092_v53, 0.0  ;;  %v3270_v4 = vmax.f32 %v3145_v54, 0.0  ;;  %v4826_v53 = vld [vmem:[%s6240_s10 + $0x110] sm:$0xff]   ;;  %v4829_v9 = vld [vmem:[%s6240_s10 + $0x1d8] sm:$0xff]   ;;  %v4832_v25 = vld [vmem:[%s6240_s10 + $0x160] sm:$0xff]  }
0x16e8   :  { %v3275_v8 = vmax.f32 %v3094_v11, 0.0  ;;  %v3277_v10 = vmax.f32 %v3147_v23, 0.0  ;;  %v4827_v54 = vld [vmem:[%s6240_s10 + $0x190] sm:$0xff]   ;;  %v4830_v11 = vld [vmem:[%s6240_s10 + $0x118] sm:$0xff]   ;;  %v4833_v0 = vld [vmem:[%s6240_s10 + $0x1e0] sm:$0xff]  }
0x16e9   :  { %v3276_v40 = vmax.f32 %v3096_v29, 0.0  ;;  %v3278_v57 = vmax.f32 %v3149_v46, 0.0  ;;  %v4831_v23 = vld [vmem:[%s6240_s10 + $0x198] sm:$0xff]   ;;  %v4834_v29 = vld [vmem:[%s6240_s10 + $0x120] sm:$0xff]  }
0x16ea   :  { %v3299_v45 = vpack.c.bf16 %v3275_v8, %v3267_v43  ;;  %v3301_v5 = vpack.c.bf16 %v3277_v10, %v3269_v44  ;;  %v4835_v46 = vld [vmem:[%s6240_s10 + $0x1a0] sm:$0xff]   ;;  %v4836_v43 = vld [vmem:[%s6240_s10 + $0x168] sm:$0xff]   ;;  %v2713_v8 = vsub.s32 4, %v5164_v31  ;;  %v2721_v10 = vsub.s32 6, %v5164_v31 }
0x16eb   :  { %v3300_v14 = vpack.c.bf16 %v3276_v40, %v3268_v19  ;;  %v3302_v15 = vpack.c.bf16 %v3278_v57, %v3270_v4  ;;  %v3099_v36 = vpop.f32.mrb[80].mxu0  ;;  %v3152_v26 = vpop.f32.mrb[72].mxu1  ;;  %v4837_v44 = vld [vmem:[%s6240_s10 + $0x1e8] sm:$0xff]   ;;  %v2717_v19 = vsub.s32 5, %v5164_v31  ;;  %v2725_v4 = vsub.s32 7, %v5164_v31  ;;  %v4840_v31 = vld [vmem:[%s6240_s10 + $0x170] sm:$0xff]  }
0x16ec   :  { %v3100_v16 = vadd.f32 %v3099_v36, %v2698_v56  ;;  %v3153_v62 = vadd.f32 %v3152_v26, %v2706_v60  ;;  %v3101_v21 = vpop.f32.mrb[81].mxu0  ;;  %v3154_v41 = vpop.f32.mrb[73].mxu1  ;;  %v4838_v40 = vld [vmem:[%s6240_s10 + $0x128] sm:$0xff]  }
0x16ed   :  { %v3102_v22 = vadd.f32 %v3101_v21, %v2702_v48  ;;  %v3155_v55 = vadd.f32 %v3154_v41, %v2710_v59  ;;  %v3103_v28 = vpop.f32.mrb[82].mxu0  ;;  %v3156_v47 = vpop.f32.mrb[74].mxu1  ;;  %3866 = vmatprep.mubr.bf16.mxu0 %v3300_v14  ;;  %3915 = vmatprep.mubr.bf16.mxu1 %v3302_v15  ;;  %v4839_v57 = vld [vmem:[%s6240_s10 + $0x1a8] sm:$0xff]   ;;  %v4841_v14 = vld [vmem:[%s6240_s10 + $0x1f0] sm:$0xff]   ;;  %v6177_v15 = vrot.slane %v6085_v24, %v2717_v19 }
0x16ee   :  { %v3104_v61 = vadd.f32 %v3103_v28, %v2698_v56  ;;  %v3157_v1 = vadd.f32 %v3156_v47, %v2706_v60  ;;  %v3105_v18 = vpop.f32.mrb[83].mxu0  ;;  %v3158_v7 = vpop.f32.mrb[75].mxu1  ;;  %3867 = vmatmul.mubr.bf16.vlgmr.msra.gmra.mrb[92].mxu0 %v3299_v45  ;;  %3916 = vmatmul.mubr.bf16.vlgmr.msra.gmra.mrb[84].mxu1 %v3301_v5  ;;  %v3283_v12 = vmax.f32 %v3100_v16, 0.0  ;;  %v3285_v2 = vmax.f32 %v3153_v62, 0.0  ;;  %v4824_v60 = vld [vmem:[%s6240_s10 + $0x150] sm:$0xff]  }
0x16ef   :  { %v3106_v39 = vadd.f32 %v3105_v18, %v2702_v48  ;;  %v3159_v42 = vadd.f32 %v3158_v7, %v2710_v59  ;;  %4447 = vmatpush3.bf16.msra.mxu0 %v4818_v63  ;;  %4475 = vmatpush3.bf16.msra.mxu1 %v4819_v27  ;;  %v3284_v48 = vmax.f32 %v3102_v22, 0.0  ;;  %v3286_v59 = vmax.f32 %v3155_v55, 0.0  ;;  %v4842_v27 = vld [vmem:[%s6240_s10 + $0x130] sm:$0xff]  }
0x16f0   :  { %v3291_v56 = vmax.f32 %v3104_v61, 0.0  ;;  %v3293_v58 = vmax.f32 %v3157_v1, 0.0  ;;  %4448 = vmatprep.subr.bf16.mxu0 %v4820_v3  ;;  %4476 = vmatprep.subr.bf16.mxu1 %v4821_v34  ;;  %v2714_v45 = vrot.slane %v6085_v24, %v2713_v8  ;;  %v2722_v5 = vrot.slane %v6085_v24, %v2721_v10  ;;  %v4843_v16 = vld [vmem:[%s6240_s10 + $0x1b0] sm:$0xff]   ;;  %v4845_v34 = vld [vmem:[%s6240_s10 + $0x1f8] sm:$0xff]  }
0x16f1   :  { %v3292_v17 = vmax.f32 %v3106_v39, 0.0  ;;  %v3294_v20 = vmax.f32 %v3159_v42, 0.0  ;;  %v6180_v36 = vrot.slane %v6085_v24, %v2725_v4  ;;  %v4844_v24 = vld [vmem:[%s6240_s10 + $0x178] sm:$0xff]  }
0x16f2   :  { %v3307_v35 = vpack.c.bf16 %v3291_v56, %v3283_v12  ;;  %v3309_v37 = vpack.c.bf16 %v3293_v58, %v3285_v2 }
0x16f3   :  { %v3308_v38 = vpack.c.bf16 %v3292_v17, %v3284_v48  ;;  %v3310_v51 = vpack.c.bf16 %v3294_v20, %v3286_v59  ;;  %4449 = vmatpush3.bf16.msra.mxu0 %v4822_v6  ;;  %4477 = vmatpush3.bf16.msra.mxu1 %v4823_v49  ;;  %v4846_v6 = vld [vmem:[%s6240_s10 + $0x138] sm:$0xff]  }
0x16f4   :  { %4450 = vmatprep.subr.bf16.mxu0 %v4824_v60  ;;  %4478 = vmatprep.subr.bf16.mxu1 %v4825_v32  ;;  %v4847_v49 = vld [vmem:[%s6240_s10 + $0x1b8] sm:$0xff]  }
0x16f5   :  { %3874 = vmatprep.mubr.bf16.mxu0 %v3308_v38  ;;  %3923 = vmatprep.mubr.bf16.mxu1 %v3310_v51 }
0x16f6   :  { %3875 = vmatmul.mubr.bf16.gmra.mrb[96].mxu0 %v3307_v35  ;;  %3924 = vmatmul.mubr.bf16.gmra.mrb[88].mxu1 %v3309_v37 }
0x16f7   :  { %4451 = vmatpush3.bf16.msra.mxu0 %v4826_v53  ;;  %4479 = vmatpush3.bf16.msra.mxu1 %v4827_v54 }
0x16f8   :  { %4452 = vmatprep.subr.bf16.mxu0 %v4828_v33  ;;  %4480 = vmatprep.subr.bf16.mxu1 %v4829_v9 }
0x16fb   :  { %4453 = vmatpush3.bf16.msra.mxu0 %v4830_v11  ;;  %4481 = vmatpush3.bf16.msra.mxu1 %v4831_v23 }
0x16fc   :  { %4454 = vmatprep.subr.bf16.mxu0 %v4832_v25  ;;  %4482 = vmatprep.subr.bf16.mxu1 %v4833_v0 }
0x16ff   :  { %4455 = vmatpush3.bf16.msra.mxu0 %v4834_v29  ;;  %4483 = vmatpush3.bf16.msra.mxu1 %v4835_v46 }
0x1700   :  { %4456 = vmatprep.subr.bf16.mxu0 %v4836_v43  ;;  %4484 = vmatprep.subr.bf16.mxu1 %v4837_v44 }
0x1703   :  { %v3195_v26 = vpop.f32.mrb[84].mxu0  ;;  %v3248_v63 = vpop.f32.mrb[76].mxu1  ;;  %4457 = vmatpush3.bf16.msra.mxu0 %v4838_v40  ;;  %4485 = vmatpush3.bf16.msra.mxu1 %v4839_v57 }
0x1704   :  { %v3196_v62 = vadd.f32 %v3195_v26, %v2714_v45  ;;  %v3249_v21 = vadd.f32 %v3248_v63, %v2722_v5  ;;  %v3197_v41 = vpop.f32.mrb[85].mxu0  ;;  %v3250_v3 = vpop.f32.mrb[77].mxu1  ;;  %4458 = vmatprep.subr.bf16.mxu0 %v4840_v31  ;;  %4486 = vmatprep.subr.bf16.mxu1 %v4841_v14 }
0x1705   :  { %v3198_v22 = vadd.f32 %v3197_v41, %v6177_v15  ;;  %v3251_v55 = vadd.f32 %v3250_v3, %v6180_v36  ;;  %v3199_v28 = vpop.f32.mrb[86].mxu0  ;;  %v3252_v47 = vpop.f32.mrb[78].mxu1 }
0x1706   :  { %v3200_v61 = vadd.f32 %v3199_v28, %v2714_v45  ;;  %v3253_v1 = vadd.f32 %v3252_v47, %v2722_v5  ;;  %v3201_v18 = vpop.f32.mrb[87].mxu0  ;;  %v3254_v7 = vpop.f32.mrb[79].mxu1  ;;  %v3271_v12 = vmax.f32 %v3196_v62, 0.0  ;;  %v3273_v2 = vmax.f32 %v3249_v21, 0.0 }
0x1707   :  { %v3202_v39 = vadd.f32 %v3201_v18, %v6177_v15  ;;  %v3255_v42 = vadd.f32 %v3254_v7, %v6180_v36  ;;  %4459 = vmatpush3.bf16.msra.mxu0 %v4842_v27  ;;  %4487 = vmatpush3.bf16.msra.mxu1 %v4843_v16  ;;  %v3272_v60 = vmax.f32 %v3198_v22, 0.0  ;;  %v3274_v32 = vmax.f32 %v3251_v55, 0.0 }
0x1708   :  { %v3279_v56 = vmax.f32 %v3200_v61, 0.0  ;;  %v3281_v58 = vmax.f32 %v3253_v1, 0.0  ;;  %4460 = vmatprep.subr.bf16.mxu0 %v4844_v24  ;;  %4488 = vmatprep.subr.bf16.mxu1 %v4845_v34 }
0x1709   :  { %v3280_v48 = vmax.f32 %v3202_v39, 0.0  ;;  %v3282_v59 = vmax.f32 %v3255_v42, 0.0 }
0x170a   :  { %v3303_v17 = vpack.c.bf16 %v3279_v56, %v3271_v12  ;;  %v3305_v20 = vpack.c.bf16 %v3281_v58, %v3273_v2 }
0x170b   :  { %v3304_v35 = vpack.c.bf16 %v3280_v48, %v3272_v60  ;;  %v3306_v37 = vpack.c.bf16 %v3282_v59, %v3274_v32  ;;  %v3205_v38 = vpop.f32.mrb[88].mxu0  ;;  %v3258_v51 = vpop.f32.mrb[80].mxu1  ;;  %4461 = vmatpush3.bf16.msra.mxu0 %v4846_v6  ;;  %4489 = vmatpush3.bf16.msra.mxu1 %v4847_v49 }
0x170c   :  { %v3206_v53 = vadd.f32 %v3205_v38, %v2714_v45  ;;  %v3259_v54 = vadd.f32 %v3258_v51, %v2722_v5  ;;  %v3207_v33 = vpop.f32.mrb[89].mxu0  ;;  %v3260_v9 = vpop.f32.mrb[81].mxu1 }
0x170d   :  { %v3208_v11 = vadd.f32 %v3207_v33, %v6177_v15  ;;  %v3261_v23 = vadd.f32 %v3260_v9, %v6180_v36  ;;  %v3209_v25 = vpop.f32.mrb[90].mxu0  ;;  %v3262_v0 = vpop.f32.mrb[82].mxu1  ;;  %3964 = vmatprep.mubr.bf16.mxu0 %v3304_v35  ;;  %4013 = vmatprep.mubr.bf16.mxu1 %v3306_v37 }
0x170e   :  { %v3210_v29 = vadd.f32 %v3209_v25, %v2714_v45  ;;  %v3263_v46 = vadd.f32 %v3262_v0, %v2722_v5  ;;  %v3211_v43 = vpop.f32.mrb[91].mxu0  ;;  %v3264_v44 = vpop.f32.mrb[83].mxu1  ;;  %3965 = vmatmul.mubr.bf16.vlgmr.msra.gmra.mrb[100].mxu0 %v3303_v17  ;;  %4014 = vmatmul.mubr.bf16.vlgmr.msra.gmra.mrb[92].mxu1 %v3305_v20  ;;  %v3287_v19 = vmax.f32 %v3206_v53, 0.0  ;;  %v3289_v4 = vmax.f32 %v3259_v54, 0.0 }
0x170f   :  { %v3212_v8 = vadd.f32 %v3211_v43, %v6177_v15  ;;  %v3265_v10 = vadd.f32 %v3264_v44, %v6180_v36  ;;  %v3288_v31 = vmax.f32 %v3208_v11, 0.0  ;;  %v3290_v14 = vmax.f32 %v3261_v23, 0.0  ;;  %v4239_v36 = vld [vmem:[%s6244_s11] ss:$0 sm:$0xff] }
0x1710   :  { %v3295_v40 = vmax.f32 %v3210_v29, 0.0  ;;  %v3297_v57 = vmax.f32 %v3263_v46, 0.0 }
0x1711   :  { %v3296_v26 = vmax.f32 %v3212_v8, 0.0  ;;  %v3298_v63 = vmax.f32 %v3265_v10, 0.0 }
0x1712   :  { %v3311_v27 = vpack.c.bf16 %v3295_v40, %v3287_v19  ;;  %v3313_v16 = vpack.c.bf16 %v3297_v57, %v3289_v4 }
0x1713   :  { %v3312_v45 = vpack.c.bf16 %v3296_v26, %v3288_v31  ;;  %v3314_v5 = vpack.c.bf16 %v3298_v63, %v3290_v14 }
0x1715   :  { %3972 = vmatprep.mubr.bf16.mxu0 %v3312_v45  ;;  %4021 = vmatprep.mubr.bf16.mxu1 %v3314_v5 }
0x1716   :  { %3973 = vmatmul.mubr.bf16.gmra.mrb[104].mxu0 %v3311_v27  ;;  %4022 = vmatmul.mubr.bf16.gmra.mrb[96].mxu1 %v3313_v16 }
0x17c1   :  { %v4406_v62 = vpop.f32.mrb[92].mxu0  ;;  %v4434_v15 = vpop.f32.mrb[84].mxu1 }
0x17c2   :  { %v4407_v21 = vpop.f32.mrb[93].mxu0  ;;  %v4435_v41 = vpop.f32.mrb[85].mxu1 }
0x17c3   :  { %v4408_v3 = vadd.f32 %v4407_v21, %v4406_v62  ;;  %v4436_v24 = vadd.f32 %v4435_v41, %v4434_v15  ;;  %v4409_v34 = vpop.f32.mrb[94].mxu0  ;;  %v4437_v22 = vpop.f32.mrb[86].mxu1 }
0x17c4   :  { %v4410_v55 = vpop.f32.mrb[95].mxu0  ;;  %v4438_v28 = vpop.f32.mrb[87].mxu1 }
0x17c5   :  { %v3869_v47 = vadd.f32 %v4408_v3, %v4239_v36  ;;  %v4411_v61 = vadd.f32 %v4410_v55, %v4409_v34  ;;  %v4439_v1 = vadd.f32 %v4438_v28, %v4437_v22 }
0x17c7   :  { %v3918_v18 = vadd.f32 %v4436_v24, %v3869_v47  ;;  %v3872_v7 = vadd.f32 %v4411_v61, %v4239_v36 }
0x17c9   :  { %v3921_v39 = vadd.f32 %v4439_v1, %v3872_v7  ;;  %v4412_v42 = vpop.f32.mrb[96].mxu0  ;;  %v4440_v6 = vpop.f32.mrb[88].mxu1 }
0x17ca   :  { %v4413_v49 = vpop.f32.mrb[97].mxu0  ;;  %v4441_v12 = vpop.f32.mrb[89].mxu1 }
0x17cb   :  { %v4414_v2 = vadd.f32 %v4413_v49, %v4412_v42  ;;  %v4442_v56 = vadd.f32 %v4441_v12, %v4440_v6  ;;  %v4415_v58 = vpop.f32.mrb[98].mxu0  ;;  %v4443_v60 = vpop.f32.mrb[90].mxu1 }
0x17cc   :  { %v4416_v32 = vpop.f32.mrb[99].mxu0  ;;  %v4444_v48 = vpop.f32.mrb[91].mxu1 }
0x17cd   :  { %v3877_v59 = vadd.f32 %v4414_v2, %v4239_v36  ;;  %v4417_v17 = vadd.f32 %v4416_v32, %v4415_v58  ;;  %v4445_v20 = vadd.f32 %v4444_v48, %v4443_v60 }
0x17cf   :  { %v3926_v35 = vadd.f32 %v4442_v56, %v3877_v59  ;;  %v3880_v37 = vadd.f32 %v4417_v17, %v4239_v36 }
0x17d1   :  { %v3929_v38 = vadd.f32 %v4445_v20, %v3880_v37 }
0x17e1   :  { %v4462_v51 = vpop.f32.mrb[100].mxu0  ;;  %v4490_v53 = vpop.f32.mrb[92].mxu1 }
0x17e2   :  { %v4463_v54 = vpop.f32.mrb[101].mxu0  ;;  %v4491_v33 = vpop.f32.mrb[93].mxu1 }
0x17e3   :  { %v4464_v9 = vadd.f32 %v4463_v54, %v4462_v51  ;;  %v4492_v11 = vadd.f32 %v4491_v33, %v4490_v53  ;;  %v4465_v23 = vpop.f32.mrb[102].mxu0  ;;  %v4493_v25 = vpop.f32.mrb[94].mxu1  ;;  %v4304_v53 = vld [vmem:[%s6245_s12] ss:$0 sm:$0xff] }
0x17e4   :  { %v4466_v0 = vpop.f32.mrb[103].mxu0  ;;  %v4494_v29 = vpop.f32.mrb[95].mxu1 }
0x17e5   :  { %v3967_v46 = vadd.f32 %v4464_v9, %v3918_v18  ;;  %v4467_v43 = vadd.f32 %v4466_v0, %v4465_v23  ;;  %v4495_v44 = vadd.f32 %v4494_v29, %v4493_v25  ;;  %v4305_v9 = vld [vmem:[%s6246_s13] ss:$0 sm:$0xff] }
0x17e7   :  { %v4016_v8 = vadd.f32 %v4492_v11, %v3967_v46  ;;  %v3970_v10 = vadd.f32 %v4467_v43, %v3921_v39 }
0x17e9   :  { %v4019_v19 = vadd.f32 %v4495_v44, %v3970_v10  ;;  %v4468_v4 = vpop.f32.mrb[104].mxu0  ;;  %v4496_v40 = vpop.f32.mrb[96].mxu1  ;;  %v4030_v57 = vadd.f32 %v4016_v8, %v5877_v50 }
0x17ea   :  { %v4469_v31 = vpop.f32.mrb[105].mxu0  ;;  %v4497_v14 = vpop.f32.mrb[97].mxu1 }
0x17eb   :  { %v4470_v26 = vadd.f32 %v4469_v31, %v4468_v4  ;;  %v4498_v63 = vadd.f32 %v4497_v14, %v4496_v40  ;;  %v4471_v27 = vpop.f32.mrb[106].mxu0  ;;  %v4499_v16 = vpop.f32.mrb[98].mxu1  ;;  %4034 = vadd.xlane.f32.xlu0 %v4030_v57  ;;  %v4031_v45 = vadd.f32 %v4019_v19, %v5879_v52 }
0x17ec   :  { %v4472_v5 = vpop.f32.mrb[107].mxu0  ;;  %v4500_v62 = vpop.f32.mrb[99].mxu1 }
0x17ed   :  { %v3975_v15 = vadd.f32 %v4470_v26, %v3926_v35  ;;  %v4473_v36 = vadd.f32 %v4472_v5, %v4471_v27  ;;  %v4501_v21 = vadd.f32 %v4500_v62, %v4499_v16  ;;  %4036 = vadd.xlane.f32.xlu1 %v4031_v45 }
0x17ef   :  { %v4024_v41 = vadd.f32 %v4498_v63, %v3975_v15  ;;  %v3978_v3 = vadd.f32 %v4473_v36, %v3929_v38 }
0x17f1   :  { %v4027_v24 = vadd.f32 %v4501_v21, %v3978_v3  ;;  %v4032_v50 = vadd.f32 %v4024_v41, %v5916_v30 }
0x17f3   :  { %4038 = vadd.xlane.f32.xlu0 %v4032_v50  ;;  %v4033_v34 = vadd.f32 %v4027_v24, %v5900_v13 }
0x17f5   :  { %4040 = vadd.xlane.f32.xlu1 %v4033_v34 }
0x1878   :  { %v4035_v22 = vpop.xlane.xlu0 %4034 }
0x1879   :  { %v4042_v55 = vmul.f32 0.0078125, %v4035_v22 }
0x187a   :  { %v4037_v28 = vpop.xlane.xlu1 %4036 }
0x187b   :  { %v4046_v47 = vsub.f32 %v4030_v57, %v4042_v55  ;;  %v4043_v52 = vmul.f32 0.0078125, %v4037_v28 }
0x187d   :  { %v4047_v61 = vsub.f32 %v4031_v45, %v4043_v52  ;;  %v4050_v1 = vmul.f32 %v4046_v47, %v4046_v47 }
0x187f   :  { %4054 = vadd.xlane.f32.xlu0 %v4050_v1  ;;  %v4051_v18 = vmul.f32 %v4047_v61, %v4047_v61 }
0x1880   :  { %v4039_v7 = vpop.xlane.xlu0 %4038 }
0x1881   :  { %v4044_v39 = vmul.f32 0.0078125, %v4039_v7  ;;  %4056 = vadd.xlane.f32.xlu1 %v4051_v18 }
0x1882   :  { %v4041_v42 = vpop.xlane.xlu1 %4040 }
0x1883   :  { %v4048_v6 = vsub.f32 %v4032_v50, %v4044_v39  ;;  %v4045_v49 = vmul.f32 0.0078125, %v4041_v42 }
0x1885   :  { %v4049_v30 = vsub.f32 %v4033_v34, %v4045_v49  ;;  %v4052_v12 = vmul.f32 %v4048_v6, %v4048_v6 }
0x1887   :  { %4058 = vadd.xlane.f32.xlu0 %v4052_v12  ;;  %v4053_v13 = vmul.f32 %v4049_v30, %v4049_v30 }
0x1889   :  { %4060 = vadd.xlane.f32.xlu1 %v4053_v13 }
0x190c   :  { %v4055_v2 = vpop.xlane.xlu0 %4054 }
0x190d   :  { %v4062_v56 = vmul.f32 0.0078125, %v4055_v2 }
0x190e   :  { %v4057_v58 = vpop.xlane.xlu1 %4056 }
0x190f   :  { %v4066_v60 = vadd.f32 1e-05, %v4062_v56  ;;  %v4063_v32 = vmul.f32 0.0078125, %v4057_v58 }
0x1911   :  { %4984 = vrsqrt.f32 %v4066_v60  ;;  %v4067_v48 = vadd.f32 1e-05, %v4063_v32 }
0x1913   :  { %4986 = vrsqrt.f32 %v4067_v48 }
0x1914   :  { %v4059_v59 = vpop.xlane.xlu0 %4058 }
0x1915   :  { %v4064_v17 = vmul.f32 0.0078125, %v4059_v59 }
0x1916   :  { %v4061_v20 = vpop.xlane.xlu1 %4060 }
0x1917   :  { %v4068_v35 = vadd.f32 1e-05, %v4064_v17  ;;  %v4065_v37 = vmul.f32 0.0078125, %v4061_v20 }
0x1919   :  { %4988 = vrsqrt.f32 %v4068_v35  ;;  %v4069_v38 = vadd.f32 1e-05, %v4065_v37 }
0x191b   :  { %v4985_v51 = vpop.eup %4984  ;;  %4990 = vrsqrt.f32 %v4069_v38 }
0x191c   :  { %v4074_v54 = vmul.f32 %v4985_v51, %v4046_v47 }
0x191d   :  { %v4987_v33 = vpop.eup %4986 }
0x191e   :  { %v4085_v11 = vmul.f32 %v4304_v53, %v4074_v54  ;;  %v4075_v23 = vmul.f32 %v4987_v33, %v4047_v61 }
0x1920   :  { %v4096_v25 = vadd.f32 %v4305_v9, %v4085_v11  ;;  %v4086_v0 = vmul.f32 %v4304_v53, %v4075_v23 }
0x1922   :  { %4100 = vst [vmem:[%s6247_s14] sm:$0xff] %v4096_v25  ;;  %v4097_v29 = vadd.f32 %v4305_v9, %v4086_v0 }
0x1923   :  { %v4989_v46 = vpop.eup %4988 }
0x1924   :  { %4101 = vst [vmem:[%s6247_s14 + $0x8] sm:$0xff] %v4097_v29  ;;  %v4076_v43 = vmul.f32 %v4989_v46, %v4048_v6 }
0x1925   :  { %v4991_v44 = vpop.eup %4990 }
0x1926   :  { %v4087_v8 = vmul.f32 %v4304_v53, %v4076_v43  ;;  %v4077_v10 = vmul.f32 %v4991_v44, %v4049_v30 }
0x1928   :  { %v4098_v19 = vadd.f32 %v4305_v9, %v4087_v8  ;;  %v4088_v4 = vmul.f32 %v4304_v53, %v4077_v10 }
0x192a   :  { %4102 = vst [vmem:[%s6247_s14 + $0x10] sm:$0xff] %v4098_v19  ;;  %v4099_v40 = vadd.f32 %v4305_v9, %v4088_v4 }
0x192c   :  { %4103 = vst [vmem:[%s6247_s14 + $0x18] sm:$0xff] %v4099_v40 }

</bundles_post_ra>
